<compile_context>
chip_gen: v6e
topology: v6e:2x2x1
jax: 0.10.0
libtpu: 0.0.40
codegen_flags: <defaults>
</compile_context>

<pallas_src>
import functools

import jax
import jax.numpy as jnp
from jax import lax
from jax.experimental import pallas as pl
from jax.experimental.pallas import tpu as pltpu

LRELU_SLOPE = 0.1


def get_padding(kernel_size, dilation=1):
    return (kernel_size * dilation - dilation) // 2


def _leaky_relu(x, slope=LRELU_SLOPE):
    return jnp.where(x >= 0, x, slope * x)


def _stage_plan(kernel_size, dilations):
    """Per-stage output halo (rows of x_i needed beyond the tile) + total halo."""
    pad2 = get_padding(kernel_size, 1)
    h = 0
    h_outs_rev = []
    for d in reversed(dilations):
        h_outs_rev.append(h)
        h = h + pad2 + get_padding(kernel_size, d)
    return list(reversed(h_outs_rev)), h


# --------------------------- fused ResBlock1 kernel --------------------------

def _resblock1_kernel(xc_ref, xl_ref, xr_ref, w1_ref, b1_ref, w2_ref, b2_ref,
                      o_ref, *, T, t_tile, C, K, dilations, h_outs, hb, cdt):
    """All three (leaky_relu -> dilated conv -> leaky_relu -> conv -> +res) stages
    on one (t_tile, C) time tile.

    xc_ref : (1, t_tile, C)  center tile of x
    xl_ref : (1, hb, C)      neighbor block left of the tile (clamped at edges)
    xr_ref : (1, hb, C)      neighbor block right of the tile (clamped at edges)
    w1_ref : (3*K*C, C) cdt  dilated-conv weights, stage-major then tap-major
    b1_ref : (3, 1, C)  f32  dilated-conv biases
    w2_ref : (3*K*C, C) cdt  dilation-1 conv weights
    b2_ref : (3, 1, C)  f32  dilation-1 conv biases
    o_ref  : (1, t_tile, C)  output tile
    """
    j = pl.program_id(1)
    nt = pl.num_programs(1)
    t0 = j * t_tile
    pad2 = (K - 1) // 2

    f32 = jnp.float32
    xc = xc_ref[0].astype(f32)          # (t_tile, C)
    xl = xl_ref[0].astype(f32)          # (hb, C)  rows [t0-hb, t0)  (clamped at j==0)
    xr = xr_ref[0].astype(f32)          # (hb, C)  rows [t0+t_tile, t0+t_tile+hb)

    # Neighbor blocks that fall outside [0, T) are zero (Conv1d "same" zero pad).
    lmask = (j > 0).astype(f32)
    rmask = (j < nt - 1).astype(f32)
    # x over positions [t0-hb, t0+t_tile+hb), zero outside [0, T).
    x_cur = jnp.concatenate([xl * lmask, xc, xr * rmask], axis=0)

    # One position-validity column for the whole slab; sliced per stage.
    r0 = t_tile + 2 * hb
    pos = lax.broadcasted_iota(jnp.int32, (r0, 1), 0) + (t0 - hb)
    valid = jnp.logical_and(pos >= 0, pos < T).astype(f32)       # (r0, 1)

    h_in = hb
    for i, d in enumerate(dilations):
        h_out = h_outs[i]
        pad1 = (K - 1) // 2 * d
        r_mid = t_tile + 2 * (h_out + pad2)      # rows of conv1 output (conv2 input)
        r_out = t_tile + 2 * h_out               # rows of this stage's output
        off1 = h_in - h_out - pad2 - pad1        # first x_cur row used by conv1 tap 0
        assert off1 >= 0

        a = _leaky_relu(x_cur)                   # f32, (t_tile + 2*h_in, C)

        # ---- conv1 (dilated): K accumulating (r_mid, C) @ (C, C) MXU matmuls --
        y1 = None
        for k in range(K):
            row0 = (i * K + k) * C
            wk = w1_ref[row0:row0 + C, :]        # (C, C) cdt
            p = jnp.dot(a[off1 + k * d:off1 + k * d + r_mid, :].astype(cdt), wk,
                        preferred_element_type=f32)
            y1 = p if y1 is None else y1 + p
        y1 = y1 + b1_ref[i]                      # (1, C) bias broadcast
        # conv2's zero padding: zero conv1 outputs at positions outside [0, T).
        y1 = y1 * valid[hb - h_out - pad2:hb - h_out - pad2 + r_mid]

        b_ = _leaky_relu(y1)                     # f32, (r_mid, C)

        # ---- conv2 (dilation 1): K accumulating matmuls -----------------------
        y2 = None
        for k in range(K):
            row0 = (i * K + k) * C
            wk = w2_ref[row0:row0 + C, :]
            p = jnp.dot(b_[k:k + r_out, :].astype(cdt), wk,
                        preferred_element_type=f32)
            y2 = p if y2 is None else y2 + p
        y2 = y2 + b2_ref[i]

        # residual add on the pre-activation input rows of this stage
        off_res = h_in - h_out
        x_cur = y2 + x_cur[off_res:off_res + r_out, :]
        if h_out > 0:
            # zero out-of-range rows before they feed the next stage's conv
            x_cur = x_cur * valid[hb - h_out:hb - h_out + r_out]
        h_in = h_out

    o_ref[0] = x_cur.astype(o_ref.dtype)         # (t_tile, C)


def _choose_t_tile(T, hb, target=1024):
    """Largest multiple of hb that divides T and is <= target (else T itself)."""
    best = None
    for cand in range(hb, min(T, target) + 1, hb):
        if T % cand == 0:
            best = cand
    if best is None:
        if T % hb == 0:
            best = T
        else:
            raise ValueError(f"T={T} must be a multiple of {hb}; pad the sequence.")
    return best


def resblock1_apply_btc(x_btc, params, kernel_size, dilation, *, t_tile=None,
                        mxu_dtype=jnp.bfloat16):
    """Fused ResBlock1 on (B, T, C) input; returns (B, T, C)."""
    B, T, C = x_btc.shape
    K = kernel_size
    assert K % 2 == 1, "ResBlock1 expects odd kernel_size ('same' padding)."
    dilations = tuple(int(d) for d in dilation)
    n_stage = len(dilations)
    h_outs, halo = _stage_plan(K, dilations)

    hb = max(8, -(-halo // 8) * 8)               # sublane-aligned halo fetch block
    if t_tile is None:
        t_tile = _choose_t_tile(T, hb, target=1024)
    assert T % t_tile == 0, f"T={T} must be a multiple of t_tile={t_tile}"
    assert t_tile % hb == 0, f"t_tile={t_tile} must be a multiple of {hb}"
    assert halo <= hb <= t_tile, (
        f"halo={halo} must satisfy halo <= {hb} <= t_tile={t_tile}; "
        "this kernel_size/dilation combo needs a larger t_tile.")

    nt = T // t_tile                             # time tiles
    nh = T // hb                                 # halo-sized blocks
    thr = t_tile // hb                           # halo blocks per time tile

    # Per-tap weight layout: (Cout, Cin, K) -> (K, Cin, Cout) -> rows (i*K+k)*C.
    w1cat = jnp.concatenate(
        [jnp.transpose(w, (2, 1, 0)).reshape(K * C, C) for (w, _) in params["convs1"]],
        axis=0).astype(mxu_dtype)
    w2cat = jnp.concatenate(
        [jnp.transpose(w, (2, 1, 0)).reshape(K * C, C) for (w, _) in params["convs2"]],
        axis=0).astype(mxu_dtype)
    b1cat = jnp.stack([b for (_, b) in params["convs1"]]
                      ).reshape(n_stage, 1, C).astype(jnp.float32)
    b2cat = jnp.stack([b for (_, b) in params["convs2"]]
                      ).reshape(n_stage, 1, C).astype(jnp.float32)

    kernel = functools.partial(
        _resblock1_kernel, T=T, t_tile=t_tile, C=C, K=K, dilations=dilations,
        h_outs=tuple(h_outs), hb=hb, cdt=mxu_dtype)

    x_center = pl.BlockSpec((1, t_tile, C), lambda b, j: (b, j, 0))
    x_left = pl.BlockSpec(
        (1, hb, C), lambda b, j: (b, jnp.maximum(j * thr - 1, 0), 0))
    x_right = pl.BlockSpec(
        (1, hb, C), lambda b, j: (b, jnp.minimum((j + 1) * thr, nh - 1), 0))
    w_spec = pl.BlockSpec((n_stage * K * C, C), lambda b, j: (0, 0))
    b_spec = pl.BlockSpec((n_stage, 1, C), lambda b, j: (0, 0, 0))
    out_spec = pl.BlockSpec((1, t_tile, C), lambda b, j: (b, j, 0))

    return pl.pallas_call(
        kernel,
        out_shape=jax.ShapeDtypeStruct((B, T, C), x_btc.dtype),
        grid_spec=pltpu.PrefetchScalarGridSpec(
            num_scalar_prefetch=0,
            grid=(B, nt),
            in_specs=[x_center, x_left, x_right, w_spec, b_spec, w_spec, b_spec],
            out_specs=out_spec,
        ),
        compiler_params=pltpu.CompilerParams(
            dimension_semantics=("parallel", "parallel"),
            vmem_limit_bytes=32 * 1024 * 1024,
        ),
    )(x_btc, x_btc, x_btc, w1cat, b1cat, w2cat, b2cat)


def resblock1_forward(x_nct, params, kernel_size, dilation, t_tile=None,
                      mxu_dtype=jnp.bfloat16):
    """ResBlock1.forward with PyTorch-style (B, C, T) input/output."""
    # TODO(synk): keep the surrounding model in (B, T, C) and call
    # resblock1_apply_btc directly to avoid these two full-tensor HBM transposes.
    x = jnp.transpose(x_nct, (0, 2, 1))          # -> (B, T, C)
    y = resblock1_apply_btc(x, params, kernel_size, dilation,
                            t_tile=t_tile, mxu_dtype=mxu_dtype)
    return jnp.transpose(y, (0, 2, 1))           # back to (B, C, T)


# ----------------------- pure-JAX reference (for validation) -----------------

def _conv1d_ref(x, w, b, dilation, padding):
    y = lax.conv_general_dilated(
        x, w, window_strides=(1,), padding=[(padding, padding)],
        rhs_dilation=(dilation,), dimension_numbers=("NCH", "OIH", "NCH"))
    return y + b[None, :, None]


def resblock1_ref(x, params, kernel_size, dilation):
    for i in range(3):
        w1, b1 = params["convs1"][i]
        w2, b2 = params["convs2"][i]
        xt = _leaky_relu(x)
        xt = _conv1d_ref(xt, w1, b1, dilation[i],
                         get_padding(kernel_size, dilation[i]))
        xt = _leaky_relu(xt)
        xt = _conv1d_ref(xt, w2, b2, 1, get_padding(kernel_size, 1))
        x = xt + x
    return x


# ----------------------- deterministic parameter init ------------------------

def init_resblock1_params(key, channels, kernel_size):
    """weight_norm at init reproduces the underlying weight, so initialize the
    effective weights directly: init_weights() -> normal(0, 0.01),
    Conv1d bias -> uniform(-1/sqrt(Cin*K), 1/sqrt(Cin*K))."""
    params = {"convs1": [], "convs2": []}
    bound = 1.0 / (channels * kernel_size) ** 0.5
    for name in ("convs1", "convs2"):
        for _ in range(3):
            key, kw, kb = jax.random.split(key, 3)
            w = 0.01 * jax.random.normal(
                kw, (channels, channels, kernel_size), dtype=jnp.float32)
            b = jax.random.uniform(
                kb, (channels,), minval=-bound, maxval=bound, dtype=jnp.float32)
            params[name].append((w, b))
    return params


if __name__ == "__main__":
    # Small but representative: C=128 keeps channels lane-dense, T=256 exercises
    # both sequence edges; t_tile=64 runs exercise interior halo tiles too.
    B, C, T = 2, 128, 256
    kernel_size = 3
    dilation = (1, 3, 5)

    key = jax.random.PRNGKey(0)
    key, kx, kp = jax.random.split(key, 3)
    x = jax.random.normal(kx, (B, C, T), dtype=jnp.float32)   # PyTorch NCT input
    params = init_resblock1_params(kp, C, kernel_size)

    ref = resblock1_ref(x, params, kernel_size, dilation)

    # float32 MXU path, forced multi-tile grid (interior + edge halos): tight check.
    out32 = resblock1_forward(x, params, kernel_size, dilation,
                              t_tile=64, mxu_dtype=jnp.float32)
    out32 = jax.block_until_ready(out32)
    assert out32.shape == ref.shape == (B, C, T)
    err32 = float(jnp.max(jnp.abs(out32 - ref)))
    assert jnp.allclose(out32, ref, atol=1e-3, rtol=1e-3), f"f32 max abs err {err32}"

    # default bf16 MXU path (f32 accumulation, f32 residual chain), auto tile.
    out_bf = resblock1_forward(x, params, kernel_size, dilation)
    out_bf = jax.block_until_ready(out_bf)
    err_bf = float(jnp.max(jnp.abs(out_bf - ref)))
    assert err_bf < 5e-2, f"bf16 max abs err {err_bf}"

    # bf16 path with a forced multi-tile grid (halo/mask paths under bf16).
    out_bf2 = resblock1_forward(x, params, kernel_size, dilation, t_tile=64)
    out_bf2 = jax.block_until_ready(out_bf2)
    err_bf2 = float(jnp.max(jnp.abs(out_bf2 - ref)))
    assert err_bf2 < 5e-2, f"bf16 tiled max abs err {err_bf2}"

    print("KERNEL_OK")
</pallas_src>

<mosaic_0001>
module attributes {stable_mosaic.version = 11 : i64} {
  func.func @_resblock1_kernel(%arg0: i32, %arg1: i32, %arg2: memref<1x64x128xf32, #tpu.memory_space<vmem>>, %arg3: memref<1x16x128xf32, #tpu.memory_space<vmem>>, %arg4: memref<1x16x128xf32, #tpu.memory_space<vmem>>, %arg5: memref<1152x128xf32, #tpu.memory_space<vmem>>, %arg6: memref<3x1x128xf32, #tpu.memory_space<vmem>>, %arg7: memref<1152x128xf32, #tpu.memory_space<vmem>>, %arg8: memref<3x1x128xf32, #tpu.memory_space<vmem>>, %arg9: memref<1x64x128xf32, #tpu.memory_space<vmem>>) attributes {dimension_semantics = [#tpu.dimension_semantics<parallel>, #tpu.dimension_semantics<parallel>], iteration_bounds = array<i64: 2, 4>, scalar_prefetch = 0 : i64, scratch_operands = 0 : i64, tpu.core_type = #tpu.core_type<tc>, window_params = [{transform_indices = @transform_0, window_bounds = array<i64: 1, 64, 128>}, {transform_indices = @transform_1, window_bounds = array<i64: 1, 16, 128>}, {transform_indices = @transform_2, window_bounds = array<i64: 1, 16, 128>}, {pipeline_mode = #tpu.pipeline_mode<synchronous>, transform_indices = @transform_3, window_bounds = array<i64: 1152, 128>}, {pipeline_mode = #tpu.pipeline_mode<synchronous>, transform_indices = @transform_4, window_bounds = array<i64: 3, 1, 128>}, {pipeline_mode = #tpu.pipeline_mode<synchronous>, transform_indices = @transform_5, window_bounds = array<i64: 1152, 128>}, {pipeline_mode = #tpu.pipeline_mode<synchronous>, transform_indices = @transform_6, window_bounds = array<i64: 3, 1, 128>}, {transform_indices = @transform_7, window_bounds = array<i64: 1, 64, 128>}]} {
    %c64_i32 = arith.constant 64 : i32
    %0 = arith.muli %arg1, %c64_i32 : i32
    %c0 = arith.constant 0 : index
    %c0_0 = arith.constant 0 : index
    %c0_1 = arith.constant 0 : index
    %1 = vector.load %arg2[%c0, %c0_0, %c0_1] : memref<1x64x128xf32, #tpu.memory_space<vmem>>, vector<1x64x128xf32>
    %2 = vector.shape_cast %1 : vector<1x64x128xf32> to vector<64x128xf32>
    %c0_2 = arith.constant 0 : index
    %c0_3 = arith.constant 0 : index
    %c0_4 = arith.constant 0 : index
    %3 = vector.load %arg3[%c0_2, %c0_3, %c0_4] : memref<1x16x128xf32, #tpu.memory_space<vmem>>, vector<1x16x128xf32>
    %4 = vector.shape_cast %3 : vector<1x16x128xf32> to vector<16x128xf32>
    %c0_5 = arith.constant 0 : index
    %c0_6 = arith.constant 0 : index
    %c0_7 = arith.constant 0 : index
    %5 = vector.load %arg4[%c0_5, %c0_6, %c0_7] : memref<1x16x128xf32, #tpu.memory_space<vmem>>, vector<1x16x128xf32>
    %6 = vector.shape_cast %5 : vector<1x16x128xf32> to vector<16x128xf32>
    %c0_i32 = arith.constant 0 : i32
    %7 = arith.cmpi sgt, %arg1, %c0_i32 : i32
    %8 = arith.extui %7 : i1 to i32
    %9 = arith.sitofp %8 : i32 to f32
    %c3_i32 = arith.constant 3 : i32
    %10 = arith.cmpi slt, %arg1, %c3_i32 : i32
    %11 = arith.extui %10 : i1 to i32
    %12 = arith.sitofp %11 : i32 to f32
    %13 = vector.broadcast %9 : f32 to vector<16x128xf32>
    %14 = arith.mulf %4, %13 : vector<16x128xf32>
    %15 = vector.broadcast %12 : f32 to vector<16x128xf32>
    %16 = arith.mulf %6, %15 : vector<16x128xf32>
    %17 = tpu.concatenate %14, %2, %16 in 0 : vector<16x128xf32>, vector<64x128xf32>, vector<16x128xf32> -> vector<96x128xf32>
    %18 = tpu.iota {dimensions = array<i32: 0>} : vector<96x1xi32>
    %c16_i32 = arith.constant 16 : i32
    %19 = arith.subi %0, %c16_i32 : i32
    %20 = vector.broadcast %19 : i32 to vector<96x1xi32>
    %21 = arith.addi %18, %20 : vector<96x1xi32>
    %c0_i32_8 = arith.constant 0 : i32
    %22 = vector.broadcast %c0_i32_8 : i32 to vector<96x1xi32>
    %23 = arith.cmpi sge, %21, %22 : vector<96x1xi32>
    %c256_i32 = arith.constant 256 : i32
    %24 = vector.broadcast %c256_i32 : i32 to vector<96x1xi32>
    %25 = arith.cmpi slt, %21, %24 : vector<96x1xi32>
    %26 = arith.andi %23, %25 : vector<96x1xi1>
    %27 = arith.extui %26 : vector<96x1xi1> to vector<96x1xi32>
    %28 = arith.sitofp %27 : vector<96x1xi32> to vector<96x1xf32>
    %cst = arith.constant 0.000000e+00 : f32
    %29 = vector.broadcast %cst : f32 to vector<96x128xf32>
    %30 = arith.cmpf oge, %17, %29 : vector<96x128xf32>
    %cst_9 = arith.constant 1.000000e-01 : f32
    %31 = vector.broadcast %cst_9 : f32 to vector<96x128xf32>
    %32 = arith.mulf %31, %17 : vector<96x128xf32>
    %33 = arith.select %30, %17, %32 : vector<96x128xi1>, vector<96x128xf32>
    %c0_10 = arith.constant 0 : index
    %c0_11 = arith.constant 0 : index
    %34 = vector.load %arg5[%c0_10, %c0_11] : memref<1152x128xf32, #tpu.memory_space<vmem>>, vector<128x128xf32>
    %35 = vector.extract_strided_slice %33 {offsets = [4, 0], sizes = [86, 128], strides = [1, 1]} : vector<96x128xf32> to vector<86x128xf32>
    %cst_12 = arith.constant dense<0.000000e+00> : vector<86x128xf32>
    %36 = tpu.matmul %35, %34, %cst_12 {dimension_numbers = #tpu.dot_dimension_numbers<[1], [0], [0], [1], [0, 0, 1, 1], [], []>} : vector<86x128xf32>, vector<128x128xf32>, vector<86x128xf32> -> vector<86x128xf32>
    %c128 = arith.constant 128 : index
    %c0_13 = arith.constant 0 : index
    %37 = vector.load %arg5[%c128, %c0_13] : memref<1152x128xf32, #tpu.memory_space<vmem>>, vector<128x128xf32>
    %38 = vector.extract_strided_slice %33 {offsets = [5, 0], sizes = [86, 128], strides = [1, 1]} : vector<96x128xf32> to vector<86x128xf32>
    %cst_14 = arith.constant dense<0.000000e+00> : vector<86x128xf32>
    %39 = tpu.matmul %38, %37, %cst_14 {dimension_numbers = #tpu.dot_dimension_numbers<[1], [0], [0], [1], [0, 0, 1, 1], [], []>} : vector<86x128xf32>, vector<128x128xf32>, vector<86x128xf32> -> vector<86x128xf32>
    %40 = arith.addf %36, %39 : vector<86x128xf32>
    %c256 = arith.constant 256 : index
    %c0_15 = arith.constant 0 : index
    %41 = vector.load %arg5[%c256, %c0_15] : memref<1152x128xf32, #tpu.memory_space<vmem>>, vector<128x128xf32>
    %42 = vector.extract_strided_slice %33 {offsets = [6, 0], sizes = [86, 128], strides = [1, 1]} : vector<96x128xf32> to vector<86x128xf32>
    %cst_16 = arith.constant dense<0.000000e+00> : vector<86x128xf32>
    %43 = tpu.matmul %42, %41, %cst_16 {dimension_numbers = #tpu.dot_dimension_numbers<[1], [0], [0], [1], [0, 0, 1, 1], [], []>} : vector<86x128xf32>, vector<128x128xf32>, vector<86x128xf32> -> vector<86x128xf32>
    %44 = arith.addf %40, %43 : vector<86x128xf32>
    %c0_17 = arith.constant 0 : index
    %c0_18 = arith.constant 0 : index
    %c0_19 = arith.constant 0 : index
    %45 = vector.load %arg6[%c0_17, %c0_18, %c0_19] : memref<3x1x128xf32, #tpu.memory_space<vmem>>, vector<1x1x128xf32>
    %46 = vector.shape_cast %45 : vector<1x1x128xf32> to vector<1x128xf32>
    %47 = vector.broadcast %46 : vector<1x128xf32> to vector<86x128xf32>
    %48 = arith.addf %44, %47 : vector<86x128xf32>
    %49 = vector.extract_strided_slice %28 {offsets = [5, 0], sizes = [86, 1], strides = [1, 1]} : vector<96x1xf32> to vector<86x1xf32>
    %50 = vector.broadcast %49 : vector<86x1xf32> to vector<86x128xf32>
    %51 = arith.mulf %48, %50 : vector<86x128xf32>
    %cst_20 = arith.constant 0.000000e+00 : f32
    %52 = vector.broadcast %cst_20 : f32 to vector<86x128xf32>
    %53 = arith.cmpf oge, %51, %52 : vector<86x128xf32>
    %cst_21 = arith.constant 1.000000e-01 : f32
    %54 = vector.broadcast %cst_21 : f32 to vector<86x128xf32>
    %55 = arith.mulf %54, %51 : vector<86x128xf32>
    %56 = arith.select %53, %51, %55 : vector<86x128xi1>, vector<86x128xf32>
    %c0_22 = arith.constant 0 : index
    %c0_23 = arith.constant 0 : index
    %57 = vector.load %arg7[%c0_22, %c0_23] : memref<1152x128xf32, #tpu.memory_space<vmem>>, vector<128x128xf32>
    %58 = vector.extract_strided_slice %56 {offsets = [0, 0], sizes = [84, 128], strides = [1, 1]} : vector<86x128xf32> to vector<84x128xf32>
    %cst_24 = arith.constant dense<0.000000e+00> : vector<84x128xf32>
    %59 = tpu.matmul %58, %57, %cst_24 {dimension_numbers = #tpu.dot_dimension_numbers<[1], [0], [0], [1], [0, 0, 1, 1], [], []>} : vector<84x128xf32>, vector<128x128xf32>, vector<84x128xf32> -> vector<84x128xf32>
    %c128_25 = arith.constant 128 : index
    %c0_26 = arith.constant 0 : index
    %60 = vector.load %arg7[%c128_25, %c0_26] : memref<1152x128xf32, #tpu.memory_space<vmem>>, vector<128x128xf32>
    %61 = vector.extract_strided_slice %56 {offsets = [1, 0], sizes = [84, 128], strides = [1, 1]} : vector<86x128xf32> to vector<84x128xf32>
    %cst_27 = arith.constant dense<0.000000e+00> : vector<84x128xf32>
    %62 = tpu.matmul %61, %60, %cst_27 {dimension_numbers = #tpu.dot_dimension_numbers<[1], [0], [0], [1], [0, 0, 1, 1], [], []>} : vector<84x128xf32>, vector<128x128xf32>, vector<84x128xf32> -> vector<84x128xf32>
    %63 = arith.addf %59, %62 : vector<84x128xf32>
    %c256_28 = arith.constant 256 : index
    %c0_29 = arith.constant 0 : index
    %64 = vector.load %arg7[%c256_28, %c0_29] : memref<1152x128xf32, #tpu.memory_space<vmem>>, vector<128x128xf32>
    %65 = vector.extract_strided_slice %56 {offsets = [2, 0], sizes = [84, 128], strides = [1, 1]} : vector<86x128xf32> to vector<84x128xf32>
    %cst_30 = arith.constant dense<0.000000e+00> : vector<84x128xf32>
    %66 = tpu.matmul %65, %64, %cst_30 {dimension_numbers = #tpu.dot_dimension_numbers<[1], [0], [0], [1], [0, 0, 1, 1], [], []>} : vector<84x128xf32>, vector<128x128xf32>, vector<84x128xf32> -> vector<84x128xf32>
    %67 = arith.addf %63, %66 : vector<84x128xf32>
    %c0_31 = arith.constant 0 : index
    %c0_32 = arith.constant 0 : index
    %c0_33 = arith.constant 0 : index
    %68 = vector.load %arg8[%c0_31, %c0_32, %c0_33] : memref<3x1x128xf32, #tpu.memory_space<vmem>>, vector<1x1x128xf32>
    %69 = vector.shape_cast %68 : vector<1x1x128xf32> to vector<1x128xf32>
    %70 = vector.broadcast %69 : vector<1x128xf32> to vector<84x128xf32>
    %71 = arith.addf %67, %70 : vector<84x128xf32>
    %72 = vector.extract_strided_slice %17 {offsets = [6, 0], sizes = [84, 128], strides = [1, 1]} : vector<96x128xf32> to vector<84x128xf32>
    %73 = arith.addf %71, %72 : vector<84x128xf32>
    %74 = vector.extract_strided_slice %28 {offsets = [6, 0], sizes = [84, 1], strides = [1, 1]} : vector<96x1xf32> to vector<84x1xf32>
    %75 = vector.broadcast %74 : vector<84x1xf32> to vector<84x128xf32>
    %76 = arith.mulf %73, %75 : vector<84x128xf32>
    %cst_34 = arith.constant 0.000000e+00 : f32
    %77 = vector.broadcast %cst_34 : f32 to vector<84x128xf32>
    %78 = arith.cmpf oge, %76, %77 : vector<84x128xf32>
    %cst_35 = arith.constant 1.000000e-01 : f32
    %79 = vector.broadcast %cst_35 : f32 to vector<84x128xf32>
    %80 = arith.mulf %79, %76 : vector<84x128xf32>
    %81 = arith.select %78, %76, %80 : vector<84x128xi1>, vector<84x128xf32>
    %c384 = arith.constant 384 : index
    %c0_36 = arith.constant 0 : index
    %82 = vector.load %arg5[%c384, %c0_36] : memref<1152x128xf32, #tpu.memory_space<vmem>>, vector<128x128xf32>
    %83 = vector.extract_strided_slice %81 {offsets = [0, 0], sizes = [78, 128], strides = [1, 1]} : vector<84x128xf32> to vector<78x128xf32>
    %cst_37 = arith.constant dense<0.000000e+00> : vector<78x128xf32>
    %84 = tpu.matmul %83, %82, %cst_37 {dimension_numbers = #tpu.dot_dimension_numbers<[1], [0], [0], [1], [0, 0, 1, 1], [], []>} : vector<78x128xf32>, vector<128x128xf32>, vector<78x128xf32> -> vector<78x128xf32>
    %c512 = arith.constant 512 : index
    %c0_38 = arith.constant 0 : index
    %85 = vector.load %arg5[%c512, %c0_38] : memref<1152x128xf32, #tpu.memory_space<vmem>>, vector<128x128xf32>
    %86 = vector.extract_strided_slice %81 {offsets = [3, 0], sizes = [78, 128], strides = [1, 1]} : vector<84x128xf32> to vector<78x128xf32>
    %cst_39 = arith.constant dense<0.000000e+00> : vector<78x128xf32>
    %87 = tpu.matmul %86, %85, %cst_39 {dimension_numbers = #tpu.dot_dimension_numbers<[1], [0], [0], [1], [0, 0, 1, 1], [], []>} : vector<78x128xf32>, vector<128x128xf32>, vector<78x128xf32> -> vector<78x128xf32>
    %88 = arith.addf %84, %87 : vector<78x128xf32>
    %c640 = arith.constant 640 : index
    %c0_40 = arith.constant 0 : index
    %89 = vector.load %arg5[%c640, %c0_40] : memref<1152x128xf32, #tpu.memory_space<vmem>>, vector<128x128xf32>
    %90 = vector.extract_strided_slice %81 {offsets = [6, 0], sizes = [78, 128], strides = [1, 1]} : vector<84x128xf32> to vector<78x128xf32>
    %cst_41 = arith.constant dense<0.000000e+00> : vector<78x128xf32>
    %91 = tpu.matmul %90, %89, %cst_41 {dimension_numbers = #tpu.dot_dimension_numbers<[1], [0], [0], [1], [0, 0, 1, 1], [], []>} : vector<78x128xf32>, vector<128x128xf32>, vector<78x128xf32> -> vector<78x128xf32>
    %92 = arith.addf %88, %91 : vector<78x128xf32>
    %c1 = arith.constant 1 : index
    %c0_42 = arith.constant 0 : index
    %c0_43 = arith.constant 0 : index
    %93 = vector.load %arg6[%c1, %c0_42, %c0_43] : memref<3x1x128xf32, #tpu.memory_space<vmem>>, vector<1x1x128xf32>
    %94 = vector.shape_cast %93 : vector<1x1x128xf32> to vector<1x128xf32>
    %95 = vector.broadcast %94 : vector<1x128xf32> to vector<78x128xf32>
    %96 = arith.addf %92, %95 : vector<78x128xf32>
    %97 = vector.extract_strided_slice %28 {offsets = [9, 0], sizes = [78, 1], strides = [1, 1]} : vector<96x1xf32> to vector<78x1xf32>
    %98 = vector.broadcast %97 : vector<78x1xf32> to vector<78x128xf32>
    %99 = arith.mulf %96, %98 : vector<78x128xf32>
    %cst_44 = arith.constant 0.000000e+00 : f32
    %100 = vector.broadcast %cst_44 : f32 to vector<78x128xf32>
    %101 = arith.cmpf oge, %99, %100 : vector<78x128xf32>
    %cst_45 = arith.constant 1.000000e-01 : f32
    %102 = vector.broadcast %cst_45 : f32 to vector<78x128xf32>
    %103 = arith.mulf %102, %99 : vector<78x128xf32>
    %104 = arith.select %101, %99, %103 : vector<78x128xi1>, vector<78x128xf32>
    %c384_46 = arith.constant 384 : index
    %c0_47 = arith.constant 0 : index
    %105 = vector.load %arg7[%c384_46, %c0_47] : memref<1152x128xf32, #tpu.memory_space<vmem>>, vector<128x128xf32>
    %106 = vector.extract_strided_slice %104 {offsets = [0, 0], sizes = [76, 128], strides = [1, 1]} : vector<78x128xf32> to vector<76x128xf32>
    %cst_48 = arith.constant dense<0.000000e+00> : vector<76x128xf32>
    %107 = tpu.matmul %106, %105, %cst_48 {dimension_numbers = #tpu.dot_dimension_numbers<[1], [0], [0], [1], [0, 0, 1, 1], [], []>} : vector<76x128xf32>, vector<128x128xf32>, vector<76x128xf32> -> vector<76x128xf32>
    %c512_49 = arith.constant 512 : index
    %c0_50 = arith.constant 0 : index
    %108 = vector.load %arg7[%c512_49, %c0_50] : memref<1152x128xf32, #tpu.memory_space<vmem>>, vector<128x128xf32>
    %109 = vector.extract_strided_slice %104 {offsets = [1, 0], sizes = [76, 128], strides = [1, 1]} : vector<78x128xf32> to vector<76x128xf32>
    %cst_51 = arith.constant dense<0.000000e+00> : vector<76x128xf32>
    %110 = tpu.matmul %109, %108, %cst_51 {dimension_numbers = #tpu.dot_dimension_numbers<[1], [0], [0], [1], [0, 0, 1, 1], [], []>} : vector<76x128xf32>, vector<128x128xf32>, vector<76x128xf32> -> vector<76x128xf32>
    %111 = arith.addf %107, %110 : vector<76x128xf32>
    %c640_52 = arith.constant 640 : index
    %c0_53 = arith.constant 0 : index
    %112 = vector.load %arg7[%c640_52, %c0_53] : memref<1152x128xf32, #tpu.memory_space<vmem>>, vector<128x128xf32>
    %113 = vector.extract_strided_slice %104 {offsets = [2, 0], sizes = [76, 128], strides = [1, 1]} : vector<78x128xf32> to vector<76x128xf32>
    %cst_54 = arith.constant dense<0.000000e+00> : vector<76x128xf32>
    %114 = tpu.matmul %113, %112, %cst_54 {dimension_numbers = #tpu.dot_dimension_numbers<[1], [0], [0], [1], [0, 0, 1, 1], [], []>} : vector<76x128xf32>, vector<128x128xf32>, vector<76x128xf32> -> vector<76x128xf32>
    %115 = arith.addf %111, %114 : vector<76x128xf32>
    %c1_55 = arith.constant 1 : index
    %c0_56 = arith.constant 0 : index
    %c0_57 = arith.constant 0 : index
    %116 = vector.load %arg8[%c1_55, %c0_56, %c0_57] : memref<3x1x128xf32, #tpu.memory_space<vmem>>, vector<1x1x128xf32>
    %117 = vector.shape_cast %116 : vector<1x1x128xf32> to vector<1x128xf32>
    %118 = vector.broadcast %117 : vector<1x128xf32> to vector<76x128xf32>
    %119 = arith.addf %115, %118 : vector<76x128xf32>
    %120 = vector.extract_strided_slice %76 {offsets = [4, 0], sizes = [76, 128], strides = [1, 1]} : vector<84x128xf32> to vector<76x128xf32>
    %121 = arith.addf %119, %120 : vector<76x128xf32>
    %122 = vector.extract_strided_slice %28 {offsets = [10, 0], sizes = [76, 1], strides = [1, 1]} : vector<96x1xf32> to vector<76x1xf32>
    %123 = vector.broadcast %122 : vector<76x1xf32> to vector<76x128xf32>
    %124 = arith.mulf %121, %123 : vector<76x128xf32>
    %cst_58 = arith.constant 0.000000e+00 : f32
    %125 = vector.broadcast %cst_58 : f32 to vector<76x128xf32>
    %126 = arith.cmpf oge, %124, %125 : vector<76x128xf32>
    %cst_59 = arith.constant 1.000000e-01 : f32
    %127 = vector.broadcast %cst_59 : f32 to vector<76x128xf32>
    %128 = arith.mulf %127, %124 : vector<76x128xf32>
    %129 = arith.select %126, %124, %128 : vector<76x128xi1>, vector<76x128xf32>
    %c768 = arith.constant 768 : index
    %c0_60 = arith.constant 0 : index
    %130 = vector.load %arg5[%c768, %c0_60] : memref<1152x128xf32, #tpu.memory_space<vmem>>, vector<128x128xf32>
    %131 = vector.extract_strided_slice %129 {offsets = [0, 0], sizes = [66, 128], strides = [1, 1]} : vector<76x128xf32> to vector<66x128xf32>
    %cst_61 = arith.constant dense<0.000000e+00> : vector<66x128xf32>
    %132 = tpu.matmul %131, %130, %cst_61 {dimension_numbers = #tpu.dot_dimension_numbers<[1], [0], [0], [1], [0, 0, 1, 1], [], []>} : vector<66x128xf32>, vector<128x128xf32>, vector<66x128xf32> -> vector<66x128xf32>
    %c896 = arith.constant 896 : index
    %c0_62 = arith.constant 0 : index
    %133 = vector.load %arg5[%c896, %c0_62] : memref<1152x128xf32, #tpu.memory_space<vmem>>, vector<128x128xf32>
    %134 = vector.extract_strided_slice %129 {offsets = [5, 0], sizes = [66, 128], strides = [1, 1]} : vector<76x128xf32> to vector<66x128xf32>
    %cst_63 = arith.constant dense<0.000000e+00> : vector<66x128xf32>
    %135 = tpu.matmul %134, %133, %cst_63 {dimension_numbers = #tpu.dot_dimension_numbers<[1], [0], [0], [1], [0, 0, 1, 1], [], []>} : vector<66x128xf32>, vector<128x128xf32>, vector<66x128xf32> -> vector<66x128xf32>
    %136 = arith.addf %132, %135 : vector<66x128xf32>
    %c1024 = arith.constant 1024 : index
    %c0_64 = arith.constant 0 : index
    %137 = vector.load %arg5[%c1024, %c0_64] : memref<1152x128xf32, #tpu.memory_space<vmem>>, vector<128x128xf32>
    %138 = vector.extract_strided_slice %129 {offsets = [10, 0], sizes = [66, 128], strides = [1, 1]} : vector<76x128xf32> to vector<66x128xf32>
    %cst_65 = arith.constant dense<0.000000e+00> : vector<66x128xf32>
    %139 = tpu.matmul %138, %137, %cst_65 {dimension_numbers = #tpu.dot_dimension_numbers<[1], [0], [0], [1], [0, 0, 1, 1], [], []>} : vector<66x128xf32>, vector<128x128xf32>, vector<66x128xf32> -> vector<66x128xf32>
    %140 = arith.addf %136, %139 : vector<66x128xf32>
    %c2 = arith.constant 2 : index
    %c0_66 = arith.constant 0 : index
    %c0_67 = arith.constant 0 : index
    %141 = vector.load %arg6[%c2, %c0_66, %c0_67] : memref<3x1x128xf32, #tpu.memory_space<vmem>>, vector<1x1x128xf32>
    %142 = vector.shape_cast %141 : vector<1x1x128xf32> to vector<1x128xf32>
    %143 = vector.broadcast %142 : vector<1x128xf32> to vector<66x128xf32>
    %144 = arith.addf %140, %143 : vector<66x128xf32>
    %145 = vector.extract_strided_slice %28 {offsets = [15, 0], sizes = [66, 1], strides = [1, 1]} : vector<96x1xf32> to vector<66x1xf32>
    %146 = vector.broadcast %145 : vector<66x1xf32> to vector<66x128xf32>
    %147 = arith.mulf %144, %146 : vector<66x128xf32>
    %cst_68 = arith.constant 0.000000e+00 : f32
    %148 = vector.broadcast %cst_68 : f32 to vector<66x128xf32>
    %149 = arith.cmpf oge, %147, %148 : vector<66x128xf32>
    %cst_69 = arith.constant 1.000000e-01 : f32
    %150 = vector.broadcast %cst_69 : f32 to vector<66x128xf32>
    %151 = arith.mulf %150, %147 : vector<66x128xf32>
    %152 = arith.select %149, %147, %151 : vector<66x128xi1>, vector<66x128xf32>
    %c768_70 = arith.constant 768 : index
    %c0_71 = arith.constant 0 : index
    %153 = vector.load %arg7[%c768_70, %c0_71] : memref<1152x128xf32, #tpu.memory_space<vmem>>, vector<128x128xf32>
    %154 = vector.extract_strided_slice %152 {offsets = [0, 0], sizes = [64, 128], strides = [1, 1]} : vector<66x128xf32> to vector<64x128xf32>
    %cst_72 = arith.constant dense<0.000000e+00> : vector<64x128xf32>
    %155 = tpu.matmul %154, %153, %cst_72 {dimension_numbers = #tpu.dot_dimension_numbers<[1], [0], [0], [1], [0, 0, 1, 1], [], []>} : vector<64x128xf32>, vector<128x128xf32>, vector<64x128xf32> -> vector<64x128xf32>
    %c896_73 = arith.constant 896 : index
    %c0_74 = arith.constant 0 : index
    %156 = vector.load %arg7[%c896_73, %c0_74] : memref<1152x128xf32, #tpu.memory_space<vmem>>, vector<128x128xf32>
    %157 = vector.extract_strided_slice %152 {offsets = [1, 0], sizes = [64, 128], strides = [1, 1]} : vector<66x128xf32> to vector<64x128xf32>
    %cst_75 = arith.constant dense<0.000000e+00> : vector<64x128xf32>
    %158 = tpu.matmul %157, %156, %cst_75 {dimension_numbers = #tpu.dot_dimension_numbers<[1], [0], [0], [1], [0, 0, 1, 1], [], []>} : vector<64x128xf32>, vector<128x128xf32>, vector<64x128xf32> -> vector<64x128xf32>
    %159 = arith.addf %155, %158 : vector<64x128xf32>
    %c1024_76 = arith.constant 1024 : index
    %c0_77 = arith.constant 0 : index
    %160 = vector.load %arg7[%c1024_76, %c0_77] : memref<1152x128xf32, #tpu.memory_space<vmem>>, vector<128x128xf32>
    %161 = vector.extract_strided_slice %152 {offsets = [2, 0], sizes = [64, 128], strides = [1, 1]} : vector<66x128xf32> to vector<64x128xf32>
    %cst_78 = arith.constant dense<0.000000e+00> : vector<64x128xf32>
    %162 = tpu.matmul %161, %160, %cst_78 {dimension_numbers = #tpu.dot_dimension_numbers<[1], [0], [0], [1], [0, 0, 1, 1], [], []>} : vector<64x128xf32>, vector<128x128xf32>, vector<64x128xf32> -> vector<64x128xf32>
    %163 = arith.addf %159, %162 : vector<64x128xf32>
    %c2_79 = arith.constant 2 : index
    %c0_80 = arith.constant 0 : index
    %c0_81 = arith.constant 0 : index
    %164 = vector.load %arg8[%c2_79, %c0_80, %c0_81] : memref<3x1x128xf32, #tpu.memory_space<vmem>>, vector<1x1x128xf32>
    %165 = vector.shape_cast %164 : vector<1x1x128xf32> to vector<1x128xf32>
    %166 = vector.broadcast %165 : vector<1x128xf32> to vector<64x128xf32>
    %167 = arith.addf %163, %166 : vector<64x128xf32>
    %168 = vector.extract_strided_slice %124 {offsets = [6, 0], sizes = [64, 128], strides = [1, 1]} : vector<76x128xf32> to vector<64x128xf32>
    %169 = arith.addf %167, %168 : vector<64x128xf32>
    %c0_82 = arith.constant 0 : index
    %c0_83 = arith.constant 0 : index
    %c0_84 = arith.constant 0 : index
    %170 = vector.load %arg9[%c0_82, %c0_83, %c0_84] : memref<1x64x128xf32, #tpu.memory_space<vmem>>, vector<1x64x128xf32>
    %171 = vector.shape_cast %170 : vector<1x64x128xf32> to vector<64x128xf32>
    %172 = vector.shape_cast %169 : vector<64x128xf32> to vector<1x64x128xf32>
    tpu.vector_store %arg9[%c0_82, %c0_83, %c0_84], %172 {strides = array<i32>} : memref<1x64x128xf32, #tpu.memory_space<vmem>>, vector<1x64x128xf32>,
    return
  }
  func.func @transform_0(%arg0: i32, %arg1: i32) -> (i32, i32, i32) {
    %c0_i32 = arith.constant 0 : i32
    %c0_i32_0 = arith.constant 0 : i32
    return %arg0, %arg1, %c0_i32 : i32, i32, i32
  }
  func.func @transform_1(%arg0: i32, %arg1: i32) -> (i32, i32, i32) {
    %c4_i32 = arith.constant 4 : i32
    %0 = arith.muli %arg1, %c4_i32 : i32
    %c1_i32 = arith.constant 1 : i32
    %1 = arith.subi %0, %c1_i32 : i32
    %c0_i32 = arith.constant 0 : i32
    %2 = arith.maxsi %1, %c0_i32 : i32
    %c0_i32_0 = arith.constant 0 : i32
    %c0_i32_1 = arith.constant 0 : i32
    return %arg0, %2, %c0_i32_0 : i32, i32, i32
  }
  func.func @transform_2(%arg0: i32, %arg1: i32) -> (i32, i32, i32) {
    %c1_i32 = arith.constant 1 : i32
    %0 = arith.addi %arg1, %c1_i32 : i32
    %c4_i32 = arith.constant 4 : i32
    %1 = arith.muli %0, %c4_i32 : i32
    %c15_i32 = arith.constant 15 : i32
    %2 = arith.minsi %1, %c15_i32 : i32
    %c0_i32 = arith.constant 0 : i32
    %c0_i32_0 = arith.constant 0 : i32
    return %arg0, %2, %c0_i32 : i32, i32, i32
  }
  func.func @transform_3(%arg0: i32, %arg1: i32) -> (i32, i32) {
    %c0_i32 = arith.constant 0 : i32
    %c0_i32_0 = arith.constant 0 : i32
    %c0_i32_1 = arith.constant 0 : i32
    return %c0_i32, %c0_i32_0 : i32, i32
  }
  func.func @transform_4(%arg0: i32, %arg1: i32) -> (i32, i32, i32) {
    %c0_i32 = arith.constant 0 : i32
    %c0_i32_0 = arith.constant 0 : i32
    %c0_i32_1 = arith.constant 0 : i32
    %c0_i32_2 = arith.constant 0 : i32
    return %c0_i32, %c0_i32_0, %c0_i32_1 : i32, i32, i32
  }
  func.func @transform_5(%arg0: i32, %arg1: i32) -> (i32, i32) {
    %c0_i32 = arith.constant 0 : i32
    %c0_i32_0 = arith.constant 0 : i32
    %c0_i32_1 = arith.constant 0 : i32
    return %c0_i32, %c0_i32_0 : i32, i32
  }
  func.func @transform_6(%arg0: i32, %arg1: i32) -> (i32, i32, i32) {
    %c0_i32 = arith.constant 0 : i32
    %c0_i32_0 = arith.constant 0 : i32
    %c0_i32_1 = arith.constant 0 : i32
    %c0_i32_2 = arith.constant 0 : i32
    return %c0_i32, %c0_i32_0, %c0_i32_1 : i32, i32, i32
  }
  func.func @transform_7(%arg0: i32, %arg1: i32) -> (i32, i32, i32) {
    %c0_i32 = arith.constant 0 : i32
    %c0_i32_0 = arith.constant 0 : i32
    return %arg0, %arg1, %c0_i32 : i32, i32, i32
  }
}

</mosaic_0001>

<bundles_post_ra>
// kernel: tpu_custom_call.1
= control target key start
LH: loop header
LB: loop body
LE: loop exit
PB: predicated region body
PF: predicated region fallthrough
CT: control target
= control target key end

     0   :  { %s8207_s0 = inlined_call_operand.hbm [shape: f32[2,256,128], index: 0, kind: input, shape index: {}]   ;;  %s8208_s1 = inlined_call_operand.hbm [shape: f32[2,256,128], index: 1, kind: input, shape index: {}]   ;;  %s8209_s2 = inlined_call_operand.hbm [shape: f32[2,256,128], index: 2, kind: input, shape index: {}]   ;;  %s8210_s3 = inlined_call_operand.hbm [shape: f32[1152,128], index: 3, kind: input, shape index: {}]   ;;  %s8211_s4 = inlined_call_operand.vmem [shape: f32[3,1,128], index: 4, kind: input, shape index: {}]   ;;  %s8212_s5 = inlined_call_operand.hbm [shape: f32[1152,128], index: 5, kind: input, shape index: {}]   ;;  %s8213_s6 = inlined_call_operand.vmem [shape: f32[3,1,128], index: 6, kind: input, shape index: {}]   ;;  %s8214_s7 = inlined_call_operand.hbm [shape: f32[2,256,128], index: 7, kind: output, shape index: {}]  }
   0x1   :  { %8239 = sst [smem:[#allocation31_spill]] %s8207_s0 }
   0x2   :  { %8240 = sst [smem:[#allocation32_spill]] %s8208_s1 }
   0x3   :  { %8241 = sst [smem:[#allocation33_spill]] %s8209_s2 }
   0x4   :  { %8242 = sst [smem:[#allocation34_spill]] %s8210_s3 }
   0x5   :  { %8243 = sst [smem:[#allocation35_spill]] %s8211_s4 }
   0x6   :  { %8244 = sst [smem:[#allocation36_spill]] %s8212_s5 }
   0x7   :  { %8245 = sst [smem:[#allocation37_spill]] %s8213_s6 }
   0x8   :  { %8246 = sst [smem:[#allocation38_spill]] %s8214_s7 }
   0x9   :  { %12 = vsyncpa [#allocation3], 0 }
   0xa   :  { %14 = vsyncpa [#allocation3 + $0x1], 0 }
   0xb   :  { %15 = vsyncpa [#allocation6], 0 }
   0xc   :  { %17 = vsyncpa [#allocation6 + $0x1], 0 }
   0xd   :  { %18 = vsyncpa [#allocation9], 0 }
   0xe   :  { %19 = vsyncpa [#allocation4], 0 }
   0xf   :  { %21 = vsyncpa [#allocation4 + $0x1], 0  ;;  %s6311_s24 = smov 0   ;;  %s6313_s25 = smov 0  }
  0x10   :  { %s6315_s26 = smov 0   ;;  %s6317_s27 = smov 0  }
  0x11   :  { %s6319_s28 = smov 0   ;;  %s6321_s29 = smov 0  }
  0x12   :  { %s6323_s30 = smov 0   ;;  %s6325_s8 = smov 0  }
  0x13   :  { %s6327_s9 = smov 0   ;;  %s6329_s10 = smov 0  }
  0x14   :  { %s6331_s11 = smov 0   ;;  %s6333_s12 = smov 0  }
  0x15   :  { %s6335_s13 = smov 0   ;;  %s6337_s14 = smov 0  }
  0x16 LB: > { %8247 = sst [smem:[#allocation17_spill]] %s6205_s24  ;;  %s6382_s15 = sadd.s32 4294967295, %s6257_s14   ;;  %s6257_s14 = sphi %s6337_s14, %s27_s14   ;;  %s6253_s13 = sphi %s6335_s13, %s8334_s13   ;;  %s6249_s12 = sphi %s6333_s12, %s8325_s12   ;;  %s6245_s11 = sphi %s6331_s11, %s8324_s11   ;;  %s6241_s10 = sphi %s6329_s10, %s8323_s10   ;;  %s6237_s9 = sphi %s6327_s9, %s8333_s9   ;;  %s6233_s8 = sphi %s6325_s8, %s8332_s8   ;;  %s6229_s30 = sphi %s6323_s30, %s8331_s30   ;;  %s6225_s29 = sphi %s6321_s29, %s8330_s29   ;;  %s6221_s28 = sphi %s6319_s28, %s8329_s28   ;;  %s6217_s27 = sphi %s6317_s27, %s8321_s27   ;;  %s6213_s26 = sphi %s6315_s26, %s8328_s26   ;;  %s6209_s25 = sphi %s6313_s25, %s8320_s25   ;;  %s6205_s24 = sphi %s6311_s24, %s8319_s24  }
  0x17   : > { %8248 = sst [smem:[#allocation18_spill]] %s6209_s25  ;;  %p4286_p0 = scmp.ge.s32.totalorder %s6257_s14, 1 }
  0x18   : > { %8249 = sst [smem:[#allocation19_spill]] %s6213_s26  ;;  %p8233_p1 = scmp.eq.s32.totalorder %s6382_s15, 0 }
  0x19   : > { %8250 = sst [smem:[#allocation20_spill]] %s6221_s28  ;;  %p256_p3 = scmp.lt.s32.totalorder %s6257_s14, 9 }
  0x1a   : > { %8251 = sst [smem:[#allocation21_spill]] %s6241_s10  ;;  %s6259_s17 = smov [#allocation8]  }
  0x1b   : > { %8252 = sst [smem:[#allocation22_spill]] %s6245_s11  ;;  %p6388_p4 = pnand %p4286_p0, %p256_p3 }
  0x1c   : > { %8253 = sst [smem:[#allocation23_spill]] %s6249_s12  ;;  %s268_s18 = sshll.u32 %s6259_s17, 4  ;;  %s269_s18 = int_to_ptr.vmem [resolvable:$true] %s268_s18 }
  0x1d   : > { %8254 = sst [smem:[#allocation24_spill]] %s6253_s13  ;;  %p5810_p5 = pneg %p6388_p4 }
  0x1e   : > { %s8255_s16 = scalar_select %p6388_p4, 1, 0 }
  0x1f   : > { %p6396_p6 = pnand %p5810_p5, %p8233_p1  ;;  %s5976_s20 = scalar_lea.vmem %s269_s18, 18432 }
  0x20   : > { %8256 = sst [smem:[#allocation25_spill]] %s8255_s16  ;;  %p5977_p8 = scmp.ne.s32.totalorder %s269_s18, %s5976_s20 }
  0x21   : > { %p5967_p7 = pneg %p6396_p6  ;;  %p5984_p11 = scmp.lt.s32.totalorder %s269_s18, %s269_s18 }
  0x22   : > { %p5985_p12 = scmp.lt.s32.totalorder %s5976_s20, %s5976_s20 }
  0x23   : > { %p5979_p9 = pnand %p5977_p8, %p5967_p7 }
  0x24   : > { %p5986_p13 = por %p5985_p12, %p5984_p11 }
  0x25   : > { %p5980_p10 = pneg %p5979_p9 }
  0x27   : > { %p5987_p0 = pnand %p5986_p13, %p5980_p10 }
  0x29   : > { %5990 = shalt.err (!%p5987_p0)
}
  0x2a   : > { %s8219_s21 = smov 128   ;;  %s8221_s22 = smov 8  }
  0x2b   : > { %s8258_s3 = sld [smem:[#allocation34_spill]]  ;;  %s36_s20 = sadd.s32 1, %s6249_s12 }
  0x2c   : > { %s39_s7 = sadd.s32 1, %s6253_s13  ;;  %p37_p3 = scmp.ge.s32.totalorder %s36_s20, 4 }
  0x2d   : > { %p8235_p5 = scmp.eq.s32.totalorder %s6257_s14, 0  ;;  %s4280_s11 = sshll.u32 %s6249_s12, 2 }
  0x2e   : > { %s84_s6 = sadd.s32 1, %s6225_s29  ;;  %s8336_s20 = smov (%p37_p3, %s36_s20), 0 }
  0x2f   : > { %8259 = sst [smem:[#allocation26_spill]] %s8336_s20  ;;  %s8338_s7 = smov (!%p37_p3, %s39_s7), %s6253_s13 }
  0x30   : > { %s44_s4 = ssub.s32 %s6249_s12, %s8336_s20  ;;  %s4281_s10 = sadd.s32 4294967295, %s4280_s11 }
  0x31   : > { %5813 = dma.hbm_to_vmem [thread:$0]  (!%p6396_p6), %s8258_s3, 18432, %s269_s18, [#allocation9], %s8219_s21, %s8219_s21, %s8221_s22  }
  0x32   : > { %p41_p8 = scmp.ge.s32.totalorder %s8338_s7, 2  ;;  %p73_p9 = scmp.gt.s32.totalorder %s4281_s10, 0 }
  0x33   : > { %s4282_s18 = sshll.u32 %s8336_s20, 2  ;;  %p91_p10 = scmp.ne.s32.totalorder %s6225_s29, %s6221_s28 }
  0x34   : > { %s8340_s7 = smov (%p41_p8, %s8338_s7), 0  ;;  %s8342_s10 = smov (!%p73_p9, %s4281_s10), 0 }
  0x35   : > { %8260 = sst [smem:[#allocation27_spill]] %s8340_s7  ;;  %s6430_s23 = ssub.s32 %s6253_s13, %s8340_s7 }
  0x36   : > { %8261 = sst [smem:[#allocation28_spill]] %s6430_s23  ;;  %s4283_s17 = sadd.s32 4294967295, %s4282_s18 }
  0x37   : > { %s6433_s21 = sor.u32 %s44_s4, %s6430_s23  ;;  %p77_p11 = scmp.gt.s32.totalorder %s4283_s17, 0 }
  0x38   : > { %p46_p12 = scmp.eq.s32.totalorder %s6433_s21, 0  ;;  %p6438_p13 = por %p91_p10, %p8235_p5 }
  0x39   : > { %s8344_s17 = smov (!%p77_p11, %s4283_s17), 0  ;;  %p97_p0 = scmp.ne.s32.totalorder %s6221_s28, %s6217_s27 }
  0x3a   : > { %s6444_s3 = sadd.s32 4, %s4280_s11  ;;  %s80_s7 = ssub.s32 %s8342_s10, %s8344_s17 }
  0x3b   : > { %s81_s4 = sor.u32 %s80_s7, %s6430_s23  ;;  %p6450_p8 = por %p97_p0, %p8233_p1 }
  0x3c   : > { %p82_p9 = scmp.eq.s32.totalorder %s81_s4, 0  ;;  %s6454_s16 = sadd.s32 4, %s4282_s18 }
  0x3d   : > { %s8263_s20 = scalar_select %p6450_p8, 1, 0 }
  0x3e   : > { %p8234_p11 = scmp.lt.s32.totalorder %s6257_s14, 8  ;;  %s6462_s11 = sshll.u32 %s6253_s13, 5 }
  0x3f   : > { %8264 = sst [smem:[#allocation29_spill]] %s8263_s20  ;;  %s324_s17 = sand.u32 1, %s6257_s14  }
  0x40   : > { %s6459_s27 = scalar_select %p82_p9, %s6225_s29, %s84_s6  }
  0x41   : > { %s326_s7 = sand.u32 1, %s6225_s29   ;;  %s4297_s2 = sshll.u32 %s8342_s10, 1 }
  0x42   : > { %8265 = sst [smem:[#allocation30_spill]] %s6459_s27  ;;  %s4294_s28 = sshll.u32 %s326_s7, 4 }
  0x43   : > { %s338_s23 = sadd.s32 %s4297_s2, %s6462_s11  ;;  %s328_s20 = scalar_lea.vmem [#allocation5], %s4294_s28 }
  0x44   : > { %s4299_s24 = sshll.u32 %s338_s23, 7  ;;  %s341_s4 = sshll.u32 %s328_s20, 4  ;;  %s342_s4 = int_to_ptr.vmem [resolvable:$true] %s341_s4 }
  0x45   : > { %s8266_s1 = sld [smem:[#allocation32_spill]]  ;;  %p6474_p0 = pnand %p8234_p11, %p6438_p13 }
  0x46   : > { %s6262_s13 = smov [#allocation10]   ;;  %s6480_s2 = scalar_lea.sflag [#allocation6], %s324_s17 }
  0x47   : > { %s284_s27 = sshll.u32 %s6262_s13, 4  ;;  %p5993_p9 = pneg %p6474_p0  ;;  %s6478_s27 = int_to_ptr.vmem [resolvable:$true] %s284_s27 }
  0x48   : > { %s6004_s28 = scalar_lea.vmem %s342_s4, 256 }
  0x49   : > { %p6005_p10 = scmp.ne.s32.totalorder %s342_s4, %s6004_s28 }
  0x4b   : > { %s340_s18 = scalar_lea.hbm %s8266_s1, %s4299_s24  ;;  %p6007_p3 = pnand %p6005_p10, %p5993_p9 }
  0x4c   : > { %s6263_s24 = smov [#allocation5]  }
  0x4d   : > { %p6008_p1 = pneg %p6007_p3  ;;  %s6009_s25 = sshll.u32 %s6263_s24, 4  ;;  %s6010_s25 = int_to_ptr.vmem [resolvable:$false] %s6009_s25 }
  0x4e   : > { %s6011_s26 = scalar_lea.vmem %s6010_s25, 512  ;;  %p6012_p13 = scmp.lt.s32.totalorder %s342_s4, %s6010_s25 }
  0x4f   : > { %p6013_p11 = scmp.lt.s32.totalorder %s6011_s26, %s6004_s28 }
  0x51   : > { %p6014_p2 = por %p6013_p11, %p6012_p13 }
  0x53   : > { %p6015_p5 = pnand %p6014_p2, %p6008_p1 }
  0x55   : > { %6018 = shalt.err (!%p6015_p5)
}
  0x56   : > { %s8268_s10 = smov 8   ;;  %s8269_s13 = smov 128  }
  0x57   : > { %5823 = dma.hbm_to_vmem [thread:$0]  (!%p6474_p0), %s340_s18, 256, %s342_s4, %s6480_s2, %s8269_s13, %s8269_s13, %s8268_s10  }
  0x58   : > { %s6030_s22 = scalar_lea.vmem %s6478_s27, 18432  ;;  %p6038_p1 = scmp.lt.s32.totalorder %s6478_s27, %s6478_s27 }
  0x59   : > { %p6031_p3 = scmp.ne.s32.totalorder %s6478_s27, %s6030_s22  ;;  %p6039_p2 = scmp.lt.s32.totalorder %s6030_s22, %s6030_s22 }
  0x5b   : > { %p6033_p10 = pnand %p6031_p3, %p5967_p7  ;;  %p6040_p5 = por %p6039_p2, %p6038_p1 }
  0x5d   : > { %p6034_p9 = pneg %p6033_p10 }
  0x5f   : > { %p6041_p11 = pnand %p6040_p5, %p6034_p9 }
  0x61   : > { %6044 = shalt.err (!%p6041_p11)
}
  0x62   : > { %s8270_s5 = sld [smem:[#allocation36_spill]]  ;;  %s4279_s19 = sadd.s32 4294967294, %s6257_s14  }
  0x63   : > { %s48_s17 = sadd.s32 1, %s6237_s9  ;;  %p55_p7 = scmp.ne.s32.totalorder %s6237_s9, %s6233_s8 }
  0x64   : > { %s6513_s7 = scalar_select %p46_p12, %s6237_s9, %s48_s17  }
  0x65   : > { %p8271_p0 = scmp.eq.s32.totalorder %s6257_s14, 0  ;;  %p61_p3 = scmp.ne.s32.totalorder %s6233_s8, %s6229_s30 }
  0x66   : > { %p8273_p10 = scmp.eq.s32.totalorder %s6382_s15, 7  ;;  %p8275_p1 = scmp.eq.s32.totalorder %s6382_s15, 0 }
  0x67   : > { %p6517_p13 = por %p8271_p0, %p55_p7  ;;  %s301_s21 = sand.u32 1, %s6237_s9  }
  0x68   : > { %5816 = dma.hbm_to_vmem [thread:$0]  (!%p6396_p6), %s8270_s5, 18432, %s6478_s27, [#allocation9], %s8269_s13, %s8269_s13, %s8268_s10  }
  0x69   : > { %p6525_p9 = por %p8273_p10, %p55_p7  ;;  %p249_p6 = scmp.eq.s32.totalorder %s4279_s19, 7 }
  0x6a   : > { %p6531_p2 = por %p8275_p1, %p61_p3  ;;  %s4290_s28 = sshll.u32 %s301_s21, 6 }
  0x6b   : > { %s8274_s18 = scalar_select %p6525_p9, 1, 0 }
  0x6c   : > { %p6536_p12 = por %p249_p6, %p61_p3  ;;  %s4291_s24 = sshll.u32 %s6249_s12, 3 }
  0x6d   : > { %s311_s25 = sadd.s32 %s6462_s11, %s4291_s24  ;;  %s305_s22 = scalar_lea.vmem [#allocation2], %s4290_s28 }
  0x6e   : > { %s8277_s6 = scalar_select %p6536_p12, 1, 0 }
  0x6f   : > { %s4293_s26 = sshll.u32 %s311_s25, 7  ;;  %s314_s20 = sshll.u32 %s305_s22, 4  ;;  %s315_s20 = int_to_ptr.vmem [resolvable:$true] %s314_s20 }
  0x70   : > { %s8278_s0 = sld [smem:[#allocation31_spill]]  ;;  %p8279_p5 = scmp.lt.s32.totalorder %s6257_s14, 8 }
  0x71   : > { %s302_s5 = scalar_lea.sflag [#allocation3], %s301_s21  ;;  %s6058_s12 = scalar_lea.vmem %s315_s20, 1024 }
  0x72   : > { %p6549_p11 = pnand %p8279_p5, %p6517_p13  ;;  %p6059_p0 = scmp.ne.s32.totalorder %s315_s20, %s6058_s12 }
  0x73   : > { %s6264_s28 = smov [#allocation2]  }
  0x74   : > { %p6047_p7 = pneg %p6549_p11  ;;  %s6063_s24 = sshll.u32 %s6264_s28, 4  ;;  %s6064_s24 = int_to_ptr.vmem [resolvable:$false] %s6063_s24 }
  0x75   : > { %s6065_s25 = scalar_lea.vmem %s6064_s24, 2048  ;;  %p6066_p6 = scmp.lt.s32.totalorder %s315_s20, %s6064_s24 }
  0x76   : > { %s313_s19 = scalar_lea.hbm %s8278_s0, %s4293_s26  ;;  %p6061_p3 = pnand %p6059_p0, %p6047_p7 }
  0x77   : > { %p6067_p1 = scmp.lt.s32.totalorder %s6065_s25, %s6058_s12 }
  0x78   : > { %p6062_p10 = pneg %p6061_p3 }
  0x79   : > { %p6068_p12 = por %p6067_p1, %p6066_p6 }
  0x7b   : > { %p6069_p9 = pnand %p6068_p12, %p6062_p10 }
  0x7d   : > { %6072 = shalt.err (!%p6069_p9)
}
  0x7e   : > { %s8281_s4 = sld [smem:[#allocation19_spill]]  ;;  %p8285_p13 = scmp.lt.s32.totalorder %s6444_s3, 15 }
  0x7f   : > { %s8282_s21 = sld [smem:[#allocation18_spill]]  ;;  %p8286_p9 = scmp.lt.s32.totalorder %s6454_s16, 15 }
  0x80   : > { %s8283_s26 = sld [smem:[#allocation17_spill]]  ;;  %s8346_s3 = smov (!%p8285_p13, %s6444_s3), 15 }
  0x81   : > { %s8284_s22 = sld [smem:[#allocation28_spill]]  ;;  %s8348_s16 = smov (!%p8286_p9, %s6454_s16), 15 }
  0x82   : > { %5820 = dma.hbm_to_vmem [thread:$0]  (!%p6549_p11), %s313_s19, 1024, %s315_s20, %s302_s5, %s8269_s13, %s8269_s13, %s8268_s10  }
  0x83   : > { %s116_s12 = ssub.s32 %s8346_s3, %s8348_s16  ;;  %p8287_p7 = scmp.eq.s32.totalorder %s6257_s14, 0 }
  0x84   : > { %s120_s1 = sadd.s32 1, %s8281_s4  ;;  %p8289_p10 = scmp.eq.s32.totalorder %s6382_s15, 0 }
  0x85   : > { %p127_p12 = scmp.ne.s32.totalorder %s8281_s4, %s8282_s21  ;;  %s353_s20 = sand.u32 1, %s8281_s4  }
  0x86   : > { %p133_p5 = scmp.ne.s32.totalorder %s8282_s21, %s8283_s26  ;;  %s4302_s19 = sshll.u32 %s8346_s3, 1 }
  0x87   : > { %s117_s23 = sor.u32 %s116_s12, %s8284_s22  ;;  %p6574_p0 = por %p127_p12, %p8287_p7 }
  0x88   : > { %p118_p3 = scmp.eq.s32.totalorder %s117_s23, 0  ;;  %p6580_p6 = por %p133_p5, %p8289_p10 }
  0x89   : > { %s4300_s16 = sshll.u32 %s353_s20, 4  ;;  %s365_s28 = sadd.s32 %s4302_s19, %s6462_s11 }
  0x8a   : > { %s8290_s5 = scalar_select %p6580_p6, 1, 0 }
  0x8b   : > { %s8350_s4 = smov (!%p118_p3, %s8281_s4), %s120_s1  ;;  %s4304_s24 = sshll.u32 %s365_s28, 7 }
  0x8c   : > { %s8291_s26 = sld [smem:[#allocation33_spill]]  ;;  %s355_s12 = scalar_lea.vmem [#allocation7], %s4300_s16 }
  0x8d   : > { %s368_s0 = sshll.u32 %s355_s12, 4  ;;  %p8292_p11 = scmp.lt.s32.totalorder %s6257_s14, 8  ;;  %s369_s0 = int_to_ptr.vmem [resolvable:$true] %s368_s0 }
  0x8e   : > { %s6086_s3 = scalar_lea.vmem %s369_s0, 256  ;;  %s6265_s11 = smov [#allocation7]  }
  0x8f   : > { %p6596_p1 = pnand %p8292_p11, %p6574_p0  ;;  %p6087_p9 = scmp.ne.s32.totalorder %s369_s0, %s6086_s3 }
  0x90   : > { %s6091_s1 = sshll.u32 %s6265_s11, 4  ;;  %s6092_s1 = int_to_ptr.vmem [resolvable:$false] %s6091_s1 }
  0x91   : > { %p6075_p13 = pneg %p6596_p1  ;;  %s6093_s20 = scalar_lea.vmem %s6092_s1, 512 }
  0x92   : > { %s367_s22 = scalar_lea.hbm %s8291_s26, %s4304_s24  ;;  %p6094_p7 = scmp.lt.s32.totalorder %s369_s0, %s6092_s1 }
  0x93   : > { %p6089_p12 = pnand %p6087_p9, %p6075_p13  ;;  %p6095_p3 = scmp.lt.s32.totalorder %s6093_s20, %s6086_s3 }
  0x95   : > { %p6090_p5 = pneg %p6089_p12  ;;  %p6096_p10 = por %p6095_p3, %p6094_p7 }
  0x97   : > { %p6097_p6 = pnand %p6096_p10, %p6090_p5 }
  0x99   : > { %6100 = shalt.err (!%p6097_p6)
}
  0x9a   : > { %5826 = dma.hbm_to_vmem [thread:$0]  (!%p6596_p1), %s367_s22, 256, %s369_s0, %s6480_s2, %s8269_s13, %s8269_s13, %s8268_s10  }
  0x9b   : > { %380 = sbr.rel (%p6388_p4) target bundleno = 1731 (0x6c3), region = 48  ;;  %s6611_s19 = sand.u32 (!%p6388_p4), 1, %s6233_s8  }
  0x9c   : > { %s4306_s16 = sshll.u32 (!%p6388_p4), %s6611_s19, 6  ;;  %s383_s28 = scalar_lea.sflag (!%p6388_p4), [#allocation3], %s6611_s19 }
  0x9d   : > { %s6617_s24 = scalar_lea.vmem (!%p6388_p4), [#allocation2], %s4306_s16 }
  0xa0   : > { %6184 = dma.done.wait (%p6531_p2), %s383_s28, 1024  }
  0xa1   : > { %6186 = vsyncadd (%p6531_p2), %s383_s28, 4294966272  ;;  %s8295_s0 = sld [smem:[#allocation20_spill]]  ;;  %s391_s10 = sand.u32 1, %s6382_s15  }
  0xa2   : > { %s392_s21 = scalar_lea.sflag [#allocation6], %s391_s10 }
  0xa7   : > { %s393_s13 = sand.u32 1, %s8295_s0  }
  0xa8   : > { %s6625_s25 = sshll.u32 %s393_s13, 4 }
  0xa9   : > { %s395_s26 = scalar_lea.vmem [#allocation5], %s6625_s25 }
  0xaa   : > { %6188 = dma.done.wait (%p6450_p8), %s392_s21, 256  }
  0xab   : > { %6190 = vsyncadd (%p6450_p8), %s392_s21, 4294967040  ;;  %s8297_s22 = sld [smem:[#allocation18_spill]]  ;;  %p8298_p4 = scmp.ne.s32.totalorder %s8290_s5, 0 }
  0xb1   : > { %s402_s12 = sand.u32 1, %s8297_s22  }
  0xb2   : > { %s6633_s27 = sshll.u32 %s402_s12, 4 }
  0xb3   : > { %s404_s23 = scalar_lea.vmem [#allocation7], %s6633_s27 }
  0xb4   : > { %6192 = dma.done.wait (%p8298_p4), %s392_s21, 256  }
  0xb5   : > { %6194 = vsyncadd (%p8298_p4), %s392_s21, 4294967040  ;;  %p8299_p2 = scmp.eq.s32.totalorder %s6382_s15, 0 }
  0xb7   : > { %6196 = dma.done.wait (%p8299_p2), [#allocation9], 36864   ;;  %p8300_p0 = pmov %p8299_p2 }
  0xb8   : > { %s8301_s3 = sld [smem:[#allocation21_spill]]  ;;  %v6266_v0 = vmov 0.0   ;;  %vm6267_vm0 = vmmov 0   ;;  %v644_v1 = vld [vmem:[#allocation8 + $0xf8] sm:$0xff]  ;;  %v643_v3 = vld [vmem:[#allocation8 + $0xf0] sm:$0xff]  ;;  %v642_v5 = vld [vmem:[#allocation8 + $0xe8] sm:$0xff] }
  0xb9   : > { %6198 = vsyncadd (%p8300_p0), [#allocation9], 4294930432  ;;  %4813 = vmatprep.subr.mxu0 %v6266_v0  ;;  %4878 = vmatprep.subr.mxu1 %v6266_v0  ;;  %v628_v2 = vld [vmem:[#allocation8 + $0x78] sm:$0xff]  ;;  %v627_v4 = vld [vmem:[#allocation8 + $0x70] sm:$0xff]  ;;  %vm657_vm4 = vcmask 1042432   ;;  %vm812_vm5 = vcmask 1043456  }
  0xba   : > { %4845 = vmatprep.mubr.msk.f32.mxu0 %vm6267_vm0, %v6266_v0  ;;  %4910 = vmatprep.mubr.msk.f32.mxu1 %vm6267_vm0, %v6266_v0  ;;  %v626_v6 = vld [vmem:[#allocation8 + $0x68] sm:$0xff]  ;;  %v641_v7 = vld [vmem:[#allocation8 + $0xe0] sm:$0xff]  ;;  %v640_v9 = vld [vmem:[#allocation8 + $0xd8] sm:$0xff]  ;;  %vm983_vm15 = vcmask 1041408   ;;  %s8302_s2 = sld [smem:[#allocation35_spill]]  ;;  %p8316_p1 = scmp.ne.s32.totalorder %s8274_s18, 0 }
  0xbb   : > { %4814 = vmatpush3.msra.mxu0 %v644_v1  ;;  %4879 = vmatpush3.msra.mxu1 %v628_v2  ;;  %v625_v8 = vld [vmem:[#allocation8 + $0x60] sm:$0xff]  ;;  %v624_v10 = vld [vmem:[#allocation8 + $0x58] sm:$0xff]  ;;  %v639_v11 = vld [vmem:[#allocation8 + $0xd0] sm:$0xff]  ;;  %s8311_s25 = sld [smem:[#allocation37_spill]]  ;;  %s6268_s12 = smov [#allocation11]  }
  0xbc   : > { %4815 = vmatprep.subr.mxu0 %v6266_v0  ;;  %4880 = vmatprep.subr.mxu1 %v6266_v0  ;;  %v623_v12 = vld [vmem:[#allocation8 + $0x50] sm:$0xff]  ;;  %v638_v13 = vld [vmem:[#allocation8 + $0xc8] sm:$0xff]  ;;  %v637_v18 = vld [vmem:[#allocation8 + $0xc0] sm:$0xff]  ;;  %s8314_s13 = sld [smem:[#allocation38_spill]]  ;;  %s6105_s27 = sshll.u32 %s6268_s12, 4  ;;  %s6106_s27 = int_to_ptr.vmem [resolvable:$false] %s6105_s27 }
  0xbd   : > { %4816 = vmatpush3.msra.mxu0 %v643_v3  ;;  %4881 = vmatpush3.msra.mxu1 %v627_v4  ;;  %v622_v14 = vld [vmem:[#allocation8 + $0x48] sm:$0xff]  ;;  %v474_v15 = vld [vmem:[%s395_s26] sm:$0xff]  ;;  %v636_v20 = vld [vmem:[#allocation8 + $0xb8] sm:$0xff] }
  0xbe   : > { %p478_p8 = scmp.gt.s32.totalorder %s8301_s3, 0  ;;  %4817 = vmatprep.subr.mxu0 %v6266_v0  ;;  %4882 = vmatprep.subr.mxu1 %v6266_v0  ;;  %v475_v16 = vld [vmem:[%s395_s26 + $0x8] sm:$0xff]  ;;  %v621_v19 = vld [vmem:[#allocation8 + $0x40] sm:$0xff]  ;;  %v635_v24 = vld [vmem:[#allocation8 + $0xb0] sm:$0xff]  ;;  %p481_p6 = scmp.lt.s32.totalorder %s8301_s3, 3 }
  0xbf   : > { %4818 = vmatpush3.msra.mxu0 %v642_v5  ;;  %4883 = vmatpush3.msra.mxu1 %v626_v6  ;;  %v620_v21 = vld [vmem:[#allocation8 + $0x38] sm:$0xff]  ;;  %v619_v25 = vld [vmem:[#allocation8 + $0x30] sm:$0xff]  ;;  %v634_v26 = vld [vmem:[#allocation8 + $0xa8] sm:$0xff]  ;;  %s4312_s20 = sshll.u32 %s8301_s3, 6 }
  0xc0   : > { %s479_s15 = scalar_select %p478_p8, 1, 0  ;;  %4819 = vmatprep.subr.mxu0 %v6266_v0  ;;  %4884 = vmatprep.subr.mxu1 %v6266_v0  ;;  %v618_v27 = vld [vmem:[#allocation8 + $0x28] sm:$0xff]  ;;  %v466_v30 = vld [vmem:[%s6617_s24] sm:$0xff]  ;;  %v632_v33 = vld [vmem:[#allocation8 + $0x98] sm:$0xff] }
  0xc1   : > { %4820 = vmatpush3.msra.mxu0 %v641_v7  ;;  %4885 = vmatpush3.msra.mxu1 %v625_v8  ;;  %v633_v31 = vld [vmem:[#allocation8 + $0xa0] sm:$0xff]  ;;  %v616_v34 = vld [vmem:[#allocation8 + $0x18] sm:$0xff]  ;;  %v591_v37 = vmul.f32 0.1, %v466_v30  ;;  %vm579_vm3 = vcmp.ge.f32.partialorder %v466_v30, 0.0  ;;  %v467_v38 = vld [vmem:[%s6617_s24 + $0x8] sm:$0xff]  ;;  %s8312_s21 = smov %s8311_s25 }
  0xc2   : > { %s480_s5 = scvt.s32.f32 %s479_s15  ;;  %4821 = vmatprep.subr.mxu0 %v6266_v0  ;;  %4886 = vmatprep.subr.mxu1 %v6266_v0  ;;  %v617_v32 = vld [vmem:[#allocation8 + $0x20] sm:$0xff]  ;;  %v631_v39 = vld [vmem:[#allocation8 + $0x90] sm:$0xff]  ;;  %v630_v43 = vld [vmem:[#allocation8 + $0x88] sm:$0xff]  ;;  %v592_v48 = vmul.f32 0.1, %v467_v38  ;;  %vm580_vm6 = vcmp.ge.f32.partialorder %v467_v38, 0.0  ;;  %s8315_s22 = smov %s8314_s13 }
  0xc3   : > { %4822 = vmatpush3.msra.mxu0 %v640_v9  ;;  %4887 = vmatpush3.msra.mxu1 %v624_v10  ;;  %v615_v40 = vld [vmem:[#allocation8 + $0x10] sm:$0xff]  ;;  %v614_v44 = vld [vmem:[#allocation8 + $0x8] sm:$0xff]  ;;  %v6702_v47 = vsel %vm579_vm3, %v466_v30, %v591_v37  ;;  %v629_v50 = vld [vmem:[#allocation8 + $0x80] sm:$0xff]  ;;  %s6745_s11 = scalar_select %p481_p6, 1, 0 }
  0xc4   : > { %4823 = vmatprep.subr.mxu0 %v6266_v0  ;;  %4888 = vmatprep.subr.mxu1 %v6266_v0  ;;  %v484_v17 = vstv %s480_s5  ;;  %v468_v49 = vld [vmem:[%s6617_s24 + $0x10] sm:$0xff]  ;;  %v613_v51 = vld [vmem:[#allocation8] sm:$0xff]  ;;  %v661_v53 = vrot.slane %v6702_v47, 5  ;;  %v982_v55 = vld [vmem:[#allocation8 + $0x178] sm:$0xff]  ;;  %v816_v56 = vrot.slane %v6702_v47, 4  ;;  %v6713_v57 = vsel %vm580_vm6, %v467_v38, %v592_v48  ;;  %s4313_s17 = sadd.s32 4294967280, %s4312_s20 }
  0xc5   : > { %4824 = vmatpush3.msra.mxu0 %v639_v11  ;;  %4889 = vmatpush3.msra.mxu1 %v623_v12  ;;  %v6669_v22 = vmul.f32 %v484_v17, %v474_v15  ;;  %v6671_v23 = vmul.f32 %v484_v17, %v475_v16  ;;  %v593_v58 = vmul.f32 0.1, %v468_v49  ;;  %vm581_vm7 = vcmp.ge.f32.partialorder %v468_v49, 0.0  ;;  %v469_v59 = vld [vmem:[%s6617_s24 + $0x18] sm:$0xff]  ;;  %v981_v60 = vld [vmem:[#allocation8 + $0x170] sm:$0xff]  ;;  %v980_v4 = vld [vmem:[#allocation8 + $0x168] sm:$0xff]  ;;  %s483_s1 = scvt.s32.f32 %s6745_s11 }
  0xc6   : > { %4825 = vmatprep.subr.mxu0 %v6266_v0  ;;  %4890 = vmatprep.subr.mxu1 %v6266_v0  ;;  %v663_v62 = vrot.slane %v6713_v57, 5  ;;  %v818_v1 = vrot.slane %v6713_v57, 4  ;;  %v594_v3 = vmul.f32 0.1, %v469_v59  ;;  %vm582_vm8 = vcmp.ge.f32.partialorder %v469_v59, 0.0  ;;  %v470_v5 = vld [vmem:[%s6617_s24 + $0x20] sm:$0xff] }
  0xc7   : > { %4826 = vmatpush3.msra.mxu0 %v638_v13  ;;  %4891 = vmatpush3.msra.mxu1 %v622_v14  ;;  %v589_v28 = vmul.f32 0.1, %v6669_v22  ;;  %v590_v29 = vmul.f32 0.1, %v6671_v23  ;;  %vm577_vm1 = vcmp.ge.f32.partialorder %v6669_v22, 0.0  ;;  %vm578_vm2 = vcmp.ge.f32.partialorder %v6671_v23, 0.0 }
  0xc8   : > { %4827 = vmatprep.subr.mxu0 %v6266_v0  ;;  %4892 = vmatprep.subr.mxu1 %v6266_v0  ;;  %v6724_v2 = vsel %vm581_vm7, %v468_v49, %v593_v58  ;;  %v664_v6 = vsel %vm657_vm4, %v661_v53, %v663_v62  ;;  %v819_v8 = vsel %vm812_vm5, %v816_v56, %v818_v1  ;;  %v979_v9 = vld [vmem:[#allocation8 + $0x160] sm:$0xff]  ;;  %v595_v12 = vmul.f32 0.1, %v470_v5  ;;  %v471_v13 = vld [vmem:[%s6617_s24 + $0x28] sm:$0xff]  ;;  %v978_v14 = vld [vmem:[#allocation8 + $0x158] sm:$0xff]  ;;  %s8105_s11 = scalar_lea.vmem [#allocation11], %s4306_s16 }
  0xc9   : > { %4828 = vmatpush3.msra.mxu0 %v637_v18  ;;  %4893 = vmatpush3.msra.mxu1 %v621_v19  ;;  %v6687_v35 = vsel %vm577_vm1, %v6669_v22, %v589_v28  ;;  %v6690_v36 = vsel %vm578_vm2, %v6671_v23, %v590_v29  ;;  %v665_v7 = vrot.slane %v6724_v2, 5  ;;  %v820_v10 = vrot.slane %v6724_v2, 4  ;;  %v976_v29 = vld [vmem:[#allocation8 + $0x148] sm:$0xff]  ;;  %s4337_s16 = sshll.u32 %s8301_s3, 3  ;;  %s4120_s3 = sshll.u32 %s8105_s11, 4  ;;  %s8122_s3 = int_to_ptr.vmem [resolvable:$true] %s4120_s3 }
  0xca   : > { %4829 = vmatprep.subr.mxu0 %v6266_v0  ;;  %4894 = vmatprep.subr.mxu1 %v6266_v0  ;;  %v658_v41 = vrot.slane %v6687_v35, 5  ;;  %v659_v42 = vrot.slane %v6690_v36, 5  ;;  %v813_v45 = vrot.slane %v6687_v35, 4  ;;  %v814_v46 = vrot.slane %v6690_v36, 4  ;;  %s6101_s26 = scalar_lea.vmem %s8122_s3, 1024  ;;  %p6108_p12 = scmp.lt.s32.totalorder %s8122_s3, %s6106_s27 }
  0xcb   : > { %4830 = vmatpush3.msra.mxu0 %v636_v20  ;;  %4895 = vmatpush3.msra.mxu1 %v620_v21  ;;  %v6739_v11 = vsel %vm582_vm8, %v469_v59, %v594_v3  ;;  %vm583_vm9 = vcmp.ge.f32.partialorder %v470_v5, 0.0  ;;  %v666_v15 = vsel %vm657_vm4, %v663_v62, %v665_v7  ;;  %v821_v17 = vsel %vm812_vm5, %v818_v1, %v820_v10  ;;  %v472_v21 = vld [vmem:[%s6617_s24 + $0x30] sm:$0xff]  ;;  %v971_v1 = vld [vmem:[#allocation8 + $0x120] sm:$0xff]  ;;  %p6102_p11 = scmp.ne.s32.totalorder %s8122_s3, %s6101_s26 }
  0xcc   : > { %4831 = vmatprep.subr.mxu0 %v6266_v0  ;;  %4896 = vmatprep.subr.mxu1 %v6266_v0  ;;  %v660_v52 = vsel %vm657_vm4, %v658_v41, %v659_v42  ;;  %v815_v54 = vsel %vm812_vm5, %v813_v45, %v814_v46  ;;  %v662_v61 = vsel %vm657_vm4, %v659_v42, %v661_v53  ;;  %v667_v16 = vrot.slane %v6739_v11, 5  ;;  %v975_v41 = vld [vmem:[#allocation8 + $0x140] sm:$0xff]  ;;  %v477_v45 = vld [vmem:[%s404_s23 + $0x8] sm:$0xff] }
  0xcd   : > { %4832 = vmatpush3.msra.mxu0 %v635_v24  ;;  %4897 = vmatpush3.msra.mxu1 %v619_v25  ;;  %v817_v63 = vsel %vm812_vm5, %v814_v46, %v816_v56  ;;  %v822_v18 = vrot.slane %v6739_v11, 4  ;;  %v6755_v19 = vsel %vm583_vm9, %v470_v5, %v595_v12  ;;  %v596_v20 = vmul.f32 0.1, %v471_v13  ;;  %v977_v24 = vld [vmem:[#allocation8 + $0x150] sm:$0xff]  ;;  %v974_v46 = vld [vmem:[#allocation8 + $0x138] sm:$0xff]  ;;  %p6103_p13 = pnand %p6102_p11, %p8316_p1 }
  0xce   : > { %4833 = vmatprep.subr.mxu0 %v6266_v0  ;;  %4898 = vmatprep.subr.mxu1 %v6266_v0  ;;  %vm584_vm10 = vcmp.ge.f32.partialorder %v471_v13, 0.0  ;;  %v668_v25 = vsel %vm657_vm4, %v665_v7, %v667_v16  ;;  %v824_v30 = vrot.slane %v6755_v19, 4  ;;  %vm585_vm11 = vcmp.ge.f32.partialorder %v472_v21, 0.0 }
  0xcf   : > { %4834 = vmatpush3.msra.mxu0 %v634_v26  ;;  %4899 = vmatpush3.msra.mxu1 %v618_v27  ;;  %v669_v26 = vrot.slane %v6755_v19, 5  ;;  %v597_v27 = vmul.f32 0.1, %v472_v21  ;;  %v823_v28 = vsel %vm812_vm5, %v820_v10, %v822_v18  ;;  %p6104_p9 = pneg %p6103_p13 }
  0xd0   : > { %4835 = vmatprep.subr.mxu0 %v6266_v0  ;;  %4900 = vmatprep.subr.mxu1 %v6266_v0 }
  0xd1   : > { %4836 = vmatpush3.msra.mxu0 %v633_v31  ;;  %4901 = vmatpush3.msra.mxu1 %v617_v32  ;;  %v6770_v31 = vsel %vm584_vm10, %v471_v13, %v596_v20  ;;  %v473_v32 = vld [vmem:[%s6617_s24 + $0x38] sm:$0xff]  ;;  %v670_v37 = vsel %vm657_vm4, %v667_v16, %v669_v26  ;;  %v969_v13 = vld [vmem:[#allocation8 + $0x110] sm:$0xff] }
  0xd2   : > { %4837 = vmatprep.subr.mxu0 %v6266_v0  ;;  %4902 = vmatprep.subr.mxu1 %v6266_v0  ;;  %v671_v38 = vrot.slane %v6770_v31, 5  ;;  %v826_v42 = vrot.slane %v6770_v31, 4  ;;  %vm586_vm12 = vcmp.ge.f32.partialorder %v473_v32, 0.0 }
  0xd3   : > { %4838 = vmatpush3.msra.mxu0 %v632_v33  ;;  %4903 = vmatpush3.msra.mxu1 %v616_v34  ;;  %v476_v33 = vld [vmem:[%s404_s23] sm:$0xff]  ;;  %v487_v34 = vstv %s483_s1  ;;  %s8313_s1 = sld [smem:[#allocation22_spill]]  ;;  %s6107_s23 = scalar_lea.vmem %s6106_s27, 2048 }
  0xd4   : > { %4839 = vmatprep.subr.mxu0 %v6266_v0  ;;  %4904 = vmatprep.subr.mxu1 %v6266_v0  ;;  %v672_v48 = vsel %vm657_vm4, %v669_v26, %v671_v38  ;;  %v991_v26 = vrot.slane %v6724_v2, 6  ;;  %p6109_p5 = scmp.lt.s32.totalorder %s6107_s23, %s6101_s26 }
  0xd5   : > { %4840 = vmatpush3.msra.mxu0 %v631_v39  ;;  %4905 = vmatpush3.msra.mxu1 %v615_v40  ;;  %v6778_v39 = vsel %vm585_vm11, %v472_v21, %v597_v27  ;;  %v825_v40 = vsel %vm812_vm5, %v822_v18, %v824_v30  ;;  %v985_v18 = vrot.slane %v6690_v36, 6  ;;  %v967_v21 = vld [vmem:[#allocation8 + $0x100] sm:$0xff]  ;;  %v987_v36 = vrot.slane %v6702_v47, 6 }
  0xd6   : > { %4841 = vmatprep.subr.mxu0 %v6266_v0  ;;  %4906 = vmatprep.subr.mxu1 %v6266_v0  ;;  %v673_v49 = vrot.slane %v6778_v39, 5  ;;  %p6110_p7 = por %p6109_p5, %p6108_p12 }
  0xd7   : > { %4842 = vmatpush3.msra.mxu0 %v630_v43  ;;  %4907 = vmatpush3.msra.mxu1 %v614_v44  ;;  %v598_v43 = vmul.f32 0.1, %v473_v32  ;;  %v6786_v44 = vmul.f32 %v487_v34, %v476_v33 }
  0xd8   : > { %4843 = vmatprep.subr.mxu0 %v6266_v0  ;;  %4908 = vmatprep.subr.mxu1 %v6266_v0  ;;  %v674_v56 = vsel %vm657_vm4, %v671_v38, %v673_v49  ;;  %p6111_p3 = pnand %p6110_p7, %p6104_p9 }
  0xd9   : > { %4844 = vmatpush3.msra.mxu0 %v629_v50  ;;  %4909 = vmatpush3.msra.mxu1 %v613_v51  ;;  %v828_v50 = vrot.slane %v6778_v39, 4  ;;  %v827_v51 = vsel %vm812_vm5, %v824_v30, %v826_v42  ;;  %v6798_v53 = vsel %vm586_vm12, %v473_v32, %v598_v43  ;;  %vm587_vm13 = vcmp.ge.f32.partialorder %v6786_v44, 0.0  ;;  %v1286_v43 = vld [vmem:[#allocation10 + $0xe8] sm:$0xff]  ;;  %s4338_s20 = sshll.u32 %s8313_s1, 5 }
  0xda   : > { %4846 = vmatmul.mubr.f32.vlgmr.msra.gmra.mxu0 %v660_v52  ;;  %4943 = vmatprep.subr.mxu0 %v6266_v0  ;;  %v973_v52 = vld [vmem:[#allocation8 + $0x130] sm:$0xff]  ;;  %v675_v58 = vrot.slane %v6798_v53, 5  ;;  %v997_v30 = vrot.slane %v6770_v31, 6  ;;  %v999_v32 = vrot.slane %v6778_v39, 6  ;;  %v1001_v33 = vrot.slane %v6798_v53, 6 }
  0xdb   : > { %4911 = vmatmul.mubr.f32.vlgmr.msra.gmra.mxu1 %v815_v54  ;;  %4944 = vmatpush3.msra.mxu0 %v982_v55  ;;  %v599_v54 = vmul.f32 0.1, %v6786_v44  ;;  %v6801_v55 = vmul.f32 %v487_v34, %v477_v45  ;;  %v829_v59 = vsel %vm812_vm5, %v826_v42, %v828_v50  ;;  %v1272_v42 = vld [vmem:[#allocation10 + $0x78] sm:$0xff]  ;;  %v1271_v45 = vld [vmem:[#allocation10 + $0x70] sm:$0xff] }
  0xdc   : > { %4848 = vmatprep.mubr.msk.f32.mxu0 %vm6267_vm0, %v6266_v0  ;;  %4945 = vmatprep.subr.mxu0 %v6266_v0  ;;  %v676_v3 = vsel %vm657_vm4, %v673_v49, %v675_v58  ;;  %v1002_v31 = vsel %vm983_vm15, %v999_v32, %v1001_v33  ;;  %v1269_v49 = vld [vmem:[#allocation10 + $0x60] sm:$0xff] }
  0xdd   : > { %4913 = vmatprep.mubr.msk.f32.mxu1 %vm6267_vm0, %v6266_v0  ;;  %4946 = vmatpush3.msra.mxu0 %v981_v60  ;;  %v972_v60 = vld [vmem:[#allocation8 + $0x128] sm:$0xff]  ;;  %v6816_v62 = vsel %vm587_vm13, %v6786_v44, %v599_v54  ;;  %vm588_vm14 = vcmp.ge.f32.partialorder %v6801_v55, 0.0 }
  0xde   : > { %4849 = vmatmul.mubr.f32.gmra.mxu0 %v662_v61  ;;  %4947 = vmatprep.subr.mxu0 %v6266_v0  ;;  %v830_v61 = vrot.slane %v6798_v53, 4  ;;  %v832_v7 = vrot.slane %v6816_v62, 4  ;;  %v1003_v34 = vrot.slane %v6816_v62, 6  ;;  %v1267_v53 = vld [vmem:[#allocation10 + $0x50] sm:$0xff]  ;;  %v1282_v54 = vld [vmem:[#allocation10 + $0xc8] sm:$0xff] }
  0xdf   : > { %4914 = vmatmul.mubr.f32.gmra.mxu1 %v817_v63  ;;  %4851 = vmatprep.mubr.msk.f32.mxu0 %vm6267_vm0, %v6266_v0  ;;  %v600_v63 = vmul.f32 0.1, %v6801_v55 }
  0xe0   : > { %4948 = vmatpush3.msra.mxu0 %v980_v4  ;;  %4916 = vmatprep.mubr.msk.f32.mxu1 %vm6267_vm0, %v6266_v0  ;;  %v677_v4 = vrot.slane %v6816_v62, 5  ;;  %v831_v5 = vsel %vm812_vm5, %v828_v50, %v830_v61  ;;  %v833_v12 = vsel %vm812_vm5, %v830_v61, %v832_v7  ;;  %v1284_v50 = vld [vmem:[#allocation10 + $0xd8] sm:$0xff]  ;;  %v1263_v62 = vld [vmem:[#allocation10 + $0x30] sm:$0xff] }
  0xe1   : > { %4949 = vmatprep.subr.mxu0 %v6266_v0  ;;  %5008 = vmatprep.subr.mxu1 %v6266_v0  ;;  %v1280_v61 = vld [vmem:[#allocation10 + $0xb8] sm:$0xff] }
  0xe2   : > { %4852 = vmatmul.mubr.f32.gmra.mxu0 %v664_v6  ;;  %v970_v6 = vld [vmem:[#allocation8 + $0x118] sm:$0xff] }
  0xe3   : > { %4917 = vmatmul.mubr.f32.gmra.mxu1 %v819_v8  ;;  %4950 = vmatpush3.msra.mxu0 %v979_v9  ;;  %v6829_v8 = vsel %vm588_vm14, %v6801_v55, %v600_v63  ;;  %v678_v9 = vsel %vm657_vm4, %v675_v58, %v677_v4  ;;  %v1265_v58 = vld [vmem:[#allocation10 + $0x40] sm:$0xff]  ;;  %v1279_v63 = vld [vmem:[#allocation10 + $0xb0] sm:$0xff] }
  0xe4   : > { %4854 = vmatprep.mubr.msk.f32.mxu0 %vm6267_vm0, %v6266_v0  ;;  %4951 = vmatprep.subr.mxu0 %v6266_v0  ;;  %v679_v10 = vrot.slane %v6829_v8, 5  ;;  %v1005_v38 = vrot.slane %v6829_v8, 6 }
  0xe5   : > { %4919 = vmatprep.mubr.msk.f32.mxu1 %vm6267_vm0, %v6266_v0  ;;  %4952 = vmatpush3.msra.mxu0 %v978_v14  ;;  %v834_v14 = vrot.slane %v6829_v8, 4  ;;  %v1277_v8 = vld [vmem:[#allocation10 + $0xa0] sm:$0xff] }
  0xe6   : > { %4855 = vmatmul.mubr.f32.gmra.mxu0 %v666_v15  ;;  %4953 = vmatprep.subr.mxu0 %v6266_v0  ;;  %v968_v15 = vld [vmem:[#allocation8 + $0x108] sm:$0xff]  ;;  %v680_v16 = vsel %vm657_vm4, %v677_v4, %v679_v10  ;;  %v1006_v39 = vsel %vm983_vm15, %v1003_v34, %v1005_v38  ;;  %v1260_v4 = vld [vmem:[#allocation10 + $0x18] sm:$0xff]  ;;  %v1257_v10 = vld [vmem:[#allocation10] sm:$0xff] }
  0xe7   : > { %4920 = vmatmul.mubr.f32.gmra.mxu1 %v821_v17  ;;  %4857 = vmatprep.mubr.msk.f32.mxu0 %vm6267_vm0, %v6266_v0  ;;  %v984_v17 = vrot.slane %v6687_v35, 6  ;;  %v835_v20 = vsel %vm812_vm5, %v832_v7, %v834_v14  ;;  %v1258_v7 = vld [vmem:[#allocation10 + $0x8] sm:$0xff]  ;;  %v1273_v14 = vld [vmem:[#allocation10 + $0x80] sm:$0xff] }
  0xe8   : > { %4954 = vmatpush3.msra.mxu0 %v977_v24  ;;  %4922 = vmatprep.mubr.msk.f32.mxu1 %vm6267_vm0, %v6266_v0  ;;  %v988_v24 = vsel %vm983_vm15, %v985_v18, %v987_v36 }
  0xe9   : > { %4955 = vmatprep.subr.mxu0 %v6266_v0  ;;  %v986_v35 = vsel %vm983_vm15, %v984_v17, %v985_v18 }
  0xea   : > { %4858 = vmatmul.mubr.f32.gmra.mxu0 %v668_v25  ;;  %v989_v25 = vrot.slane %v6713_v57, 6 }
  0xeb   : > { %4923 = vmatmul.mubr.f32.gmra.mxu1 %v823_v28  ;;  %4956 = vmatpush3.msra.mxu0 %v976_v29  ;;  %v993_v28 = vrot.slane %v6739_v11, 6  ;;  %v995_v29 = vrot.slane %v6755_v19, 6  ;;  %v1000_v19 = vsel %vm983_vm15, %v997_v30, %v999_v32 }
  0xec   : > { %4860 = vmatprep.mubr.msk.f32.mxu0 %vm6267_vm0, %v6266_v0  ;;  %4925 = vmatprep.mubr.msk.f32.mxu1 %vm6267_vm0, %v6266_v0  ;;  %v990_v47 = vsel %vm983_vm15, %v987_v36, %v989_v25  ;;  %v992_v27 = vsel %vm983_vm15, %v989_v25, %v991_v26 }
  0xed   : > { %4957 = vmatprep.subr.mxu0 %v6266_v0  ;;  %v994_v57 = vsel %vm983_vm15, %v991_v26, %v993_v28  ;;  %v996_v2 = vsel %vm983_vm15, %v993_v28, %v995_v29  ;;  %v998_v11 = vsel %vm983_vm15, %v995_v29, %v997_v30 }
  0xee   : > { %4861 = vmatmul.mubr.f32.gmra.mxu0 %v670_v37  ;;  %v1004_v37 = vsel %vm983_vm15, %v1001_v33, %v1003_v34 }
  0xef   : > { %4926 = vmatmul.mubr.f32.gmra.mxu1 %v825_v40  ;;  %4958 = vmatpush3.msra.mxu0 %v975_v41  ;;  %v1288_v40 = vld [vmem:[#allocation10 + $0xf8] sm:$0xff]  ;;  %v1287_v41 = vld [vmem:[#allocation10 + $0xf0] sm:$0xff] }
  0xf0   : > { %4959 = vmatprep.subr.mxu0 %v6266_v0  ;;  %4863 = vmatprep.mubr.msk.f32.mxu0 %vm6267_vm0, %v6266_v0 }
  0xf1   : > { %4960 = vmatpush3.msra.mxu0 %v974_v46  ;;  %4928 = vmatprep.mubr.msk.f32.mxu1 %vm6267_vm0, %v6266_v0  ;;  %v1285_v46 = vld [vmem:[#allocation10 + $0xe0] sm:$0xff] }
  0xf2   : > { %4864 = vmatmul.mubr.f32.gmra.mxu0 %v672_v48  ;;  %4961 = vmatprep.subr.mxu0 %v6266_v0  ;;  %v1270_v48 = vld [vmem:[#allocation10 + $0x68] sm:$0xff] }
  0xf3   : > { %4929 = vmatmul.mubr.f32.gmra.mxu1 %v827_v51  ;;  %4962 = vmatpush3.msra.mxu0 %v973_v52  ;;  %v1268_v51 = vld [vmem:[#allocation10 + $0x58] sm:$0xff]  ;;  %v1283_v52 = vld [vmem:[#allocation10 + $0xd0] sm:$0xff] }
  0xf4   : > { %4866 = vmatprep.mubr.msk.f32.mxu0 %vm6267_vm0, %v6266_v0  ;;  %4931 = vmatprep.mubr.msk.f32.mxu1 %vm6267_vm0, %v6266_v0 }
  0xf5   : > { %4963 = vmatprep.subr.mxu0 %v6266_v0  ;;  %5009 = vmatpush3.msra.mxu1 %v1288_v40 }
  0xf6   : > { %4867 = vmatmul.mubr.f32.gmra.mxu0 %v674_v56  ;;  %5010 = vmatprep.subr.mxu1 %v6266_v0  ;;  %v1266_v56 = vld [vmem:[#allocation10 + $0x48] sm:$0xff] }
  0xf7   : > { %4932 = vmatmul.mubr.f32.gmra.mxu1 %v829_v59  ;;  %4964 = vmatpush3.msra.mxu0 %v972_v60  ;;  %v1281_v59 = vld [vmem:[#allocation10 + $0xc0] sm:$0xff]  ;;  %v1264_v60 = vld [vmem:[#allocation10 + $0x38] sm:$0xff] }
  0xf8   : > { %4869 = vmatprep.mubr.msk.f32.mxu0 %vm6267_vm0, %v6266_v0  ;;  %4965 = vmatprep.subr.mxu0 %v6266_v0 }
  0xf9   : > { %4934 = vmatprep.mubr.msk.f32.mxu1 %vm6267_vm0, %v6266_v0  ;;  %4966 = vmatpush3.msra.mxu0 %v971_v1  ;;  %v1262_v1 = vld [vmem:[#allocation10 + $0x28] sm:$0xff] }
  0xfa   : > { %4870 = vmatmul.mubr.f32.gmra.mxu0 %v676_v3  ;;  %4967 = vmatprep.subr.mxu0 %v6266_v0  ;;  %v1261_v3 = vld [vmem:[#allocation10 + $0x20] sm:$0xff] }
  0xfb   : > { %4935 = vmatmul.mubr.f32.gmra.mxu1 %v831_v5  ;;  %4968 = vmatpush3.msra.mxu0 %v970_v6  ;;  %v1259_v5 = vld [vmem:[#allocation10 + $0x10] sm:$0xff]  ;;  %v1278_v6 = vld [vmem:[#allocation10 + $0xa8] sm:$0xff] }
  0xfc   : > { %4872 = vmatprep.mubr.msk.f32.mxu0 %vm6267_vm0, %v6266_v0  ;;  %4937 = vmatprep.mubr.msk.f32.mxu1 %vm6267_vm0, %v6266_v0 }
  0xfd   : > { %4969 = vmatprep.subr.mxu0 %v6266_v0  ;;  %5011 = vmatpush3.msra.mxu1 %v1287_v41 }
  0xfe   : > { %4873 = vmatmul.mubr.f32.gmra.mxu0 %v678_v9  ;;  %5012 = vmatprep.subr.mxu1 %v6266_v0  ;;  %v1276_v9 = vld [vmem:[#allocation10 + $0x98] sm:$0xff] }
  0xff   : > { %4938 = vmatmul.mubr.f32.gmra.mxu1 %v833_v12  ;;  %4970 = vmatpush3.msra.mxu0 %v969_v13  ;;  %v1275_v12 = vld [vmem:[#allocation10 + $0x90] sm:$0xff]  ;;  %v1274_v13 = vld [vmem:[#allocation10 + $0x88] sm:$0xff] }
 0x100   : > { %4875 = vmatprep.mubr.msk.f32.mxu0 %vm6267_vm0, %v6266_v0  ;;  %4971 = vmatprep.subr.mxu0 %v6266_v0 }
 0x101   : > { %4940 = vmatprep.mubr.msk.f32.mxu1 %vm6267_vm0, %v6266_v0  ;;  %4972 = vmatpush3.msra.mxu0 %v968_v15 }
 0x102   : > { %4876 = vmatmul.mubr.f32.gmra.mxu0 %v680_v16  ;;  %4973 = vmatprep.subr.mxu0 %v6266_v0 }
 0x103   : > { %4941 = vmatmul.mubr.f32.gmra.mxu1 %v835_v20  ;;  %4974 = vmatpush3.msra.mxu0 %v967_v21 }
 0x104   : > { %4975 = vmatprep.mubr.msk.f32.mxu0 %vm6267_vm0, %v6266_v0  ;;  %5073 = vmatprep.subr.mxu0 %v6266_v0 }
 0x105   : > { %5040 = vmatprep.mubr.msk.f32.mxu1 %vm6267_vm0, %v6266_v0  ;;  %5013 = vmatpush3.msra.mxu1 %v1286_v43 }
 0x106   : > { %4976 = vmatmul.mubr.f32.vlgmr.msra.gmra.mxu0 %v986_v35  ;;  %5014 = vmatprep.subr.mxu1 %v6266_v0 }
 0x107   : > { %4978 = vmatprep.mubr.msk.f32.mxu0 %vm6267_vm0, %v6266_v0  ;;  %5074 = vmatpush3.msra.mxu0 %v1272_v42  ;;  %v6964_v42 = vstv %s4313_s17  ;;  %s4117_s17 = sadd.s32 %s4338_s20, %s4337_s16 }
 0x108   : > { %5075 = vmatprep.subr.mxu0 %v6266_v0  ;;  %5015 = vmatpush3.msra.mxu1 %v1285_v46  ;;  %s4339_s28 = sshll.u32 %s4117_s17, 7 }
 0x109   : > { %5076 = vmatpush3.msra.mxu0 %v1271_v45  ;;  %5016 = vmatprep.subr.mxu1 %v6266_v0 }
 0x10a   : > { %4979 = vmatmul.mubr.f32.gmra.mxu0 %v988_v24  ;;  %5077 = vmatprep.subr.mxu0 %v6266_v0 }
 0x10b   : > { %4981 = vmatprep.mubr.msk.f32.mxu0 %vm6267_vm0, %v6266_v0  ;;  %5078 = vmatpush3.msra.mxu0 %v1270_v48 }
 0x10c   : > { %5079 = vmatprep.subr.mxu0 %v6266_v0  ;;  %5017 = vmatpush3.msra.mxu1 %v1284_v50 }
 0x10d   : > { %5080 = vmatpush3.msra.mxu0 %v1269_v49  ;;  %5018 = vmatprep.subr.mxu1 %v6266_v0 }
 0x10e   : > { %4982 = vmatmul.mubr.f32.gmra.mxu0 %v990_v47  ;;  %5081 = vmatprep.subr.mxu0 %v6266_v0 }
 0x10f   : > { %4984 = vmatprep.mubr.msk.f32.mxu0 %vm6267_vm0, %v6266_v0  ;;  %5082 = vmatpush3.msra.mxu0 %v1268_v51 }
 0x110   : > { %5019 = vmatpush3.msra.mxu1 %v1283_v52  ;;  %5083 = vmatprep.subr.mxu0 %v6266_v0 }
 0x111   : > { %5084 = vmatpush3.msra.mxu0 %v1267_v53  ;;  %5020 = vmatprep.subr.mxu1 %v6266_v0 }
 0x112   : > { %4985 = vmatmul.mubr.f32.gmra.mxu0 %v992_v27  ;;  %5085 = vmatprep.subr.mxu0 %v6266_v0 }
 0x113   : > { %4987 = vmatprep.mubr.msk.f32.mxu0 %vm6267_vm0, %v6266_v0  ;;  %5021 = vmatpush3.msra.mxu1 %v1282_v54 }
 0x114   : > { %5086 = vmatpush3.msra.mxu0 %v1266_v56  ;;  %5022 = vmatprep.subr.mxu1 %v6266_v0 }
 0x115   : > { %5087 = vmatprep.subr.mxu0 %v6266_v0  ;;  %5023 = vmatpush3.msra.mxu1 %v1281_v59 }
 0x116   : > { %4988 = vmatmul.mubr.f32.gmra.mxu0 %v994_v57  ;;  %5024 = vmatprep.subr.mxu1 %v6266_v0 }
 0x117   : > { %4990 = vmatprep.mubr.msk.f32.mxu0 %vm6267_vm0, %v6266_v0  ;;  %5088 = vmatpush3.msra.mxu0 %v1265_v58 }
 0x118   : > { %5089 = vmatprep.subr.mxu0 %v6266_v0  ;;  %5025 = vmatpush3.msra.mxu1 %v1280_v61 }
 0x119   : > { %5090 = vmatpush3.msra.mxu0 %v1264_v60  ;;  %5026 = vmatprep.subr.mxu1 %v6266_v0 }
 0x11a   : > { %4991 = vmatmul.mubr.f32.gmra.mxu0 %v996_v2  ;;  %5091 = vmatprep.subr.mxu0 %v6266_v0 }
 0x11b   : > { %4993 = vmatprep.mubr.msk.f32.mxu0 %vm6267_vm0, %v6266_v0  ;;  %5092 = vmatpush3.msra.mxu0 %v1263_v62 }
 0x11c   : > { %5093 = vmatprep.subr.mxu0 %v6266_v0  ;;  %5027 = vmatpush3.msra.mxu1 %v1279_v63 }
 0x11d   : > { %5094 = vmatpush3.msra.mxu0 %v1262_v1  ;;  %5028 = vmatprep.subr.mxu1 %v6266_v0 }
 0x11e   : > { %4994 = vmatmul.mubr.f32.gmra.mxu0 %v998_v11  ;;  %5095 = vmatprep.subr.mxu0 %v6266_v0  ;;  %v490_v11 = vlaneseq }
 0x11f   : > { %4996 = vmatprep.mubr.msk.f32.mxu0 %vm6267_vm0, %v6266_v0  ;;  %5096 = vmatpush3.msra.mxu0 %v1261_v3 }
 0x120   : > { %5097 = vmatprep.subr.mxu0 %v6266_v0  ;;  %5029 = vmatpush3.msra.mxu1 %v1278_v6  ;;  %v6957_v34 = vshrl.u32 %v490_v11, 7 }
 0x121   : > { %5098 = vmatpush3.msra.mxu0 %v1260_v4  ;;  %5030 = vmatprep.subr.mxu1 %v6266_v0 }
 0x122   : > { %4997 = vmatmul.mubr.f32.gmra.mxu0 %v1000_v19  ;;  %5099 = vmatprep.subr.mxu0 %v6266_v0  ;;  %v492_v41 = vadd.s32 8, %v6957_v34  ;;  %v505_v48 = vadd.s32 %v6964_v42, %v6957_v34  ;;  %v493_v51 = vadd.s32 16, %v6957_v34  ;;  %v494_v56 = vadd.s32 24, %v6957_v34 }
 0x123   : > { %4999 = vmatprep.mubr.msk.f32.mxu0 %vm6267_vm0, %v6266_v0  ;;  %5100 = vmatpush3.msra.mxu0 %v1259_v5  ;;  %v495_v60 = vadd.s32 32, %v6957_v34 }
 0x124   : > { %5101 = vmatprep.subr.mxu0 %v6266_v0  ;;  %5031 = vmatpush3.msra.mxu1 %v1277_v8  ;;  %v506_v50 = vadd.s32 %v6964_v42, %v492_v41  ;;  %vm517_vm1 = vcmp.ge.s32.totalorder %v505_v48, 0  ;;  %vm529_vm2 = vcmp.lt.s32.totalorder %v505_v48, 256  ;;  %v507_v59 = vadd.s32 %v6964_v42, %v493_v51 }
 0x125   : > { %5102 = vmatpush3.msra.mxu0 %v1258_v7  ;;  %5032 = vmatprep.subr.mxu1 %v6266_v0  ;;  %vm541_vm7 = vmand %vm517_vm1, %vm529_vm2  ;;  %v508_v1 = vadd.s32 %v6964_v42, %v494_v56  ;;  %v509_v4 = vadd.s32 %v6964_v42, %v495_v60  ;;  %v498_v48 = vadd.s32 56, %v6957_v34 }
 0x126   : > { %5000 = vmatmul.mubr.f32.gmra.mxu0 %v1002_v31  ;;  %5103 = vmatprep.subr.mxu0 %v6266_v0  ;;  %vm518_vm3 = vcmp.ge.s32.totalorder %v506_v50, 0  ;;  %vm530_vm6 = vcmp.lt.s32.totalorder %v506_v50, 256  ;;  %vm519_vm9 = vcmp.ge.s32.totalorder %v507_v59, 0  ;;  %vm531_vm10 = vcmp.lt.s32.totalorder %v507_v59, 256 }
 0x127   : > { %5002 = vmatprep.mubr.msk.f32.mxu0 %vm6267_vm0, %v6266_v0  ;;  %5104 = vmatpush3.msra.mxu0 %v1257_v10  ;;  %vm542_vm8 = vmand %vm518_vm3, %vm530_vm6  ;;  %v6988_v7 = vsel %vm541_vm7, 1.0, %v6266_v0  ;;  %vm520_vm12 = vcmp.ge.s32.totalorder %v508_v1, 0  ;;  %vm532_vm13 = vcmp.lt.s32.totalorder %v508_v1, 256  ;;  %v496_v10 = vadd.s32 40, %v6957_v34 }
 0x128   : > { %5033 = vmatpush3.msra.mxu1 %v1276_v9  ;;  %v6991_v8 = vsel %vm542_vm8, 1.0, %v6266_v0  ;;  %vm543_vm11 = vmand %vm519_vm9, %vm531_vm10  ;;  %vm521_vm14 = vcmp.ge.s32.totalorder %v509_v4, 0  ;;  %vm533_vm1 = vcmp.lt.s32.totalorder %v509_v4, 256  ;;  %v499_v1 = vadd.s32 64, %v6957_v34 }
 0x129   : > { %5034 = vmatprep.subr.mxu1 %v6266_v0  ;;  %vm544_vm2 = vmand %vm520_vm12, %vm532_vm13  ;;  %vm1300_vm12 = vcmask 1046528  }
 0x12a   : > { %5003 = vmatmul.mubr.f32.gmra.mxu0 %v1004_v37  ;;  %5035 = vmatpush3.msra.mxu1 %v1275_v12  ;;  %vm545_vm3 = vmand %vm521_vm14, %vm533_vm1 }
 0x12b   : > { %5005 = vmatprep.mubr.msk.f32.mxu0 %vm6267_vm0, %v6266_v0  ;;  %5036 = vmatprep.subr.mxu1 %v6266_v0  ;;  %v7021_v41 = vsel %vm545_vm3, 1.0, %v6266_v0 }
 0x12c   : > { %5037 = vmatpush3.msra.mxu1 %v1274_v13 }
 0x12d   : > { %5038 = vmatprep.subr.mxu1 %v6266_v0 }
 0x12e   : > { %5006 = vmatmul.mubr.f32.gmra.mxu0 %v1006_v39  ;;  %5039 = vmatpush3.msra.mxu1 %v1273_v14  ;;  %v1179_v14 = vrot.slane %v6988_v7, 5 }
 0x12f   : > { %5105 = vmatprep.mubr.msk.f32.mxu0 %vm6267_vm0, %v6266_v0  ;;  %5138 = vmatprep.subr.mxu1 %v6266_v0 }
 0x19a   : > { %v6932_v15 = vpop.f32.mrf.mxu0 }
 0x19b   : > { %v6934_v16 = vpop.f32.mrf.mxu1 }
 0x19c   : > { %v4847_v17 = vpop.f32.mrf.mxu0 }
 0x19d   : > { %v4912_v18 = vpop.f32.mrf.mxu1  ;;  %v1180_v17 = vrot.slane %v6991_v8, 5 }
 0x19e   : > { %v6936_v20 = vpop.f32.mrf.mxu0  ;;  %v914_v18 = vadd.f32 %v6934_v16, %v6932_v15 }
 0x19f   : > { %v6938_v21 = vpop.f32.mrf.mxu1 }
 0x1a0   : > { %v4850_v35 = vpop.f32.mrf.mxu0 }
 0x1a1   : > { %v4915_v36 = vpop.f32.mrf.mxu1  ;;  %v7003_v35 = vsel %vm543_vm11, 1.0, %v6266_v0 }
 0x1a2   : > { %v6940_v24 = vpop.f32.mrf.mxu0  ;;  %v1182_v16 = vrot.slane %v7003_v35, 5 }
 0x1a3   : > { %v6942_v25 = vpop.f32.mrf.mxu1 }
 0x1a4   : > { %v4853_v47 = vpop.f32.mrf.mxu0  ;;  %v924_v56 = vadd.f32 %v6942_v25, %v6940_v24  ;;  %v500_v25 = vadd.s32 72, %v6957_v34 }
 0x1a5   : > { %v4918_v26 = vpop.f32.mrf.mxu1 }
 0x1a6   : > { %v6944_v27 = vpop.f32.mrf.mxu0  ;;  %v7008_v26 = vld [vmem:[%s8302_s2] ss:$0 sm:$0xff] }
 0x1a7   : > { %v6946_v28 = vpop.f32.mrf.mxu1 }
 0x1a8   : > { %v4856_v57 = vpop.f32.mrf.mxu0 }
 0x1a9   : > { %v4921_v29 = vpop.f32.mrf.mxu1  ;;  %v510_v57 = vadd.s32 %v6964_v42, %v496_v10 }
 0x1aa   : > { %v6948_v2 = vpop.f32.mrf.mxu0  ;;  %v497_v29 = vadd.s32 48, %v6957_v34 }
 0x1ab   : > { %v6950_v30 = vpop.f32.mrf.mxu1  ;;  %vm522_vm6 = vcmp.ge.s32.totalorder %v510_v57, 0  ;;  %vm534_vm7 = vcmp.lt.s32.totalorder %v510_v57, 256  ;;  %v513_v57 = vadd.s32 %v6964_v42, %v499_v1 }
 0x1ac   : > { %v4859_v32 = vpop.f32.mrf.mxu0  ;;  %vm546_vm9 = vmand %vm522_vm6, %vm534_vm7 }
 0x1ad   : > { %v4924_v19 = vpop.f32.mrf.mxu1  ;;  %v1181_v32 = vsel %vm657_vm4, %v1179_v14, %v1180_v17  ;;  %v7038_v24 = vsel %vm546_vm9, 1.0, %v6266_v0  ;;  %v929_v14 = vadd.f32 %v6946_v28, %v6944_v27  ;;  %vm525_vm7 = vcmp.ge.s32.totalorder %v513_v57, 0 }
 0x1ae   : > { %v6953_v33 = vpop.f32.mrf.mxu0  ;;  %v919_v19 = vadd.f32 %v6938_v21, %v6936_v20  ;;  %v1188_v28 = vrot.slane %v7038_v24, 5 }
 0x1af   : > { %v6955_v31 = vpop.f32.mrf.mxu1 }
 0x1b0   : > { %v4862_v37 = vpop.f32.mrf.mxu0 }
 0x1b1   : > { %v4927_v38 = vpop.f32.mrf.mxu1 }
 0x1b2   : > { %v6959_v39 = vpop.f32.mrf.mxu0  ;;  %v7018_v38 = vsel %vm544_vm2, 1.0, %v6266_v0 }
 0x1b3   : > { %v6961_v40 = vpop.f32.mrf.mxu1  ;;  %v1184_v21 = vrot.slane %v7018_v38, 5 }
 0x1b4   : > { %v4865_v43 = vpop.f32.mrf.mxu0 }
 0x1b5   : > { %v4930_v45 = vpop.f32.mrf.mxu1  ;;  %v1185_v10 = vsel %vm657_vm4, %v1182_v16, %v1184_v21 }
 0x1b6   : > { %v6966_v46 = vpop.f32.mrf.mxu0  ;;  %v511_v45 = vadd.s32 %v6964_v42, %v497_v29 }
 0x1b7   : > { %v6970_v49 = vpop.f32.mrf.mxu1 }
 0x1b8   : > { %v4868_v52 = vpop.f32.mrf.mxu0  ;;  %vm523_vm10 = vcmp.ge.s32.totalorder %v511_v45, 0  ;;  %vm535_vm11 = vcmp.lt.s32.totalorder %v511_v45, 256 }
 0x1b9   : > { %v4933_v53 = vpop.f32.mrf.mxu1  ;;  %v1183_v52 = vsel %vm657_vm4, %v1180_v17, %v1182_v16  ;;  %vm547_vm14 = vmand %vm523_vm10, %vm535_vm11 }
 0x1ba   : > { %v6974_v54 = vpop.f32.mrf.mxu0  ;;  %v1186_v53 = vrot.slane %v7021_v41, 5 }
 0x1bb   : > { %v6977_v58 = vpop.f32.mrf.mxu1 }
 0x1bc   : > { %v4871_v61 = vpop.f32.mrf.mxu0 }
 0x1bd   : > { %v4936_v62 = vpop.f32.mrf.mxu1 }
 0x1be   : > { %v6981_v63 = vpop.f32.mrf.mxu0  ;;  %v512_v62 = vadd.s32 %v6964_v42, %v498_v48 }
 0x1bf   : > { %v6984_v3 = vpop.f32.mrf.mxu1 }
 0x1c0   : > { %v4874_v5 = vpop.f32.mrf.mxu0  ;;  %vm524_vm1 = vcmp.ge.s32.totalorder %v512_v62, 0  ;;  %vm536_vm2 = vcmp.lt.s32.totalorder %v512_v62, 256 }
 0x1c1   : > { %v4939_v6 = vpop.f32.mrf.mxu1  ;;  %vm7067_vm6 = vmand %vm524_vm1, %vm536_vm2 }
 0x1c2   : > { %v6993_v9 = vpop.f32.mrf.mxu0 }
 0x1c3   : > { %v6996_v12 = vpop.f32.mrf.mxu1 }
 0x1c4   : > { %v4877_v13 = vpop.f32.mrf.mxu0 }
 0x1c5   : > { %v4942_v36 = vpop.f32.mrf.mxu1 }
 0x1c6   : > { %v1084_v47 = vpop.f32.mrf.mxu0 }
 0x1c7   : > { %v1138_v11 = vadd.f32 %v1084_v47, %v914_v18  ;;  %v1187_v47 = vsel %vm657_vm4, %v1184_v21, %v1186_v53 }
 0x1c8   : > { %v4977_v15 = vpop.f32.mrf.mxu0 }
 0x1c9   : > { %v1156_v37 = vadd.f32 %v7008_v26, %v1138_v11 }
 0x1ca   : > { %v1089_v43 = vpop.f32.mrf.mxu0 }
 0x1cb   : > { %v1213_v50 = vmul.f32 %v1181_v32, %v1156_v37  ;;  %v1139_v51 = vadd.f32 %v1089_v43, %v919_v19  ;;  %v7057_v19 = vsel %vm547_vm14, 1.0, %v6266_v0  ;;  %v514_v37 = vadd.s32 %v6964_v42, %v500_v25 }
 0x1cc   : > { %v4980_v20 = vpop.f32.mrf.mxu0  ;;  %v934_v43 = vadd.f32 %v6950_v30, %v6948_v2  ;;  %v501_v2 = vadd.s32 80, %v6957_v34  ;;  %v1190_v1 = vrot.slane %v7057_v19, 5 }
 0x1cd   : > { %v1235_v59 = vmul.f32 0.1, %v1213_v50  ;;  %v1157_v60 = vadd.f32 %v7008_v26, %v1139_v51  ;;  %vm1224_vm8 = vcmp.ge.f32.partialorder %v1213_v50, 0.0  ;;  %vm526_vm9 = vcmp.ge.s32.totalorder %v514_v37, 0 }
 0x1ce   : > { %v1094_v61 = vpop.f32.mrf.mxu0 }
 0x1cf   : > { %v1214_v4 = vmul.f32 %v1183_v52, %v1157_v60  ;;  %v1140_v5 = vadd.f32 %v1094_v61, %v924_v56  ;;  %v7033_v6 = vsel %vm1224_vm8, %v1213_v50, %v1235_v59  ;;  %v1588_v50 = vld [vmem:[#allocation10 + $0x178] sm:$0xff]  ;;  %vm537_vm8 = vcmp.lt.s32.totalorder %v513_v57, 256  ;;  %v1587_v60 = vld [vmem:[#allocation10 + $0x170] sm:$0xff] }
 0x1d0   : > { %v4983_v13 = vpop.f32.mrf.mxu0  ;;  %5106 = vmatmul.mubr.f32.vlgmr.msra.gmra.mxu0 %v7033_v6  ;;  %v1301_v32 = vrot.slane %v7033_v6, 1  ;;  %v1189_v56 = vsel %vm657_vm4, %v1186_v53, %v1188_v28  ;;  %v939_v53 = vadd.f32 %v6955_v31, %v6953_v33  ;;  %vm7092_vm11 = vmand %vm525_vm7, %vm537_vm8  ;;  %v1586_v33 = vld [vmem:[#allocation10 + $0x168] sm:$0xff]  ;;  %v515_v31 = vadd.s32 %v6964_v42, %v501_v2 }
 0x1d1   : > { %v1158_v17 = vadd.f32 %v7008_v26, %v1140_v5  ;;  %5108 = vmatprep.mubr.msk.f32.mxu0 %vm6267_vm0, %v6266_v0  ;;  %vm1225_vm13 = vcmp.ge.f32.partialorder %v1214_v4, 0.0  ;;  %v1236_v18 = vmul.f32 0.1, %v1214_v4  ;;  %v1191_v57 = vsel %vm657_vm4, %v1188_v28, %v1190_v1 }
 0x1d2   : > { %v1099_v36 = vpop.f32.mrf.mxu0  ;;  %vm527_vm2 = vcmp.ge.s32.totalorder %v515_v31, 0 }
 0x1d3   : > { %v1215_v29 = vmul.f32 %v1185_v10, %v1158_v17  ;;  %v1141_v11 = vadd.f32 %v1099_v36, %v929_v14  ;;  %v7050_v27 = vsel %vm1225_vm13, %v1214_v4, %v1236_v18  ;;  %v7082_v4 = vsel %vm7067_vm6, 1.0, %v6266_v0 }
 0x1d4   : > { %v4986_v15 = vpop.f32.mrf.mxu0  ;;  %v1302_v16 = vrot.slane %v7050_v27, 1  ;;  %5109 = vmatmul.mubr.f32.gmra.mxu0 %v7050_v27  ;;  %vm538_vm13 = vcmp.lt.s32.totalorder %v514_v37, 256  ;;  %v502_v17 = vadd.s32 88, %v6957_v34  ;;  %v7113_v34 = vsel %vm7092_vm11, 1.0, %v6266_v0 }
 0x1d5   : > { %v1159_v45 = vadd.f32 %v7008_v26, %v1141_v11  ;;  %5111 = vmatprep.mubr.msk.f32.mxu0 %vm6267_vm0, %v6266_v0  ;;  %vm1226_vm3 = vcmp.ge.f32.partialorder %v1215_v29, 0.0  ;;  %v1237_v48 = vmul.f32 0.1, %v1215_v29  ;;  %v944_v15 = vadd.f32 %v6961_v40, %v6959_v39  ;;  %vm7122_vm1 = vmand %vm526_vm9, %vm538_vm13 }
 0x1d6   : > { %v1104_v52 = vpop.f32.mrf.mxu0  ;;  %v1303_v20 = vsel %vm1300_vm12, %v1301_v32, %v1302_v16  ;;  %v1192_v32 = vrot.slane %v7082_v4, 5  ;;  %v516_v39 = vadd.s32 %v6964_v42, %v502_v17  ;;  %v7138_v42 = vsel %vm7122_vm1, 1.0, %v6266_v0 }
 0x1d7   : > { %v1216_v30 = vmul.f32 %v1187_v47, %v1159_v45  ;;  %v1142_v21 = vadd.f32 %v1104_v52, %v934_v43  ;;  %5041 = vmatmul.mubr.f32.vlgmr.msra.gmra.mxu1 %v1303_v20  ;;  %v7074_v59 = vsel %vm1226_vm3, %v1215_v29, %v1237_v48  ;;  %v1585_v43 = vld [vmem:[#allocation10 + $0x160] sm:$0xff]  ;;  %vm539_vm3 = vcmp.lt.s32.totalorder %v515_v31, 256  ;;  %v1584_v20 = vld [vmem:[#allocation10 + $0x158] sm:$0xff] }
 0x1d8   : > { %v4989_v61 = vpop.f32.mrf.mxu0  ;;  %v1304_v62 = vrot.slane %v7074_v59, 1  ;;  %5112 = vmatmul.mubr.f32.gmra.mxu0 %v7074_v59  ;;  %5139 = vmatpush3.msra.mxu1 %v1588_v50  ;;  %v1193_v37 = vsel %vm657_vm4, %v1190_v1, %v1192_v32  ;;  %vm7148_vm7 = vmand %vm527_vm2, %vm539_vm3  ;;  %vm528_vm8 = vcmp.ge.s32.totalorder %v516_v39, 0  ;;  %vm540_vm9 = vcmp.lt.s32.totalorder %v516_v39, 256 }
 0x1d9   : > { %v1160_v5 = vadd.f32 %v7008_v26, %v1142_v21  ;;  %5043 = vmatprep.mubr.msk.f32.mxu1 %vm6267_vm0, %v6266_v0  ;;  %5140 = vmatprep.subr.mxu1 %v6266_v0  ;;  %vm1227_vm10 = vcmp.ge.f32.partialorder %v1216_v30, 0.0  ;;  %v1238_v10 = vmul.f32 0.1, %v1216_v30  ;;  %v1194_v21 = vrot.slane %v7113_v34, 5  ;;  %vm552_vm11 = vmand %vm528_vm8, %vm540_vm9 }
 0x1da   : > { %v1109_v25 = vpop.f32.mrf.mxu0  ;;  %v1305_v14 = vsel %vm1300_vm12, %v1302_v16, %v1304_v62  ;;  %5114 = vmatprep.mubr.msk.f32.mxu0 %vm6267_vm0, %v6266_v0  ;;  %5141 = vmatpush3.msra.mxu1 %v1587_v60  ;;  %v7167_v31 = vsel %vm7148_vm7, 1.0, %v6266_v0  ;;  %v954_v17 = vadd.f32 %v6977_v58, %v6974_v54  ;;  %v7185_v45 = vsel %vm552_vm11, 1.0, %v6266_v0 }
 0x1db   : > { %v1217_v18 = vmul.f32 %v1189_v56, %v1160_v5  ;;  %v1143_v36 = vadd.f32 %v1109_v25, %v939_v53  ;;  %5044 = vmatmul.mubr.f32.gmra.mxu1 %v1305_v14  ;;  %v7101_v47 = vsel %vm1227_vm10, %v1216_v30, %v1238_v10  ;;  %5142 = vmatprep.subr.mxu1 %v6266_v0  ;;  %vm1589_vm3 = vcmask 1045504  }
 0x1dc   : > { %v4992_v29 = vpop.f32.mrf.mxu0  ;;  %v1306_v11 = vrot.slane %v7101_v47, 1  ;;  %5115 = vmatmul.mubr.f32.gmra.mxu0 %v7101_v47  ;;  %5046 = vmatprep.mubr.msk.f32.mxu1 %vm6267_vm0, %v6266_v0  ;;  %v949_v56 = vadd.f32 %v6970_v49, %v6966_v46  ;;  %v1583_v46 = vld [vmem:[#allocation10 + $0x150] sm:$0xff]  ;;  %v1195_v13 = vsel %vm657_vm4, %v1192_v32, %v1194_v21  ;;  %vm1949_vm7 = vcmask 1044480  }
 0x1dd   : > { %v1161_v28 = vadd.f32 %v7008_v26, %v1143_v36  ;;  %5143 = vmatpush3.msra.mxu1 %v1586_v33  ;;  %5117 = vmatprep.mubr.msk.f32.mxu0 %vm6267_vm0, %v6266_v0  ;;  %vm1228_vm14 = vcmp.ge.f32.partialorder %v1217_v18, 0.0  ;;  %v1239_v16 = vmul.f32 0.1, %v1217_v18  ;;  %v1196_v33 = vrot.slane %v7138_v42, 5 }
 0x1de   : > { %v1114_v48 = vpop.f32.mrf.mxu0  ;;  %v1307_v50 = vsel %vm1300_vm12, %v1304_v62, %v1306_v11  ;;  %5144 = vmatprep.subr.mxu1 %v6266_v0 }
 0x1df   : > { %v1218_v40 = vmul.f32 %v1191_v57, %v1161_v28  ;;  %v1144_v51 = vadd.f32 %v1114_v48, %v944_v15  ;;  %5047 = vmatmul.mubr.f32.gmra.mxu1 %v1307_v50  ;;  %v7129_v52 = vsel %vm1228_vm14, %v1217_v18, %v1239_v16  ;;  %v1582_v57 = vld [vmem:[#allocation10 + $0x148] sm:$0xff]  ;;  %v1197_v58 = vsel %vm657_vm4, %v1194_v21, %v1196_v33 }
 0x1e0   : > { %v4995_v2 = vpop.f32.mrf.mxu0  ;;  %v1308_v30 = vrot.slane %v7129_v52, 1  ;;  %5118 = vmatmul.mubr.f32.gmra.mxu0 %v7129_v52  ;;  %5145 = vmatpush3.msra.mxu1 %v1585_v43  ;;  %v1198_v43 = vrot.slane %v7167_v31, 5  ;;  %v959_v48 = vadd.f32 %v6984_v3, %v6981_v63  ;;  %v1580_v3 = vld [vmem:[#allocation10 + $0x138] sm:$0xff] }
 0x1e1   : > { %v1162_v60 = vadd.f32 %v7008_v26, %v1144_v51  ;;  %5049 = vmatprep.mubr.msk.f32.mxu1 %vm6267_vm0, %v6266_v0  ;;  %5146 = vmatprep.subr.mxu1 %v6266_v0  ;;  %vm1229_vm6 = vcmp.ge.f32.partialorder %v1218_v40, 0.0  ;;  %v1240_v61 = vmul.f32 0.1, %v1218_v40 }
 0x1e2   : > { %v1119_v1 = vpop.f32.mrf.mxu0  ;;  %v1309_v53 = vsel %vm1300_vm12, %v1306_v11, %v1308_v30  ;;  %5120 = vmatprep.mubr.msk.f32.mxu0 %vm6267_vm0, %v6266_v0  ;;  %5147 = vmatpush3.msra.mxu1 %v1584_v20 }
 0x1e3   : > { %v1219_v49 = vmul.f32 %v1193_v37, %v1162_v60  ;;  %v1145_v5 = vadd.f32 %v1119_v1, %v949_v56  ;;  %5050 = vmatmul.mubr.f32.gmra.mxu1 %v1309_v53  ;;  %v7155_v10 = vsel %vm1229_vm6, %v1218_v40, %v1240_v61  ;;  %5148 = vmatprep.subr.mxu1 %v6266_v0  ;;  %v1581_v40 = vld [vmem:[#allocation10 + $0x140] sm:$0xff]  ;;  %v1200_v60 = vrot.slane %v7185_v45, 5  ;;  %v1579_v53 = vld [vmem:[#allocation10 + $0x130] sm:$0xff] }
 0x1e4   : > { %v4998_v25 = vpop.f32.mrf.mxu0  ;;  %v1310_v14 = vrot.slane %v7155_v10, 1  ;;  %5121 = vmatmul.mubr.f32.gmra.mxu0 %v7155_v10  ;;  %5052 = vmatprep.mubr.msk.f32.mxu1 %vm6267_vm0, %v6266_v0  ;;  %v964_v61 = vadd.f32 %v6996_v12, %v6993_v9 }
 0x1e5   : > { %v1163_v18 = vadd.f32 %v7008_v26, %v1145_v5  ;;  %5149 = vmatpush3.msra.mxu1 %v1583_v46  ;;  %5123 = vmatprep.mubr.msk.f32.mxu0 %vm6267_vm0, %v6266_v0  ;;  %vm1230_vm10 = vcmp.ge.f32.partialorder %v1219_v49, 0.0  ;;  %v1241_v36 = vmul.f32 0.1, %v1219_v49  ;;  %v1201_v12 = vsel %vm657_vm4, %v1198_v43, %v1200_v60 }
 0x1e6   : > { %v1124_v29 = vpop.f32.mrf.mxu0  ;;  %v1311_v11 = vsel %vm1300_vm12, %v1308_v30, %v1310_v14  ;;  %5150 = vmatprep.subr.mxu1 %v6266_v0  ;;  %v1199_v30 = vsel %vm657_vm4, %v1196_v33, %v1198_v43 }
 0x1e7   : > { %v1220_v32 = vmul.f32 %v1195_v13, %v1163_v18  ;;  %v1146_v15 = vadd.f32 %v1124_v29, %v954_v17  ;;  %5053 = vmatmul.mubr.f32.gmra.mxu1 %v1311_v11  ;;  %v7178_v54 = vsel %vm1230_vm10, %v1219_v49, %v1241_v36  ;;  %v1578_v18 = vld [vmem:[#allocation10 + $0x128] sm:$0xff]  ;;  %v1577_v11 = vld [vmem:[#allocation10 + $0x120] sm:$0xff] }
 0x1e8   : > { %v5001_v28 = vpop.f32.mrf.mxu0  ;;  %v1312_v16 = vrot.slane %v7178_v54, 1  ;;  %5124 = vmatmul.mubr.f32.gmra.mxu0 %v7178_v54  ;;  %5151 = vmatpush3.msra.mxu1 %v1582_v57 }
 0x1e9   : > { %v1164_v50 = vadd.f32 %v7008_v26, %v1146_v15  ;;  %5055 = vmatprep.mubr.msk.f32.mxu1 %vm6267_vm0, %v6266_v0  ;;  %5126 = vmatprep.mubr.msk.f32.mxu0 %vm6267_vm0, %v6266_v0  ;;  %vm1231_vm13 = vcmp.ge.f32.partialorder %v1220_v32, 0.0  ;;  %v1242_v39 = vmul.f32 0.1, %v1220_v32  ;;  %v1576_v15 = vld [vmem:[#allocation10 + $0x118] sm:$0xff] }
 0x1ea   : > { %v1129_v51 = vpop.f32.mrf.mxu0  ;;  %v1313_v20 = vsel %vm1300_vm12, %v1310_v14, %v1312_v16  ;;  %5152 = vmatprep.subr.mxu1 %v6266_v0 }
 0x1eb   : > { %v1221_v37 = vmul.f32 %v1197_v58, %v1164_v50  ;;  %v1147_v2 = vadd.f32 %v1129_v51, %v959_v48  ;;  %5056 = vmatmul.mubr.f32.gmra.mxu1 %v1313_v20  ;;  %v7196_v63 = vsel %vm1231_vm13, %v1220_v32, %v1242_v39  ;;  %v1574_v48 = vld [vmem:[#allocation10 + $0x108] sm:$0xff]  ;;  %v1573_v39 = vld [vmem:[#allocation10 + $0x100] sm:$0xff]  ;;  %v1590_v51 = vrot.slane %v7033_v6, 2 }
 0x1ec   : > { %v5004_v21 = vpop.f32.mrf.mxu0  ;;  %v1314_v56 = vrot.slane %v7196_v63, 1  ;;  %5127 = vmatmul.mubr.f32.gmra.mxu0 %v7196_v63  ;;  %5153 = vmatpush3.msra.mxu1 %v1581_v40  ;;  %v1591_v40 = vrot.slane %v7050_v27, 2  ;;  %v1593_v20 = vrot.slane %v7074_v59, 2  ;;  %v1597_v6 = vrot.slane %v7129_v52, 2 }
 0x1ed   : > { %v1165_v62 = vadd.f32 %v7008_v26, %v1147_v2  ;;  %5154 = vmatprep.subr.mxu1 %v6266_v0  ;;  %5058 = vmatprep.mubr.msk.f32.mxu1 %vm6267_vm0, %v6266_v0  ;;  %vm1232_vm14 = vcmp.ge.f32.partialorder %v1221_v37, 0.0  ;;  %v1243_v1 = vmul.f32 0.1, %v1221_v37  ;;  %v1595_v2 = vrot.slane %v7101_v47, 2 }
 0x1ee   : > { %v1134_v46 = vpop.f32.mrf.mxu0  ;;  %5155 = vmatpush3.msra.mxu1 %v1580_v3  ;;  %v1315_v49 = vsel %vm1300_vm12, %v1312_v16, %v1314_v56  ;;  %5129 = vmatprep.mubr.msk.f32.mxu0 %vm6267_vm0, %v6266_v0  ;;  %v1575_v16 = vld [vmem:[#allocation10 + $0x110] sm:$0xff]  ;;  %v1594_v27 = vsel %vm1589_vm3, %v1591_v40, %v1593_v20  ;;  %v1599_v59 = vrot.slane %v7155_v10, 2  ;;  %v1601_v47 = vrot.slane %v7178_v54, 2 }
 0x1ef   : > { %v1222_v5 = vmul.f32 %v1199_v30, %v1165_v62  ;;  %v1148_v13 = vadd.f32 %v1134_v46, %v964_v61  ;;  %5059 = vmatmul.mubr.f32.gmra.mxu1 %v1315_v49  ;;  %v7211_v9 = vsel %vm1232_vm14, %v1221_v37, %v1243_v1  ;;  %5156 = vmatprep.subr.mxu1 %v6266_v0  ;;  %v1603_v52 = vrot.slane %v7196_v63, 2  ;;  %v1937_v46 = vld [vmem:[#allocation8 + $0x278] sm:$0xff]  ;;  %v1920_v49 = vld [vmem:[#allocation8 + $0x1f0] sm:$0xff] }
 0x1f0   : > { %v5007_v25 = vpop.f32.mrf.mxu0  ;;  %v1316_v14 = vrot.slane %v7211_v9, 1  ;;  %5130 = vmatmul.mubr.f32.gmra.mxu0 %v7211_v9  ;;  %5157 = vmatpush3.msra.mxu1 %v1579_v53  ;;  %v1592_v37 = vsel %vm1589_vm3, %v1590_v51, %v1591_v40  ;;  %v1596_v3 = vsel %vm1589_vm3, %v1593_v20, %v1595_v2  ;;  %v1598_v30 = vsel %vm1589_vm3, %v1595_v2, %v1597_v6  ;;  %v1921_v53 = vld [vmem:[#allocation8 + $0x1f8] sm:$0xff]  ;;  %v1926_v40 = vld [vmem:[#allocation8 + $0x220] sm:$0xff]  ;;  %v1923_v2 = vld [vmem:[#allocation8 + $0x208] sm:$0xff] }
 0x1f1   : > { %v1166_v33 = vadd.f32 %v7008_v26, %v1148_v13  ;;  %5061 = vmatprep.mubr.msk.f32.mxu1 %vm6267_vm0, %v6266_v0  ;;  %5132 = vmatprep.mubr.msk.f32.mxu0 %vm6267_vm0, %v6266_v0  ;;  %vm1233_vm1 = vcmp.ge.f32.partialorder %v1222_v5, 0.0  ;;  %v1244_v17 = vmul.f32 0.1, %v1222_v5  ;;  %v1600_v21 = vsel %vm1589_vm3, %v1597_v6, %v1599_v59  ;;  %v1919_v13 = vld [vmem:[#allocation8 + $0x1e8] sm:$0xff]  ;;  %v1917_v25 = vld [vmem:[#allocation8 + $0x1d8] sm:$0xff]  ;;  %v1906_v51 = vld [vmem:[#allocation8 + $0x180] sm:$0xff] }
 0x1f2   : > { %v1317_v36 = vsel %vm1300_vm12, %v1314_v56, %v1316_v14  ;;  %5158 = vmatprep.subr.mxu1 %v6266_v0  ;;  %v1602_v56 = vsel %vm1589_vm3, %v1599_v59, %v1601_v47  ;;  %v1605_v10 = vrot.slane %v7211_v9, 2  ;;  %v1604_v60 = vsel %vm1589_vm3, %v1601_v47, %v1603_v52  ;;  %5203 = vmatprep.subr.mxu0 %v1937_v46  ;;  %v1935_v9 = vld [vmem:[#allocation8 + $0x268] sm:$0xff]  ;;  %v1925_v20 = vld [vmem:[#allocation8 + $0x218] sm:$0xff] }
 0x1f3   : > { %v1223_v57 = vmul.f32 %v1201_v12, %v1166_v33  ;;  %5062 = vmatmul.mubr.f32.gmra.mxu1 %v1317_v36  ;;  %v7224_v29 = vsel %vm1233_vm1, %v1222_v5, %v1244_v17  ;;  %5204 = vmatpush3.msra.mxu0 %v1937_v46  ;;  %v1936_v5 = vld [vmem:[#allocation8 + $0x270] sm:$0xff]  ;;  %v1918_v12 = vld [vmem:[#allocation8 + $0x1e0] sm:$0xff]  ;;  %v1933_v17 = vld [vmem:[#allocation8 + $0x258] sm:$0xff] }
 0x1f4   : > { %v1318_v26 = vrot.slane %v7224_v29, 1  ;;  %5133 = vmatmul.mubr.f32.gmra.mxu0 %v7224_v29  ;;  %5159 = vmatpush3.msra.mxu1 %v1578_v18  ;;  %v1607_v54 = vrot.slane %v7224_v29, 2  ;;  %v1606_v61 = vsel %vm1589_vm3, %v1603_v52, %v1605_v10  ;;  %v1916_v33 = vld [vmem:[#allocation8 + $0x1d0] sm:$0xff]  ;;  %v1915_v18 = vld [vmem:[#allocation8 + $0x1c8] sm:$0xff]  ;;  %v1913_v29 = vld [vmem:[#allocation8 + $0x1b8] sm:$0xff] }
 0x1f5   : > { %5064 = vmatprep.mubr.msk.f32.mxu1 %vm6267_vm0, %v6266_v0  ;;  %5160 = vmatprep.subr.mxu1 %v6266_v0  ;;  %vm1234_vm2 = vcmp.ge.f32.partialorder %v1223_v57, 0.0  ;;  %v1245_v32 = vmul.f32 0.1, %v1223_v57  ;;  %v1932_v36 = vld [vmem:[#allocation8 + $0x250] sm:$0xff]  ;;  %v7285_v6 = vld [vmem:[#allocation8 + $0x2f8] sm:$0xff] }
 0x1f6   : > { %v1319_v58 = vsel %vm1300_vm12, %v1316_v14, %v1318_v26  ;;  %5135 = vmatprep.mubr.msk.f32.mxu0 %vm6267_vm0, %v6266_v0  ;;  %5161 = vmatpush3.msra.mxu1 %v1577_v11  ;;  %v1608_v62 = vsel %vm1589_vm3, %v1605_v10, %v1607_v54  ;;  %v1934_v14 = vld [vmem:[#allocation8 + $0x260] sm:$0xff]  ;;  %v1912_v11 = vld [vmem:[#allocation8 + $0x1b0] sm:$0xff] }
 0x1f7   : > { %5065 = vmatmul.mubr.f32.gmra.mxu1 %v1319_v58  ;;  %v1256_v28 = vsel %vm1234_vm2, %v1223_v57, %v1245_v32  ;;  %5162 = vmatprep.subr.mxu1 %v6266_v0  ;;  %v1914_v57 = vld [vmem:[#allocation8 + $0x1c0] sm:$0xff]  ;;  %v1911_v32 = vld [vmem:[#allocation8 + $0x1a8] sm:$0xff] }
 0x1f8   : > { %v1320_v43 = vrot.slane %v1256_v28, 1  ;;  %5136 = vmatmul.mubr.f32.gmra.mxu0 %v1256_v28  ;;  %5163 = vmatpush3.msra.mxu1 %v1576_v15  ;;  %v1609_v63 = vrot.slane %v1256_v28, 2  ;;  %v1930_v15 = vld [vmem:[#allocation8 + $0x240] sm:$0xff]  ;;  %v1929_v28 = vld [vmem:[#allocation8 + $0x238] sm:$0xff] }
 0x1f9   : > { %5067 = vmatprep.mubr.msk.f32.mxu1 %vm6267_vm0, %v6266_v0  ;;  %5164 = vmatprep.subr.mxu1 %v6266_v0  ;;  %v1910_v58 = vld [vmem:[#allocation8 + $0x1a0] sm:$0xff] }
 0x1fa   : > { %v1321_v50 = vsel %vm1300_vm12, %v1318_v26, %v1320_v43  ;;  %5165 = vmatpush3.msra.mxu1 %v1575_v16  ;;  %v1610_v1 = vsel %vm1589_vm3, %v1607_v54, %v1609_v63  ;;  %5205 = vmatprep.subr.mxu0 %v1936_v5  ;;  %v1931_v26 = vld [vmem:[#allocation8 + $0x248] sm:$0xff]  ;;  %v1909_v16 = vld [vmem:[#allocation8 + $0x198] sm:$0xff] }
 0x1fb   : > { %5068 = vmatmul.mubr.f32.gmra.mxu1 %v1321_v50  ;;  %5166 = vmatprep.subr.mxu1 %v6266_v0  ;;  %v1927_v50 = vld [vmem:[#allocation8 + $0x228] sm:$0xff] }
 0x1fc   : > { %5070 = vmatprep.mubr.msk.f32.mxu1 %vm6267_vm0, %v6266_v0  ;;  %5167 = vmatpush3.msra.mxu1 %v1574_v48  ;;  %v1908_v48 = vld [vmem:[#allocation8 + $0x190] sm:$0xff] }
 0x1fd   : > { %5168 = vmatprep.subr.mxu1 %v6266_v0  ;;  %5206 = vmatpush3.msra.mxu0 %v1936_v5 }
 0x1fe   : > { %5169 = vmatpush3.msra.mxu1 %v1573_v39  ;;  %5207 = vmatprep.subr.mxu0 %v1935_v9  ;;  %v1907_v39 = vld [vmem:[#allocation8 + $0x188] sm:$0xff] }
 0x1ff   : > { %5071 = vmatmul.mubr.f32.gmra.mxu1 %v1320_v43  ;;  %5250 = vmatprep.subr.mxu1 %v1921_v53  ;;  %v1928_v43 = vld [vmem:[#allocation8 + $0x230] sm:$0xff] }
 0x200   : > { %5170 = vmatprep.mubr.msk.f32.mxu1 %vm6267_vm0, %v6266_v0  ;;  %5208 = vmatpush3.msra.mxu0 %v1935_v9 }
 0x201   : > { %5209 = vmatprep.subr.mxu0 %v1934_v14 }
 0x202   : > { %5210 = vmatpush3.msra.mxu0 %v1934_v14 }
 0x203   : > { %5171 = vmatmul.mubr.f32.vlgmr.msra.gmra.mxu1 %v1592_v37  ;;  %5211 = vmatprep.subr.mxu0 %v1933_v17  ;;  %v1924_v37 = vld [vmem:[#allocation8 + $0x210] sm:$0xff] }
 0x204   : > { %5173 = vmatprep.mubr.msk.f32.mxu1 %vm6267_vm0, %v6266_v0  ;;  %5251 = vmatpush3.msra.mxu1 %v1921_v53 }
 0x205   : > { %5252 = vmatprep.subr.mxu1 %v1920_v49  ;;  %5212 = vmatpush3.msra.mxu0 %v1933_v17 }
 0x206   : > { %5253 = vmatpush3.msra.mxu1 %v1920_v49  ;;  %5213 = vmatprep.subr.mxu0 %v1932_v36 }
 0x207   : > { %5174 = vmatmul.mubr.f32.gmra.mxu1 %v1594_v27  ;;  %5254 = vmatprep.subr.mxu1 %v1919_v13  ;;  %v1922_v27 = vld [vmem:[#allocation8 + $0x200] sm:$0xff] }
 0x208   : > { %5176 = vmatprep.mubr.msk.f32.mxu1 %vm6267_vm0, %v6266_v0  ;;  %5255 = vmatpush3.msra.mxu1 %v1919_v13 }
 0x209   : > { %5256 = vmatprep.subr.mxu1 %v1918_v12  ;;  %5214 = vmatpush3.msra.mxu0 %v1932_v36 }
 0x20a   : > { %5257 = vmatpush3.msra.mxu1 %v1918_v12  ;;  %5215 = vmatprep.subr.mxu0 %v1931_v26 }
 0x20b   : > { %5177 = vmatmul.mubr.f32.gmra.mxu1 %v1596_v3  ;;  %5258 = vmatprep.subr.mxu1 %v1917_v25 }
 0x20c   : > { %5179 = vmatprep.mubr.msk.f32.mxu1 %vm6267_vm0, %v6266_v0  ;;  %5259 = vmatpush3.msra.mxu1 %v1917_v25 }
 0x20d   : > { %5260 = vmatprep.subr.mxu1 %v1916_v33  ;;  %5216 = vmatpush3.msra.mxu0 %v1931_v26 }
 0x20e   : > { %5261 = vmatpush3.msra.mxu1 %v1916_v33  ;;  %5217 = vmatprep.subr.mxu0 %v1930_v15 }
 0x20f   : > { %5180 = vmatmul.mubr.f32.gmra.mxu1 %v1598_v30  ;;  %5262 = vmatprep.subr.mxu1 %v1915_v18 }
 0x210   : > { %5182 = vmatprep.mubr.msk.f32.mxu1 %vm6267_vm0, %v6266_v0  ;;  %5263 = vmatpush3.msra.mxu1 %v1915_v18 }
 0x211   : > { %5264 = vmatprep.subr.mxu1 %v1914_v57  ;;  %5218 = vmatpush3.msra.mxu0 %v1930_v15 }
 0x212   : > { %5265 = vmatpush3.msra.mxu1 %v1914_v57  ;;  %5219 = vmatprep.subr.mxu0 %v1929_v28 }
 0x213   : > { %5183 = vmatmul.mubr.f32.gmra.mxu1 %v1600_v21  ;;  %5266 = vmatprep.subr.mxu1 %v1913_v29 }
 0x214   : > { %5185 = vmatprep.mubr.msk.f32.mxu1 %vm6267_vm0, %v6266_v0  ;;  %5267 = vmatpush3.msra.mxu1 %v1913_v29 }
 0x215   : > { %5268 = vmatprep.subr.mxu1 %v1912_v11  ;;  %5220 = vmatpush3.msra.mxu0 %v1929_v28 }
 0x216   : > { %5269 = vmatpush3.msra.mxu1 %v1912_v11  ;;  %5221 = vmatprep.subr.mxu0 %v1928_v43 }
 0x217   : > { %5186 = vmatmul.mubr.f32.gmra.mxu1 %v1602_v56  ;;  %5270 = vmatprep.subr.mxu1 %v1911_v32 }
 0x218   : > { %5188 = vmatprep.mubr.msk.f32.mxu1 %vm6267_vm0, %v6266_v0  ;;  %5271 = vmatpush3.msra.mxu1 %v1911_v32 }
 0x219   : > { %5272 = vmatprep.subr.mxu1 %v1910_v58  ;;  %5222 = vmatpush3.msra.mxu0 %v1928_v43 }
 0x21a   : > { %5273 = vmatpush3.msra.mxu1 %v1910_v58  ;;  %5223 = vmatprep.subr.mxu0 %v1927_v50 }
 0x21b   : > { %5189 = vmatmul.mubr.f32.gmra.mxu1 %v1604_v60  ;;  %5274 = vmatprep.subr.mxu1 %v1909_v16 }
 0x21c   : > { %5191 = vmatprep.mubr.msk.f32.mxu1 %vm6267_vm0, %v6266_v0  ;;  %5275 = vmatpush3.msra.mxu1 %v1909_v16 }
 0x21d   : > { %5276 = vmatprep.subr.mxu1 %v1908_v48  ;;  %5224 = vmatpush3.msra.mxu0 %v1927_v50 }
 0x21e   : > { %5277 = vmatpush3.msra.mxu1 %v1908_v48  ;;  %5225 = vmatprep.subr.mxu0 %v1926_v40 }
 0x21f   : > { %5192 = vmatmul.mubr.f32.gmra.mxu1 %v1606_v61  ;;  %5278 = vmatprep.subr.mxu1 %v1907_v39 }
 0x220   : > { %5194 = vmatprep.mubr.msk.f32.mxu1 %vm6267_vm0, %v6266_v0  ;;  %5279 = vmatpush3.msra.mxu1 %v1907_v39 }
 0x221   : > { %5226 = vmatpush3.msra.mxu0 %v1926_v40  ;;  %5280 = vmatprep.subr.mxu1 %v1906_v51 }
 0x222   : > { %5227 = vmatprep.subr.mxu0 %v1925_v20  ;;  %5281 = vmatpush3.msra.mxu1 %v1906_v51 }
 0x223   : > { %5195 = vmatmul.mubr.f32.gmra.mxu1 %v1608_v62  ;;  %5228 = vmatpush3.msra.mxu0 %v1925_v20 }
 0x224   : > { %5197 = vmatprep.mubr.msk.f32.mxu1 %vm6267_vm0, %v6266_v0  ;;  %5229 = vmatprep.subr.mxu0 %v1924_v37 }
 0x225   : > { %5230 = vmatpush3.msra.mxu0 %v1924_v37 }
 0x226   : > { %5231 = vmatprep.subr.mxu0 %v1923_v2 }
 0x227   : > { %5198 = vmatmul.mubr.f32.gmra.mxu1 %v1610_v1  ;;  %5232 = vmatpush3.msra.mxu0 %v1923_v2  ;;  %v1783_v2 = vrot.slane %v6669_v22, 6 }
 0x228   : > { %5200 = vmatprep.mubr.msk.f32.mxu1 %vm6267_vm0, %v6266_v0  ;;  %5233 = vmatprep.subr.mxu0 %v1922_v27 }
 0x229   : > { %5234 = vmatpush3.msra.mxu0 %v1922_v27  ;;  %v1784_v27 = vrot.slane %v6671_v23, 6 }
 0x22a   : > { %5297 = vmatprep.subr.mxu0 %v7285_v6 }
 0x22b   : > { %5201 = vmatmul.mubr.f32.gmra.mxu1 %v1609_v63 }
 0x290   : > { %v1519_v3 = vpop.f32.mrf.mxu0 }
 0x292   : > { %v5107_v59 = vpop.f32.mrf.mxu0 }
 0x294   : > { %v1524_v30 = vpop.f32.mrf.mxu0 }
 0x296   : > { %v5110_v47 = vpop.f32.mrf.mxu0 }
 0x297   : > { %v1399_v21 = vpop.f32.mrf.mxu1 }
 0x298   : > { %v7288_v52 = vpop.f32.mrf.mxu0  ;;  %v1520_v59 = vadd.f32 %v1519_v3, %v1399_v21 }
 0x299   : > { %v5042_v56 = vpop.f32.mrf.mxu1 }
 0x29a   : > { %v5113_v10 = vpop.f32.mrf.mxu0  ;;  %v7327_v56 = vld [vmem:[%s8311_s25] ss:$0 sm:$0xff]  ;;  %s8129_s25 = scalar_lea.hbm %s8314_s13, %s4339_s28 }
 0x29b   : > { %v1404_v60 = vpop.f32.mrf.mxu1  ;;  %v1828_v10 = vrot.slane %v6988_v7, 6 }
 0x29c   : > { %v7290_v54 = vpop.f32.mrf.mxu0 }
 0x29d   : > { %v5045_v61 = vpop.f32.mrf.mxu1 }
 0x29e   : > { %v5116_v63 = vpop.f32.mrf.mxu0  ;;  %v1829_v61 = vrot.slane %v6991_v8, 6 }
 0x29f   : > { %v1409_v62 = vpop.f32.mrf.mxu1 }
 0x2a0   : > { %v7292_v1 = vpop.f32.mrf.mxu0  ;;  %v1830_v3 = vsel %vm983_vm15, %v1828_v10, %v1829_v61 }
 0x2a1   : > { %v5048_v53 = vpop.f32.mrf.mxu1 }
 0x2a2   : > { %v5119_v46 = vpop.f32.mrf.mxu0  ;;  %v1785_v53 = vsel %vm983_vm15, %v1783_v2, %v1784_v27  ;;  %v1835_v2 = vrot.slane %v7021_v41, 6 }
 0x2a3   : > { %v7294_v49 = vpop.f32.mrf.mxu1 }
 0x2a4   : > { %v7296_v5 = vpop.f32.mrf.mxu0 }
 0x2a5   : > { %v5051_v13 = vpop.f32.mrf.mxu1 }
 0x2a6   : > { %v5122_v9 = vpop.f32.mrf.mxu0  ;;  %v5957_v13 = vld [vmem:[%s6617_s24] sm:$0xff] }
 0x2a7   : > { %v7298_v12 = vpop.f32.mrf.mxu1  ;;  %v1786_v22 = vrot.slane %v5957_v13, 6  ;;  %v1525_v9 = vadd.f32 %v1524_v30, %v1404_v60  ;;  %v1530_v30 = vadd.f32 %v7288_v52, %v1409_v62 }
 0x2a8   : > { %v7300_v25 = vpop.f32.mrf.mxu0 }
 0x2a9   : > { %v5054_v14 = vpop.f32.mrf.mxu1 }
 0x2aa   : > { %v5125_v33 = vpop.f32.mrf.mxu0  ;;  %v1831_v14 = vrot.slane %v7003_v35, 6 }
 0x2ab   : > { %v7302_v17 = vpop.f32.mrf.mxu1 }
 0x2ac   : > { %v7304_v18 = vpop.f32.mrf.mxu0 }
 0x2ad   : > { %v5057_v36 = vpop.f32.mrf.mxu1 }
 0x2ae   : > { %v5128_v57 = vpop.f32.mrf.mxu0  ;;  %v1787_v36 = vsel %vm983_vm15, %v1784_v27, %v1786_v22 }
 0x2af   : > { %v7306_v29 = vpop.f32.mrf.mxu1 }
 0x2b0   : > { %v7308_v11 = vpop.f32.mrf.mxu0 }
 0x2b1   : > { %v5060_v26 = vpop.f32.mrf.mxu1 }
 0x2b2   : > { %v5131_v32 = vpop.f32.mrf.mxu0  ;;  %v5958_v26 = vld [vmem:[%s6617_s24 + $0x8] sm:$0xff] }
 0x2b3   : > { %v7310_v15 = vpop.f32.mrf.mxu1  ;;  %v1788_v32 = vrot.slane %v5958_v26, 6 }
 0x2b4   : > { %v7312_v58 = vpop.f32.mrf.mxu0 }
 0x2b5   : > { %v5063_v28 = vpop.f32.mrf.mxu1 }
 0x2b6   : > { %v5134_v16 = vpop.f32.mrf.mxu0  ;;  %v1833_v28 = vrot.slane %v7018_v38, 6 }
 0x2b7   : > { %v7314_v43 = vpop.f32.mrf.mxu1 }
 0x2b8   : > { %v7316_v48 = vpop.f32.mrf.mxu0  ;;  %v1834_v52 = vsel %vm983_vm15, %v1831_v14, %v1833_v28 }
 0x2b9   : > { %v5066_v50 = vpop.f32.mrf.mxu1 }
 0x2ba   : > { %v5137_v39 = vpop.f32.mrf.mxu0  ;;  %v1832_v50 = vsel %vm983_vm15, %v1829_v61, %v1831_v14  ;;  %v1535_v61 = vadd.f32 %v7290_v54, %v7294_v49 }
 0x2bb   : > { %v7318_v40 = vpop.f32.mrf.mxu1 }
 0x2bd   : > { %v5069_v51 = vpop.f32.mrf.mxu1 }
 0x2be   : > { %v5959_v51 = vld [vmem:[%s6617_s24 + $0x10] sm:$0xff] }
 0x2bf   : > { %v7320_v20 = vpop.f32.mrf.mxu1 }
 0x2c1   : > { %v5072_v37 = vpop.f32.mrf.mxu1 }
 0x2c2   : > { %v1790_v37 = vrot.slane %v5959_v51, 6 }
 0x2c3   : > { %v1688_v47 = vpop.f32.mrf.mxu1 }
 0x2c4   : > { %v1742_v63 = vadd.f32 %v1688_v47, %v1520_v59  ;;  %v5960_v59 = vld [vmem:[%s6617_s24 + $0x18] sm:$0xff] }
 0x2c5   : > { %v5172_v46 = vpop.f32.mrf.mxu1  ;;  %v1792_v47 = vrot.slane %v5960_v59, 6  ;;  %v1839_v59 = vrot.slane %v7057_v19, 6 }
 0x2c6   : > { %v1760_v23 = vadd.f32 %v7327_v56, %v1742_v63  ;;  %v1837_v46 = vrot.slane %v7038_v24, 6 }
 0x2c7   : > { %v1693_v21 = vpop.f32.mrf.mxu1 }
 0x2c8   : > { %v1817_v7 = vadd.f32 %v1785_v53, %v1760_v23  ;;  %v1743_v33 = vadd.f32 %v1693_v21, %v1525_v9  ;;  %v1789_v53 = vsel %vm983_vm15, %v1786_v22, %v1788_v32  ;;  %v1791_v21 = vsel %vm983_vm15, %v1788_v32, %v1790_v37 }
 0x2c9   : > { %v5175_v57 = vpop.f32.mrf.mxu1  ;;  %v1793_v22 = vsel %vm983_vm15, %v1790_v37, %v1792_v47  ;;  %v1540_v32 = vadd.f32 %v7292_v1, %v7298_v12 }
 0x2ca   : > { %v1862_v60 = vmul.f32 %v1830_v3, %v1817_v7  ;;  %v1761_v16 = vadd.f32 %v7327_v56, %v1743_v33  ;;  %v1836_v7 = vsel %vm983_vm15, %v1833_v28, %v1835_v2  ;;  %v5961_v57 = vld [vmem:[%s6617_s24 + $0x20] sm:$0xff] }
 0x2cb   : > { %v1698_v39 = vpop.f32.mrf.mxu1  ;;  %v1794_v26 = vrot.slane %v5961_v57, 6 }
 0x2cc   : > { %v1818_v27 = vadd.f32 %v1787_v36, %v1761_v16  ;;  %v1744_v10 = vadd.f32 %v1698_v39, %v1530_v30  ;;  %vm1873_vm6 = vcmp.ge.f32.partialorder %v1862_v60, 0.0  ;;  %v1884_v63 = vmul.f32 0.1, %v1862_v60 }
 0x2cd   : > { %v5178_v62 = vpop.f32.mrf.mxu1  ;;  %v1838_v36 = vsel %vm983_vm15, %v1835_v2, %v1837_v46  ;;  %v2969_v16 = vrot.slane %v1862_v60, 4 }
 0x2ce   : > { %v1863_v13 = vmul.f32 %v1832_v50, %v1818_v27  ;;  %v1762_v9 = vadd.f32 %v7327_v56, %v1744_v10  ;;  %v7351_v23 = vsel %vm1873_vm6, %v1862_v60, %v1884_v63 }
 0x2cf   : > { %v1703_v3 = vpop.f32.mrf.mxu1  ;;  %5282 = vmatprep.mubr.f32.mxu1 %v7351_v23  ;;  %v1950_v51 = vrot.slane %v7351_v23, 3 }
 0x2d0   : > { %v1819_v14 = vadd.f32 %v1789_v53, %v1762_v9  ;;  %v1745_v33 = vadd.f32 %v1703_v3, %v1535_v61  ;;  %vm1874_vm8 = vcmp.ge.f32.partialorder %v1863_v13, 0.0  ;;  %v1885_v54 = vmul.f32 0.1, %v1863_v13 }
 0x2d1   : > { %v5181_v49 = vpop.f32.mrf.mxu1  ;;  %v2970_v30 = vrot.slane %v1863_v13, 4  ;;  %v1795_v53 = vsel %vm983_vm15, %v1792_v47, %v1794_v26  ;;  %v1841_v47 = vrot.slane %v7082_v4, 6 }
 0x2d2   : > { %v1864_v28 = vmul.f32 %v1834_v52, %v1819_v14  ;;  %v1763_v50 = vadd.f32 %v7327_v56, %v1745_v33  ;;  %v7362_v39 = vsel %vm1874_vm8, %v1863_v13, %v1885_v54  ;;  %v5962_v52 = vld [vmem:[%s6617_s24 + $0x28] sm:$0xff]  ;;  %v1545_v13 = vadd.f32 %v7296_v5, %v7302_v17 }
 0x2d3   : > { %v1708_v37 = vpop.f32.mrf.mxu1  ;;  %5283 = vmatmul.mubr.f32.vlgmr.msra.gmra.mxu1 %v7362_v39  ;;  %v1951_v2 = vrot.slane %v7362_v39, 3  ;;  %v7369_v60 = vsel %vm812_vm5, %v2969_v16, %v2970_v30  ;;  %v1796_v62 = vrot.slane %v5962_v52, 6  ;;  %v1840_v33 = vsel %vm983_vm15, %v1837_v46, %v1839_v59 }
 0x2d4   : > { %v1820_v27 = vadd.f32 %v1791_v21, %v1763_v50  ;;  %v1746_v1 = vadd.f32 %v1708_v37, %v1540_v32  ;;  %vm1875_vm9 = vcmp.ge.f32.partialorder %v1864_v28, 0.0  ;;  %v1886_v12 = vmul.f32 0.1, %v1864_v28  ;;  %v2225_v50 = vld [vmem:[#allocation8 + $0x2f0] sm:$0xff] }
 0x2d5   : > { %v5184_v10 = vpop.f32.mrf.mxu1  ;;  %v1952_v63 = vsel %vm1949_vm7, %v1950_v51, %v1951_v2  ;;  %v2972_v61 = vrot.slane %v1864_v28, 4  ;;  %v1797_v32 = vsel %vm983_vm15, %v1794_v26, %v1796_v62  ;;  %v1550_v37 = vadd.f32 %v7300_v25, %v7306_v29 }
 0x2d6   : > { %v1865_v9 = vmul.f32 %v1836_v7, %v1820_v27  ;;  %v1764_v3 = vadd.f32 %v7327_v56, %v1746_v1  ;;  %5235 = vmatprep.mubr.f32.mxu0 %v1952_v63  ;;  %v7377_v21 = vsel %vm1875_vm9, %v1864_v28, %v1886_v12  ;;  %v7389_v28 = vld [vmem:[%s6617_s24 + $0x30] sm:$0xff]  ;;  %v1843_v12 = vrot.slane %v7113_v34, 6  ;;  %v2224_v10 = vld [vmem:[#allocation8 + $0x2e8] sm:$0xff] }
 0x2d7   : > { %v1713_v14 = vpop.f32.mrf.mxu1  ;;  %v1953_v54 = vrot.slane %v7377_v21, 3  ;;  %5285 = vmatprep.mubr.f32.mxu1 %v7377_v21  ;;  %v7384_v49 = vsel %vm812_vm5, %v2970_v30, %v2972_v61  ;;  %v1798_v46 = vrot.slane %v7389_v28, 6 }
 0x2d8   : > { %v1821_v5 = vadd.f32 %v1793_v22, %v1764_v3  ;;  %v1747_v17 = vadd.f32 %v1713_v14, %v1545_v13  ;;  %vm1876_vm10 = vcmp.ge.f32.partialorder %v1865_v9, 0.0  ;;  %v1887_v7 = vmul.f32 0.1, %v1865_v9 }
 0x2d9   : > { %v5187_v57 = vpop.f32.mrf.mxu1  ;;  %v1954_v16 = vsel %vm1949_vm7, %v1951_v2, %v1953_v54  ;;  %v2974_v51 = vrot.slane %v1865_v9, 4  ;;  %v1842_v2 = vsel %vm983_vm15, %v1839_v59, %v1841_v47  ;;  %v1555_v59 = vadd.f32 %v7304_v18, %v7310_v15 }
 0x2da   : > { %v7394_v30 = vmul.f32 %v1838_v36, %v1821_v5  ;;  %v1765_v22 = vadd.f32 %v7327_v56, %v1747_v17  ;;  %5236 = vmatmul.mubr.f32.vlgmr.msra.gmra.mxu0 %v1954_v16  ;;  %v7397_v27 = vsel %vm1876_vm10, %v1865_v9, %v1887_v7  ;;  %v2223_v9 = vld [vmem:[#allocation8 + $0x2e0] sm:$0xff]  ;;  %v1844_v15 = vsel %vm983_vm15, %v1841_v47, %v1843_v12  ;;  %v2222_v17 = vld [vmem:[#allocation8 + $0x2d8] sm:$0xff] }
 0x2db   : > { %v1718_v1 = vpop.f32.mrf.mxu1  ;;  %v1955_v26 = vrot.slane %v7397_v27, 3  ;;  %5286 = vmatmul.mubr.f32.gmra.mxu1 %v7397_v27  ;;  %5298 = vmatpush3.msra.mxu0 %v7285_v6  ;;  %v7405_v25 = vsel %vm812_vm5, %v2972_v61, %v2974_v51  ;;  %v1799_v6 = vsel %vm983_vm15, %v1796_v62, %v1798_v46  ;;  %v5964_v62 = vld [vmem:[%s6617_s24 + $0x38] sm:$0xff]  ;;  %v1560_v47 = vadd.f32 %v7308_v11, %v7314_v43  ;;  %s4105_s24 = scalar_lea.sflag [#allocation4], %s6611_s19 }
 0x2dc   : > { %v1822_v29 = vadd.f32 %v1795_v53, %v1765_v22  ;;  %v1748_v36 = vadd.f32 %v1718_v1, %v1550_v37  ;;  %vm1877_vm11 = vcmp.ge.f32.partialorder %v7394_v30, 0.0  ;;  %v1888_v63 = vmul.f32 0.1, %v7394_v30  ;;  %5299 = vmatprep.subr.mxu0 %v2225_v50 }
 0x2dd   : > { %v5190_v52 = vpop.f32.mrf.mxu1  ;;  %v1956_v13 = vsel %vm1949_vm7, %v1953_v54, %v1955_v26  ;;  %5300 = vmatpush3.msra.mxu0 %v2225_v50  ;;  %v2976_v61 = vrot.slane %v7394_v30, 4  ;;  %v1800_v5 = vrot.slane %v5964_v62, 6  ;;  %v1845_v37 = vrot.slane %v7138_v42, 6 }
 0x2de   : > { %v7414_v53 = vmul.f32 %v1840_v33, %v1822_v29  ;;  %v1766_v3 = vadd.f32 %v7327_v56, %v1748_v36  ;;  %5238 = vmatprep.mubr.f32.mxu0 %v1956_v13  ;;  %v7418_v14 = vsel %vm1877_vm11, %v7394_v30, %v1888_v63  ;;  %5301 = vmatprep.subr.mxu0 %v2224_v10  ;;  %v2221_v30 = vld [vmem:[#allocation8 + $0x2d0] sm:$0xff]  ;;  %v2220_v29 = vld [vmem:[#allocation8 + $0x2c8] sm:$0xff] }
 0x2df   : > { %v1723_v18 = vpop.f32.mrf.mxu1  ;;  %v1957_v54 = vrot.slane %v7418_v14, 3  ;;  %5288 = vmatprep.mubr.f32.mxu1 %v7418_v14  ;;  %5302 = vmatpush3.msra.mxu0 %v2224_v10  ;;  %v7425_v33 = vsel %vm812_vm5, %v2974_v51, %v2976_v61  ;;  %v1801_v11 = vsel %vm983_vm15, %v1798_v46, %v1800_v5  ;;  %v1565_v46 = vadd.f32 %v7312_v58, %v7318_v40 }
 0x2e0   : > { %v1823_v7 = vadd.f32 %v1797_v32, %v1766_v3  ;;  %v1749_v57 = vadd.f32 %v1723_v18, %v1555_v59  ;;  %vm1878_vm13 = vcmp.ge.f32.partialorder %v7414_v53, 0.0  ;;  %v1889_v16 = vmul.f32 0.1, %v7414_v53  ;;  %5303 = vmatprep.subr.mxu0 %v2223_v9 }
 0x2e1   : > { %v5193_v28 = vpop.f32.mrf.mxu1  ;;  %v1958_v50 = vsel %vm1949_vm7, %v1955_v26, %v1957_v54  ;;  %5304 = vmatpush3.msra.mxu0 %v2223_v9  ;;  %v2978_v51 = vrot.slane %v7414_v53, 4  ;;  %v1802_v26 = vrot.slane %v6786_v44, 6  ;;  %v1846_v52 = vsel %vm983_vm15, %v1843_v12, %v1845_v37  ;;  %v2219_v9 = vld [vmem:[#allocation8 + $0x2c0] sm:$0xff] }
 0x2e2   : > { %v7434_v22 = vmul.f32 %v1842_v2, %v1823_v7  ;;  %v1767_v32 = vadd.f32 %v7327_v56, %v1749_v57  ;;  %5239 = vmatmul.mubr.f32.gmra.mxu0 %v1958_v50  ;;  %v7438_v1 = vsel %vm1878_vm13, %v7414_v53, %v1889_v16  ;;  %5305 = vmatprep.subr.mxu0 %v2222_v17  ;;  %v1847_v40 = vrot.slane %v7167_v31, 6  ;;  %v2217_v28 = vld [vmem:[#allocation8 + $0x2b0] sm:$0xff] }
 0x2e3   : > { %v1728_v10 = vpop.f32.mrf.mxu1  ;;  %v1959_v43 = vrot.slane %v7438_v1, 3  ;;  %5289 = vmatmul.mubr.f32.gmra.mxu1 %v7438_v1  ;;  %5306 = vmatpush3.msra.mxu0 %v2222_v17  ;;  %v7445_v2 = vsel %vm812_vm5, %v2976_v61, %v2978_v51  ;;  %v1803_v58 = vsel %vm983_vm15, %v1800_v5, %v1802_v26  ;;  %v1570_v57 = vadd.f32 %v7316_v48, %v7320_v20 }
 0x2e4   : > { %v1824_v36 = vadd.f32 %v1799_v6, %v1767_v32  ;;  %v1750_v63 = vadd.f32 %v1728_v10, %v1560_v47  ;;  %vm1879_vm14 = vcmp.ge.f32.partialorder %v7434_v22, 0.0  ;;  %v1890_v59 = vmul.f32 0.1, %v7434_v22  ;;  %5307 = vmatprep.subr.mxu0 %v2221_v30 }
 0x2e5   : > { %v5196_v13 = vpop.f32.mrf.mxu1  ;;  %v1960_v44 = vsel %vm1949_vm7, %v1957_v54, %v1959_v43  ;;  %5308 = vmatpush3.msra.mxu0 %v2221_v30  ;;  %v2980_v61 = vrot.slane %v7434_v22, 4  ;;  %v2218_v54 = vld [vmem:[#allocation8 + $0x2b8] sm:$0xff]  ;;  %v1804_v47 = vrot.slane %v6801_v55, 6  ;;  %v1848_v32 = vsel %vm983_vm15, %v1845_v37, %v1847_v40  ;;  %v2216_v55 = vld [vmem:[#allocation8 + $0x2a8] sm:$0xff] }
 0x2e6   : > { %v1869_v53 = vmul.f32 %v1844_v15, %v1824_v36  ;;  %v1768_v6 = vadd.f32 %v7327_v56, %v1750_v63  ;;  %5241 = vmatprep.mubr.f32.mxu0 %v1960_v44  ;;  %v7456_v3 = vsel %vm1879_vm14, %v7434_v22, %v1890_v59  ;;  %5309 = vmatprep.subr.mxu0 %v2220_v29  ;;  %v1849_v48 = vrot.slane %v7185_v45, 6  ;;  %v2215_v45 = vld [vmem:[#allocation8 + $0x2a0] sm:$0xff] }
 0x2e7   : > { %v1733_v18 = vpop.f32.mrf.mxu1  ;;  %v1961_v12 = vrot.slane %v7456_v3, 3  ;;  %5291 = vmatprep.mubr.f32.mxu1 %v7456_v3  ;;  %5310 = vmatpush3.msra.mxu0 %v2220_v29  ;;  %v7463_v15 = vsel %vm812_vm5, %v2978_v51, %v2980_v61  ;;  %v1805_v63 = vsel %vm983_vm15, %v1802_v26, %v1804_v47  ;;  %v2214_v26 = vld [vmem:[#allocation8 + $0x298] sm:$0xff] }
 0x2e8   : > { %v1825_v62 = vadd.f32 %v1801_v11, %v1768_v6  ;;  %v1751_v17 = vadd.f32 %v1733_v18, %v1565_v46  ;;  %vm1880_vm1 = vcmp.ge.f32.partialorder %v1869_v53, 0.0  ;;  %v1891_v7 = vmul.f32 0.1, %v1869_v53  ;;  %5311 = vmatprep.subr.mxu0 %v2219_v9 }
 0x2e9   : > { %v5199_v5 = vpop.f32.mrf.mxu1  ;;  %v1962_v16 = vsel %vm1949_vm7, %v1959_v43, %v1961_v12  ;;  %5312 = vmatpush3.msra.mxu0 %v2219_v9  ;;  %v2982_v50 = vrot.slane %v1869_v53, 4  ;;  %v1850_v9 = vsel %vm983_vm15, %v1847_v40, %v1849_v48  ;;  %v2213_v40 = vld [vmem:[#allocation8 + $0x290] sm:$0xff] }
 0x2ea   : > { %v1870_v30 = vmul.f32 %v1846_v52, %v1825_v62  ;;  %v1769_v51 = vadd.f32 %v7327_v56, %v1751_v17  ;;  %5242 = vmatmul.mubr.f32.gmra.mxu0 %v1962_v16  ;;  %v7470_v22 = vsel %vm1880_vm1, %v1869_v53, %v1891_v7  ;;  %5313 = vmatprep.subr.mxu0 %v2218_v54  ;;  %v2212_v7 = vld [vmem:[#allocation8 + $0x288] sm:$0xff]  ;;  %v2211_v16 = vld [vmem:[#allocation8 + $0x280] sm:$0xff] }
 0x2eb   : > { %v1738_v10 = vpop.f32.mrf.mxu1  ;;  %v1963_v20 = vrot.slane %v7470_v22, 3  ;;  %5292 = vmatmul.mubr.f32.gmra.mxu1 %v7470_v22  ;;  %5314 = vmatpush3.msra.mxu0 %v2218_v54  ;;  %v7477_v11 = vsel %vm812_vm5, %v2980_v61, %v2982_v50 }
 0x2ec   : > { %v1826_v43 = vadd.f32 %v1803_v58, %v1769_v51  ;;  %v1752_v29 = vadd.f32 %v1738_v10, %v1570_v57  ;;  %vm1881_vm2 = vcmp.ge.f32.partialorder %v1870_v30, 0.0  ;;  %v1892_v36 = vmul.f32 0.1, %v1870_v30  ;;  %5315 = vmatprep.subr.mxu0 %v2217_v28 }
 0x2ed   : > { %v5202_v37 = vpop.f32.mrf.mxu1  ;;  %v1964_v59 = vsel %vm1949_vm7, %v1961_v12, %v1963_v20  ;;  %5316 = vmatpush3.msra.mxu0 %v2217_v28  ;;  %v2984_v46 = vrot.slane %v1870_v30, 4  ;;  %v2228_v28 = vrot.slane %v7362_v39, 6  ;;  %v2230_v51 = vrot.slane %v7377_v21, 6 }
 0x2ee   : > { %v7481_v52 = vmul.f32 %v1848_v32, %v1826_v43  ;;  %v1770_v13 = vadd.f32 %v7327_v56, %v1752_v29  ;;  %5244 = vmatprep.mubr.f32.mxu0 %v1964_v59  ;;  %v7484_v44 = vsel %vm1881_vm2, %v1870_v30, %v1892_v36  ;;  %5317 = vmatprep.subr.mxu0 %v2216_v55  ;;  %v2227_v30 = vrot.slane %v7351_v23, 6 }
 0x2ef   : > { %v1965_v61 = vrot.slane %v7484_v44, 3  ;;  %5294 = vmatprep.mubr.f32.mxu1 %v7484_v44  ;;  %5318 = vmatpush3.msra.mxu0 %v2216_v55  ;;  %v7490_v53 = vsel %vm812_vm5, %v2982_v50, %v2984_v46  ;;  %v2232_v10 = vrot.slane %v7397_v27, 6  ;;  %v2231_v39 = vsel %vm983_vm15, %v2228_v28, %v2230_v51 }
 0x2f0   : > { %v1827_v6 = vadd.f32 %v1805_v63, %v1770_v13  ;;  %vm1882_vm6 = vcmp.ge.f32.partialorder %v7481_v52, 0.0  ;;  %v1893_v56 = vmul.f32 0.1, %v7481_v52  ;;  %5319 = vmatprep.subr.mxu0 %v2215_v45  ;;  %v2986_v18 = vrot.slane %v7481_v52, 4  ;;  %v2483_v13 = vld [vmem:[#allocation10 + $0x1e8] sm:$0xff] }
 0x2f1   : > { %v1966_v58 = vsel %vm1949_vm7, %v1963_v20, %v1965_v61  ;;  %5320 = vmatpush3.msra.mxu0 %v2215_v45  ;;  %v2229_v48 = vsel %vm983_vm15, %v2227_v30, %v2228_v28  ;;  %v2234_v20 = vrot.slane %v7418_v14, 6  ;;  %v2236_v55 = vrot.slane %v7438_v1, 6  ;;  %v2485_v45 = vld [vmem:[#allocation10 + $0x1f8] sm:$0xff]  ;;  %v2492_v30 = vld [vmem:[#allocation10 + $0x230] sm:$0xff] }
 0x2f2   : > { %v1872_v12 = vmul.f32 %v1850_v9, %v1827_v6  ;;  %5245 = vmatmul.mubr.f32.gmra.mxu0 %v1966_v58  ;;  %v1904_v54 = vsel %vm1882_vm6, %v7481_v52, %v1893_v56  ;;  %5321 = vmatprep.subr.mxu0 %v2214_v26  ;;  %v7500_v62 = vsel %vm812_vm5, %v2984_v46, %v2986_v18  ;;  %v2238_v21 = vrot.slane %v7456_v3, 6  ;;  %v2484_v46 = vld [vmem:[#allocation10 + $0x1f0] sm:$0xff]  ;;  %v2482_v9 = vld [vmem:[#allocation10 + $0x1e0] sm:$0xff]  ;;  %v2499_v6 = vld [vmem:[#allocation10 + $0x268] sm:$0xff] }
 0x2f3   : > { %v1967_v17 = vrot.slane %v1904_v54, 3  ;;  %5295 = vmatmul.mubr.f32.gmra.mxu1 %v1904_v54  ;;  %5322 = vmatpush3.msra.mxu0 %v2214_v26  ;;  %v2233_v23 = vsel %vm983_vm15, %v2230_v51, %v2232_v10  ;;  %v2235_v43 = vsel %vm983_vm15, %v2232_v10, %v2234_v20  ;;  %v2240_v27 = vrot.slane %v7470_v22, 6  ;;  %v2481_v26 = vld [vmem:[#allocation10 + $0x1d8] sm:$0xff]  ;;  %v2480_v56 = vld [vmem:[#allocation10 + $0x1d0] sm:$0xff]  ;;  %v2498_v58 = vld [vmem:[#allocation10 + $0x260] sm:$0xff] }
 0x2f4   : > { %v1894_v57 = vmul.f32 0.1, %v1872_v12  ;;  %5323 = vmatprep.subr.mxu0 %v2213_v40  ;;  %vm1883_vm8 = vcmp.ge.f32.partialorder %v1872_v12, 0.0  ;;  %v2237_v29 = vsel %vm983_vm15, %v2234_v20, %v2236_v55  ;;  %v2242_v14 = vrot.slane %v7484_v44, 6  ;;  %v2501_v44 = vld [vmem:[#allocation10 + $0x278] sm:$0xff]  ;;  %v2472_v10 = vld [vmem:[#allocation10 + $0x190] sm:$0xff] }
 0x2f5   : > { %v1968_v5 = vsel %vm1949_vm7, %v1965_v61, %v1967_v17  ;;  %5324 = vmatpush3.msra.mxu0 %v2213_v40  ;;  %v2239_v36 = vsel %vm983_vm15, %v2236_v55, %v2238_v21  ;;  %v2244_v63 = vrot.slane %v1904_v54, 6  ;;  %v2241_v1 = vsel %vm983_vm15, %v2238_v21, %v2240_v27  ;;  %5344 = vmatprep.subr.mxu1 %v2501_v44  ;;  %v2500_v61 = vld [vmem:[#allocation10 + $0x270] sm:$0xff]  ;;  %v2479_v40 = vld [vmem:[#allocation10 + $0x1c8] sm:$0xff]  ;;  %v2478_v54 = vld [vmem:[#allocation10 + $0x1c0] sm:$0xff] }
 0x2f6   : > { %5247 = vmatprep.mubr.f32.mxu0 %v1968_v5  ;;  %v1905_v47 = vsel %vm1883_vm8, %v1872_v12, %v1894_v57  ;;  %5325 = vmatprep.subr.mxu0 %v2212_v7  ;;  %v2243_v37 = vsel %vm983_vm15, %v2240_v27, %v2242_v14  ;;  %v2497_v12 = vld [vmem:[#allocation10 + $0x258] sm:$0xff]  ;;  %v2495_v57 = vld [vmem:[#allocation10 + $0x248] sm:$0xff]  ;;  %v2476_v5 = vld [vmem:[#allocation10 + $0x1b0] sm:$0xff] }
 0x2f7   : > { %v1969_v50 = vrot.slane %v1905_v47, 3  ;;  %5326 = vmatpush3.msra.mxu0 %v2212_v7  ;;  %v2246_v3 = vrot.slane %v1905_v47, 6  ;;  %v2245_v59 = vsel %vm983_vm15, %v2242_v14, %v2244_v63  ;;  %5345 = vmatpush3.msra.mxu1 %v2501_v44  ;;  %v2477_v7 = vld [vmem:[#allocation10 + $0x1b8] sm:$0xff]  ;;  %v2475_v47 = vld [vmem:[#allocation10 + $0x1a8] sm:$0xff]  ;;  %v2470_v55 = vld [vmem:[#allocation10 + $0x180] sm:$0xff] }
 0x2f8   : > { %5327 = vmatprep.subr.mxu0 %v2211_v16  ;;  %5346 = vmatprep.subr.mxu1 %v2500_v61  ;;  %v2493_v28 = vld [vmem:[#allocation10 + $0x238] sm:$0xff]  ;;  %v2471_v20 = vld [vmem:[#allocation10 + $0x188] sm:$0xff] }
 0x2f9   : > { %v1970_v32 = vsel %vm1949_vm7, %v1967_v17, %v1969_v50  ;;  %5328 = vmatpush3.msra.mxu0 %v2211_v16  ;;  %v2247_v22 = vsel %vm983_vm15, %v2244_v63, %v2246_v3  ;;  %5347 = vmatpush3.msra.mxu1 %v2500_v61  ;;  %v2496_v17 = vld [vmem:[#allocation10 + $0x250] sm:$0xff]  ;;  %v2494_v16 = vld [vmem:[#allocation10 + $0x240] sm:$0xff]  ;;  %v2473_v51 = vld [vmem:[#allocation10 + $0x198] sm:$0xff]  ;;  %v2404_v61 = vrot.slane %v7018_v38, 1 }
 0x2fa   : > { %5248 = vmatmul.mubr.f32.gmra.mxu0 %v1970_v32  ;;  %5391 = vmatprep.subr.mxu0 %v2485_v45  ;;  %v2474_v50 = vld [vmem:[#allocation10 + $0x1a0] sm:$0xff]  ;;  %v2491_v32 = vld [vmem:[#allocation10 + $0x228] sm:$0xff]  ;;  %v7524_v27 = vld [vmem:[#allocation10 + $0x2f8] sm:$0xff] }
 0x2fb   : > { %5329 = vmatprep.mubr.f32.mxu0 %v2229_v48  ;;  %5348 = vmatprep.subr.mxu1 %v2499_v6  ;;  %v2490_v48 = vld [vmem:[#allocation10 + $0x220] sm:$0xff]  ;;  %v2487_v21 = vld [vmem:[#allocation10 + $0x208] sm:$0xff] }
 0x2fc   : > { %5349 = vmatpush3.msra.mxu1 %v2499_v6 }
 0x2fd   : > { %5350 = vmatprep.subr.mxu1 %v2498_v58 }
 0x2fe   : > { %5330 = vmatmul.mubr.f32.vlgmr.msra.gmra.mxu0 %v2231_v39  ;;  %5351 = vmatpush3.msra.mxu1 %v2498_v58  ;;  %v2489_v39 = vld [vmem:[#allocation10 + $0x218] sm:$0xff] }
 0x2ff   : > { %5332 = vmatprep.mubr.f32.mxu0 %v2233_v23  ;;  %5392 = vmatpush3.msra.mxu0 %v2485_v45  ;;  %v2488_v23 = vld [vmem:[#allocation10 + $0x210] sm:$0xff] }
 0x300   : > { %5393 = vmatprep.subr.mxu0 %v2484_v46  ;;  %5352 = vmatprep.subr.mxu1 %v2497_v12 }
 0x301   : > { %5394 = vmatpush3.msra.mxu0 %v2484_v46  ;;  %5353 = vmatpush3.msra.mxu1 %v2497_v12  ;;  %v2401_v12 = vrot.slane %v6991_v8, 1 }
 0x302   : > { %5333 = vmatmul.mubr.f32.gmra.mxu0 %v2235_v43  ;;  %5395 = vmatprep.subr.mxu0 %v2483_v13  ;;  %v2486_v43 = vld [vmem:[#allocation10 + $0x200] sm:$0xff] }
 0x303   : > { %5335 = vmatprep.mubr.f32.mxu0 %v2237_v29  ;;  %5396 = vmatpush3.msra.mxu0 %v2483_v13 }
 0x304   : > { %5397 = vmatprep.subr.mxu0 %v2482_v9  ;;  %5354 = vmatprep.subr.mxu1 %v2496_v17 }
 0x305   : > { %5398 = vmatpush3.msra.mxu0 %v2482_v9  ;;  %5355 = vmatpush3.msra.mxu1 %v2496_v17  ;;  %v2402_v9 = vrot.slane %v7003_v35, 1 }
 0x306   : > { %5336 = vmatmul.mubr.f32.gmra.mxu0 %v2239_v36  ;;  %5399 = vmatprep.subr.mxu0 %v2481_v26 }
 0x307   : > { %5338 = vmatprep.mubr.f32.mxu0 %v2241_v1  ;;  %5400 = vmatpush3.msra.mxu0 %v2481_v26 }
 0x308   : > { %5401 = vmatprep.subr.mxu0 %v2480_v56  ;;  %5356 = vmatprep.subr.mxu1 %v2495_v57 }
 0x309   : > { %5402 = vmatpush3.msra.mxu0 %v2480_v56  ;;  %5357 = vmatpush3.msra.mxu1 %v2495_v57 }
 0x30a   : > { %5339 = vmatmul.mubr.f32.gmra.mxu0 %v2243_v37  ;;  %5403 = vmatprep.subr.mxu0 %v2479_v40 }
 0x30b   : > { %5341 = vmatprep.mubr.f32.mxu0 %v2245_v59  ;;  %5404 = vmatpush3.msra.mxu0 %v2479_v40  ;;  %v7536_v40 = vld [vmem:[%s8302_s2 + $0x1] ss:$0 sm:$0xff] }
 0x30c   : > { %5405 = vmatprep.subr.mxu0 %v2478_v54  ;;  %5358 = vmatprep.subr.mxu1 %v2494_v16 }
 0x30d   : > { %5406 = vmatpush3.msra.mxu0 %v2478_v54  ;;  %5359 = vmatpush3.msra.mxu1 %v2494_v16  ;;  %v2408_v16 = vrot.slane %v7038_v24, 1 }
 0x30e   : > { %5342 = vmatmul.mubr.f32.gmra.mxu0 %v2247_v22  ;;  %5407 = vmatprep.subr.mxu0 %v2477_v7 }
 0x30f   : > { %5408 = vmatpush3.msra.mxu0 %v2477_v7  ;;  %5360 = vmatprep.subr.mxu1 %v2493_v28  ;;  %v2405_v7 = vsel %vm1300_vm12, %v2402_v9, %v2404_v61 }
 0x310   : > { %5409 = vmatprep.subr.mxu0 %v2476_v5  ;;  %5361 = vmatpush3.msra.mxu1 %v2493_v28  ;;  %v2412_v28 = vrot.slane %v7082_v4, 1 }
 0x311   : > { %5410 = vmatpush3.msra.mxu0 %v2476_v5  ;;  %5362 = vmatprep.subr.mxu1 %v2492_v30  ;;  %v2406_v5 = vrot.slane %v7021_v41, 1 }
 0x312   : > { %5411 = vmatprep.subr.mxu0 %v2475_v47  ;;  %5363 = vmatpush3.msra.mxu1 %v2492_v30 }
 0x313   : > { %5412 = vmatpush3.msra.mxu0 %v2475_v47  ;;  %5364 = vmatprep.subr.mxu1 %v2491_v32  ;;  %v2410_v47 = vrot.slane %v7057_v19, 1 }
 0x314   : > { %5413 = vmatprep.subr.mxu0 %v2474_v50  ;;  %5365 = vmatpush3.msra.mxu1 %v2491_v32 }
 0x315   : > { %5414 = vmatpush3.msra.mxu0 %v2474_v50  ;;  %5366 = vmatprep.subr.mxu1 %v2490_v48 }
 0x316   : > { %5415 = vmatprep.subr.mxu0 %v2473_v51  ;;  %5367 = vmatpush3.msra.mxu1 %v2490_v48 }
 0x317   : > { %5416 = vmatpush3.msra.mxu0 %v2473_v51  ;;  %5368 = vmatprep.subr.mxu1 %v2489_v39 }
 0x318   : > { %5417 = vmatprep.subr.mxu0 %v2472_v10  ;;  %5369 = vmatpush3.msra.mxu1 %v2489_v39  ;;  %v2416_v39 = vrot.slane %v7138_v42, 1 }
 0x319   : > { %5418 = vmatpush3.msra.mxu0 %v2472_v10  ;;  %5370 = vmatprep.subr.mxu1 %v2488_v23  ;;  %v2403_v10 = vsel %vm1300_vm12, %v2401_v12, %v2402_v9 }
 0x31a   : > { %5419 = vmatprep.subr.mxu0 %v2471_v20  ;;  %5371 = vmatpush3.msra.mxu1 %v2488_v23 }
 0x31b   : > { %5420 = vmatpush3.msra.mxu0 %v2471_v20  ;;  %5372 = vmatprep.subr.mxu1 %v2487_v21  ;;  %v2414_v20 = vrot.slane %v7113_v34, 1 }
 0x31c   : > { %5421 = vmatprep.subr.mxu0 %v2470_v55  ;;  %5373 = vmatpush3.msra.mxu1 %v2487_v21 }
 0x31d   : > { %5422 = vmatpush3.msra.mxu0 %v2470_v55  ;;  %5374 = vmatprep.subr.mxu1 %v2486_v43 }
 0x31e   : > { %5485 = vmatprep.subr.mxu0 %v6266_v0  ;;  %5375 = vmatpush3.msra.mxu1 %v2486_v43 }
 0x31f   : > { %5438 = vmatprep.subr.mxu1 %v7524_v27 }
 0x393   : > { %v5284_v37 = vpop.f32.mrf.mxu1 }
 0x395   : > { %v2162_v22 = vpop.f32.mrf.mxu1 }
 0x39a   : > { %v5237_v29 = vpop.f32.mrf.mxu0 }
 0x39b   : > { %v5287_v45 = vpop.f32.mrf.mxu1  ;;  %v2168_v6 = vadd.f32 %v5284_v37, %v5237_v29 }
 0x39c   : > { %v2047_v14 = vpop.f32.mrf.mxu0 }
 0x39d   : > { %v2172_v44 = vpop.f32.mrf.mxu1  ;;  %v2163_v54 = vadd.f32 %v2162_v22, %v2047_v14  ;;  %v2407_v22 = vsel %vm1300_vm12, %v2404_v61, %v2406_v5 }
 0x3a2   : > { %v5240_v36 = vpop.f32.mrf.mxu0 }
 0x3a3   : > { %v5290_v56 = vpop.f32.mrf.mxu1  ;;  %v2178_v50 = vadd.f32 %v5287_v45, %v5240_v36  ;;  %v2409_v36 = vsel %vm1300_vm12, %v2406_v5, %v2408_v16  ;;  %v2413_v45 = vsel %vm1300_vm12, %v2410_v47, %v2412_v28 }
 0x3a4   : > { %v2057_v63 = vpop.f32.mrf.mxu0 }
 0x3a5   : > { %v2182_v30 = vpop.f32.mrf.mxu1  ;;  %v2173_v55 = vadd.f32 %v2172_v44, %v2057_v63  ;;  %v2411_v44 = vsel %vm1300_vm12, %v2408_v16, %v2410_v47 }
 0x3aa   : > { %v5243_v1 = vpop.f32.mrf.mxu0 }
 0x3ab   : > { %v5293_v23 = vpop.f32.mrf.mxu1  ;;  %v2188_v14 = vadd.f32 %v5290_v56, %v5243_v1  ;;  %v2417_v1 = vsel %vm1300_vm12, %v2414_v20, %v2416_v39 }
 0x3ac   : > { %v2067_v3 = vpop.f32.mrf.mxu0 }
 0x3ad   : > { %v2192_v56 = vpop.f32.mrf.mxu1 }
 0x3b2   : > { %v5246_v59 = vpop.f32.mrf.mxu0 }
 0x3b4   : > { %v2077_v46 = vpop.f32.mrf.mxu0 }
 0x3b5   : > { %v2193_v16 = vadd.f32 %v2192_v56, %v2077_v46 }
 0x3ba   : > { %v7527_v13 = vpop.f32.mrf.mxu0 }
 0x3bc   : > { %v7531_v26 = vpop.f32.mrf.mxu0 }
 0x3be   : > { %v5331_v58 = vpop.f32.mrf.mxu0 }
 0x3bf   : > { %v2374_v17 = vadd.f32 %v5331_v58, %v2168_v6 }
 0x3c0   : > { %v2324_v57 = vpop.f32.mrf.mxu0 }
 0x3c1   : > { %v2392_v51 = vadd.f32 %v7536_v40, %v2374_v17  ;;  %v2373_v32 = vadd.f32 %v2324_v57, %v2163_v54  ;;  %v2183_v54 = vadd.f32 %v2182_v30, %v2067_v3  ;;  %v2198_v57 = vadd.f32 %v5293_v23, %v5246_v59  ;;  %v5296_v30 = vpop.f32.mrf.mxu1 }
 0x3c2   : > { %v5334_v48 = vpop.f32.mrf.mxu0  ;;  %v2415_v3 = vsel %vm1300_vm12, %v2412_v28, %v2414_v20  ;;  %v2208_v46 = vadd.f32 %v5296_v30, %v7527_v13  ;;  %v2418_v13 = vrot.slane %v7167_v31, 1 }
 0x3c3   : > { %v2431_v21 = vmul.f32 %v2405_v7, %v2392_v51  ;;  %v2391_v43 = vadd.f32 %v7536_v40, %v2373_v32  ;;  %v2376_v29 = vadd.f32 %v5334_v48, %v2178_v50 }
 0x3c4   : > { %v2334_v37 = vpop.f32.mrf.mxu0 }
 0x3c5   : > { %v2451_v9 = vmul.f32 0.1, %v2431_v21  ;;  %v2430_v6 = vmul.f32 %v2403_v10, %v2391_v43  ;;  %v2394_v58 = vadd.f32 %v7536_v40, %v2376_v29  ;;  %v2375_v12 = vadd.f32 %v2334_v37, %v2173_v55  ;;  %v2202_v37 = vpop.f32.mrf.mxu1 }
 0x3c6   : > { %v5337_v63 = vpop.f32.mrf.mxu0  ;;  %vm2441_vm5 = vcmp.ge.f32.partialorder %v2431_v21, 0.0 }
 0x3c7   : > { %v2433_v17 = vmul.f32 %v2409_v36, %v2394_v58  ;;  %v2393_v61 = vadd.f32 %v7536_v40, %v2375_v12  ;;  %v2378_v7 = vadd.f32 %v5337_v63, %v2188_v14  ;;  %vm2440_vm7 = vcmp.ge.f32.partialorder %v2430_v6, 0.0 }
 0x3c8   : > { %v2344_v5 = vpop.f32.mrf.mxu0  ;;  %v2450_v50 = vmul.f32 0.1, %v2430_v6  ;;  %v7558_v51 = vsel %vm2441_vm5, %v2431_v21, %v2451_v9  ;;  %v2203_v58 = vadd.f32 %v2202_v37, %v7531_v26 }
 0x3c9   : > { %v2432_v47 = vmul.f32 %v2407_v22, %v2393_v61  ;;  %v2396_v32 = vadd.f32 %v7536_v40, %v2378_v7  ;;  %v2377_v10 = vadd.f32 %v2344_v5, %v2183_v54  ;;  %v2513_v43 = vrot.slane %v7558_v51, 1 }
 0x3ca   : > { %v5340_v48 = vpop.f32.mrf.mxu0  ;;  %v7562_v55 = vsel %vm2440_vm7, %v2430_v6, %v2450_v50  ;;  %vm2443_vm9 = vcmp.ge.f32.partialorder %v2433_v17, 0.0  ;;  %v2453_v29 = vmul.f32 0.1, %v2433_v17 }
 0x3cb   : > { %v2435_v59 = vmul.f32 %v2413_v45, %v2396_v32  ;;  %v2395_v23 = vadd.f32 %v7536_v40, %v2377_v10  ;;  %v2380_v21 = vadd.f32 %v5340_v48, %v2198_v57  ;;  %v2512_v14 = vrot.slane %v7562_v55, 1  ;;  %5423 = vmatprep.mubr.f32.mxu0 %v7562_v55 }
 0x3cc   : > { %5424 = vmatmul.mubr.f32.vlgmr.msra.gmra.mxu0 %v7558_v51  ;;  %v2354_v28 = vpop.f32.mrf.mxu0  ;;  %vm2442_vm10 = vcmp.ge.f32.partialorder %v2432_v47, 0.0  ;;  %v2452_v20 = vmul.f32 0.1, %v2432_v47  ;;  %v7570_v36 = vsel %vm2443_vm9, %v2433_v17, %v2453_v29  ;;  %v2419_v32 = vsel %vm1300_vm12, %v2416_v39, %v2418_v13 }
 0x3cd   : > { %v2434_v22 = vmul.f32 %v2411_v44, %v2395_v23  ;;  %v2398_v45 = vadd.f32 %v7536_v40, %v2380_v21  ;;  %v2379_v9 = vadd.f32 %v2354_v28, %v2193_v16  ;;  %v2514_v6 = vsel %vm1300_vm12, %v2512_v14, %v2513_v43  ;;  %v2784_v23 = vld [vmem:[#allocation10 + $0x2e8] sm:$0xff] }
 0x3ce   : > { %5376 = vmatprep.mubr.f32.mxu1 %v2514_v6  ;;  %v5343_v12 = vpop.f32.mrf.mxu0  ;;  %v7576_v54 = vsel %vm2442_vm10, %v2432_v47, %v2452_v20  ;;  %v2517_v63 = vrot.slane %v7570_v36, 1  ;;  %vm2445_vm11 = vcmp.ge.f32.partialorder %v2435_v59, 0.0  ;;  %v2455_v57 = vmul.f32 0.1, %v2435_v59  ;;  %v2785_v47 = vld [vmem:[#allocation10 + $0x2f0] sm:$0xff] }
 0x3cf   : > { %v2397_v56 = vadd.f32 %v7536_v40, %v2379_v9  ;;  %v2382_v17 = vadd.f32 %v5343_v12, %v2208_v46  ;;  %v2515_v44 = vrot.slane %v7576_v54, 1  ;;  %5426 = vmatprep.mubr.f32.mxu0 %v7576_v54  ;;  %v2437_v61 = vmul.f32 %v2417_v1, %v2398_v45  ;;  %v2782_v45 = vld [vmem:[#allocation10 + $0x2d8] sm:$0xff] }
 0x3d0   : > { %5427 = vmatmul.mubr.f32.gmra.mxu0 %v7570_v36  ;;  %v2364_v26 = vpop.f32.mrf.mxu0  ;;  %vm2444_vm13 = vcmp.ge.f32.partialorder %v2434_v22, 0.0  ;;  %v2454_v7 = vmul.f32 0.1, %v2434_v22  ;;  %v7592_v48 = vsel %vm2445_vm11, %v2435_v59, %v2455_v57  ;;  %v2783_v59 = vld [vmem:[#allocation10 + $0x2e0] sm:$0xff] }
 0x3d1   : > { %v2436_v5 = vmul.f32 %v2415_v3, %v2397_v56  ;;  %v2400_v50 = vadd.f32 %v7536_v40, %v2382_v17  ;;  %v2381_v30 = vadd.f32 %v2364_v26, %v2203_v58  ;;  %v2516_v16 = vsel %vm1300_vm12, %v2513_v43, %v2515_v44  ;;  %v2779_v57 = vld [vmem:[#allocation10 + $0x2c0] sm:$0xff] }
 0x3d2   : > { %5377 = vmatmul.mubr.f32.vlgmr.msra.gmra.mxu1 %v2516_v16  ;;  %v2518_v1 = vsel %vm1300_vm12, %v2515_v44, %v2517_v63  ;;  %v7589_v10 = vsel %vm2444_vm13, %v2434_v22, %v2454_v7  ;;  %v2521_v39 = vrot.slane %v7592_v48, 1  ;;  %vm2447_vm1 = vcmp.ge.f32.partialorder %v2437_v61, 0.0  ;;  %v2777_v16 = vld [vmem:[#allocation10 + $0x2b0] sm:$0xff] }
 0x3d3   : > { %v2439_v29 = vmul.f32 %v2418_v13, %v2400_v50  ;;  %v2399_v3 = vadd.f32 %v7536_v40, %v2381_v30  ;;  %5439 = vmatpush3.msra.mxu1 %v7524_v27  ;;  %5379 = vmatprep.mubr.f32.mxu1 %v2518_v1  ;;  %v2519_v43 = vrot.slane %v7589_v10, 1  ;;  %vm2446_vm14 = vcmp.ge.f32.partialorder %v2436_v5, 0.0  ;;  %v2781_v13 = vld [vmem:[#allocation10 + $0x2d0] sm:$0xff]  ;;  %v2778_v50 = vld [vmem:[#allocation10 + $0x2b8] sm:$0xff] }
 0x3d4   : > { %5429 = vmatprep.mubr.f32.mxu0 %v7589_v10  ;;  %5440 = vmatprep.subr.mxu1 %v2785_v47  ;;  %v2456_v21 = vmul.f32 0.1, %v2436_v5  ;;  %v2457_v27 = vmul.f32 0.1, %v2437_v61  ;;  %v2788_v30 = vrot.slane %v7558_v51, 2  ;;  %v2774_v1 = vld [vmem:[#allocation10 + $0x298] sm:$0xff] }
 0x3d5   : > { %v2438_v14 = vmul.f32 %v2419_v32, %v2399_v3  ;;  %5430 = vmatmul.mubr.f32.gmra.mxu0 %v7592_v48  ;;  %5441 = vmatpush3.msra.mxu1 %v2785_v47  ;;  %v2520_v40 = vsel %vm1300_vm12, %v2517_v63, %v2519_v43  ;;  %vm2449_vm2 = vcmp.ge.f32.partialorder %v2439_v29, 0.0  ;;  %v2522_v46 = vsel %vm1300_vm12, %v2519_v43, %v2521_v39  ;;  %v2775_v32 = vld [vmem:[#allocation10 + $0x2a0] sm:$0xff]  ;;  %v2773_v51 = vld [vmem:[#allocation10 + $0x290] sm:$0xff] }
 0x3d6   : > { %5442 = vmatprep.subr.mxu1 %v2784_v23  ;;  %5380 = vmatmul.mubr.f32.gmra.mxu1 %v2520_v40  ;;  %v7602_v28 = vsel %vm2446_vm14, %v2436_v5, %v2456_v21  ;;  %v2459_v20 = vmul.f32 0.1, %v2439_v29  ;;  %v7606_v22 = vsel %vm2447_vm1, %v2437_v61, %v2457_v27  ;;  %v2780_v61 = vld [vmem:[#allocation10 + $0x2c8] sm:$0xff]  ;;  %v2787_v5 = vrot.slane %v7562_v55, 2  ;;  %v2771_v43 = vld [vmem:[#allocation10 + $0x280] sm:$0xff] }
 0x3d7   : > { %5443 = vmatpush3.msra.mxu1 %v2784_v23  ;;  %5382 = vmatprep.mubr.f32.mxu1 %v2522_v46  ;;  %v2523_v37 = vrot.slane %v7602_v28, 1  ;;  %vm2448_vm6 = vcmp.ge.f32.partialorder %v2438_v14, 0.0  ;;  %v2525_v9 = vrot.slane %v7606_v22, 1  ;;  %v2458_v6 = vmul.f32 0.1, %v2438_v14  ;;  %v2776_v55 = vld [vmem:[#allocation10 + $0x2a8] sm:$0xff] }
 0x3d8   : > { %5432 = vmatprep.mubr.f32.mxu0 %v7602_v28  ;;  %5444 = vmatprep.subr.mxu1 %v2783_v59  ;;  %v7611_v58 = vsel %vm2449_vm2, %v2439_v29, %v2459_v20  ;;  %v2789_v47 = vsel %vm1589_vm3, %v2787_v5, %v2788_v30  ;;  %v2772_v29 = vld [vmem:[#allocation10 + $0x288] sm:$0xff]  ;;  %v2790_v3 = vrot.slane %v7576_v54, 2  ;;  %v2792_v23 = vrot.slane %v7570_v36, 2  ;;  %v3084_v5 = vld [vmem:[#allocation8 + $0x338] sm:$0xff] }
 0x3d9   : > { %5433 = vmatmul.mubr.f32.gmra.mxu0 %v7606_v22  ;;  %5445 = vmatpush3.msra.mxu1 %v2783_v59  ;;  %v2524_v12 = vsel %vm1300_vm12, %v2521_v39, %v2523_v37  ;;  %v2526_v63 = vsel %vm1300_vm12, %v2523_v37, %v2525_v9  ;;  %v7616_v56 = vsel %vm2448_vm6, %v2438_v14, %v2458_v6  ;;  %v2529_v44 = vrot.slane %v7611_v58, 1  ;;  %v3090_v6 = vld [vmem:[#allocation8 + $0x368] sm:$0xff] }
 0x3da   : > { %5446 = vmatprep.subr.mxu1 %v2782_v45  ;;  %5383 = vmatmul.mubr.f32.gmra.mxu1 %v2524_v12  ;;  %v2527_v17 = vrot.slane %v7616_v56, 1  ;;  %v2794_v39 = vrot.slane %v7589_v10, 2  ;;  %v2791_v21 = vsel %vm1589_vm3, %v2788_v30, %v2790_v3  ;;  %v2793_v14 = vsel %vm1589_vm3, %v2790_v3, %v2792_v23  ;;  %v3089_v12 = vld [vmem:[#allocation8 + $0x360] sm:$0xff]  ;;  %v3083_v30 = vld [vmem:[#allocation8 + $0x330] sm:$0xff] }
 0x3db   : > { %5447 = vmatpush3.msra.mxu1 %v2782_v45  ;;  %5385 = vmatprep.mubr.f32.mxu1 %v2526_v63  ;;  %v2796_v54 = vrot.slane %v7592_v48, 2  ;;  %v2798_v40 = vrot.slane %v7602_v28, 2  ;;  %v2800_v10 = vrot.slane %v7606_v22, 2  ;;  %v2802_v27 = vrot.slane %v7616_v56, 2  ;;  %v3092_v22 = vld [vmem:[#allocation8 + $0x378] sm:$0xff]  ;;  %v3091_v45 = vld [vmem:[#allocation8 + $0x370] sm:$0xff] }
 0x3dc   : > { %5435 = vmatprep.mubr.f32.mxu0 %v7616_v56  ;;  %5448 = vmatprep.subr.mxu1 %v2781_v13  ;;  %v2528_v26 = vsel %vm1300_vm12, %v2525_v9, %v2527_v17  ;;  %v2530_v7 = vsel %vm1300_vm12, %v2527_v17, %v2529_v44  ;;  %v2795_v59 = vsel %vm1589_vm3, %v2792_v23, %v2794_v39  ;;  %v2804_v48 = vrot.slane %v7611_v58, 2  ;;  %v3108_v9 = vld [vmem:[#allocation8 + $0x3f8] sm:$0xff]  ;;  %v3105_v56 = vld [vmem:[#allocation8 + $0x3e0] sm:$0xff]  ;;  %v3087_v17 = vld [vmem:[#allocation8 + $0x350] sm:$0xff] }
 0x3dd   : > { %5436 = vmatmul.mubr.f32.gmra.mxu0 %v7611_v58  ;;  %5449 = vmatpush3.msra.mxu1 %v2781_v13  ;;  %v2797_v36 = vsel %vm1589_vm3, %v2794_v39, %v2796_v54  ;;  %v2799_v46 = vsel %vm1589_vm3, %v2796_v54, %v2798_v40  ;;  %v2801_v20 = vsel %vm1589_vm3, %v2798_v40, %v2800_v10  ;;  %v3107_v58 = vld [vmem:[#allocation8 + $0x3f0] sm:$0xff]  ;;  %v3106_v13 = vld [vmem:[#allocation8 + $0x3e8] sm:$0xff]  ;;  %v3088_v63 = vld [vmem:[#allocation8 + $0x358] sm:$0xff] }
 0x3de   : > { %5450 = vmatprep.subr.mxu1 %v2780_v61  ;;  %5386 = vmatmul.mubr.f32.gmra.mxu1 %v2528_v26  ;;  %v2803_v28 = vsel %vm1589_vm3, %v2800_v10, %v2802_v27  ;;  %v2805_v37 = vsel %vm1589_vm3, %v2802_v27, %v2804_v48  ;;  %v3103_v26 = vld [vmem:[#allocation8 + $0x3d0] sm:$0xff]  ;;  %v3078_v23 = vld [vmem:[#allocation8 + $0x308] sm:$0xff]  ;;  %v3093_v54 = vld [vmem:[#allocation8 + $0x380] sm:$0xff] }
 0x3df   : > { %5451 = vmatpush3.msra.mxu1 %v2780_v61  ;;  %5388 = vmatprep.mubr.f32.mxu1 %v2530_v7  ;;  %v3086_v61 = vld [vmem:[#allocation8 + $0x348] sm:$0xff]  ;;  %v3085_v7 = vld [vmem:[#allocation8 + $0x340] sm:$0xff]  ;;  %v3079_v3 = vld [vmem:[#allocation8 + $0x310] sm:$0xff] }
 0x3e0   : > { %5452 = vmatprep.subr.mxu1 %v2779_v57  ;;  %5517 = vmatprep.mubr.msk.f32.mxu0 %vm6267_vm0, %v6266_v0  ;;  %v3095_v39 = vld [vmem:[#allocation8 + $0x390] sm:$0xff] }
 0x3e1   : > { %5453 = vmatpush3.msra.mxu1 %v2779_v57  ;;  %5486 = vmatpush3.msra.mxu0 %v3108_v9  ;;  %v3102_v57 = vld [vmem:[#allocation8 + $0x3c8] sm:$0xff] }
 0x3e2   : > { %5454 = vmatprep.subr.mxu1 %v2778_v50  ;;  %5389 = vmatmul.mubr.f32.gmra.mxu1 %v2529_v44  ;;  %v3104_v44 = vld [vmem:[#allocation8 + $0x3d8] sm:$0xff] }
 0x3e3   : > { %5455 = vmatpush3.msra.mxu1 %v2778_v50  ;;  %5470 = vmatprep.mubr.f32.mxu1 %v2789_v47  ;;  %v3101_v50 = vld [vmem:[#allocation8 + $0x3c0] sm:$0xff]  ;;  %v3082_v47 = vld [vmem:[#allocation8 + $0x328] sm:$0xff] }
 0x3e4   : > { %5456 = vmatprep.subr.mxu1 %v2777_v16  ;;  %5487 = vmatprep.subr.mxu0 %v6266_v0 }
 0x3e5   : > { %5457 = vmatpush3.msra.mxu1 %v2777_v16  ;;  %5488 = vmatpush3.msra.mxu0 %v3107_v58  ;;  %v3100_v16 = vld [vmem:[#allocation8 + $0x3b8] sm:$0xff] }
 0x3e6   : > { %5458 = vmatprep.subr.mxu1 %v2776_v55  ;;  %5489 = vmatprep.subr.mxu0 %v6266_v0 }
 0x3e7   : > { %5459 = vmatpush3.msra.mxu1 %v2776_v55  ;;  %5490 = vmatpush3.msra.mxu0 %v3106_v13  ;;  %v3099_v55 = vld [vmem:[#allocation8 + $0x3b0] sm:$0xff] }
 0x3e8   : > { %5460 = vmatprep.subr.mxu1 %v2775_v32  ;;  %5491 = vmatprep.subr.mxu0 %v6266_v0 }
 0x3e9   : > { %5461 = vmatpush3.msra.mxu1 %v2775_v32  ;;  %5492 = vmatpush3.msra.mxu0 %v3105_v56  ;;  %v3081_v32 = vld [vmem:[#allocation8 + $0x320] sm:$0xff]  ;;  %v3011_v56 = vrot.slane %v7018_v38, 2 }
 0x3ea   : > { %5462 = vmatprep.subr.mxu1 %v2774_v1  ;;  %5493 = vmatprep.subr.mxu0 %v6266_v0 }
 0x3eb   : > { %5463 = vmatpush3.msra.mxu1 %v2774_v1  ;;  %5494 = vmatpush3.msra.mxu0 %v3104_v44  ;;  %v3098_v1 = vld [vmem:[#allocation8 + $0x3a8] sm:$0xff]  ;;  %v3008_v44 = vrot.slane %v6991_v8, 2 }
 0x3ec   : > { %5464 = vmatprep.subr.mxu1 %v2773_v51  ;;  %5495 = vmatprep.subr.mxu0 %v6266_v0 }
 0x3ed   : > { %5465 = vmatpush3.msra.mxu1 %v2773_v51  ;;  %5496 = vmatpush3.msra.mxu0 %v3103_v26  ;;  %v3080_v51 = vld [vmem:[#allocation8 + $0x318] sm:$0xff]  ;;  %v7685_v26 = vld [vmem:[%s8312_s21 + $0x1] ss:$0 sm:$0xff] }
 0x3ee   : > { %5466 = vmatprep.subr.mxu1 %v2772_v29  ;;  %5497 = vmatprep.subr.mxu0 %v6266_v0 }
 0x3ef   : > { %5467 = vmatpush3.msra.mxu1 %v2772_v29  ;;  %5498 = vmatpush3.msra.mxu0 %v3102_v57  ;;  %v3097_v29 = vld [vmem:[#allocation8 + $0x3a0] sm:$0xff]  ;;  %v3015_v57 = vrot.slane %v7038_v24, 2 }
 0x3f0   : > { %5468 = vmatprep.subr.mxu1 %v2771_v43  ;;  %5499 = vmatprep.subr.mxu0 %v6266_v0 }
 0x3f1   : > { %5469 = vmatpush3.msra.mxu1 %v2771_v43  ;;  %5500 = vmatpush3.msra.mxu0 %v3101_v50  ;;  %v3096_v43 = vld [vmem:[#allocation8 + $0x398] sm:$0xff]  ;;  %v3019_v50 = vrot.slane %v7082_v4, 2 }
 0x3f2   : > { %5471 = vmatmul.mubr.f32.vlgmr.msra.gmra.mxu1 %v2791_v21  ;;  %5544 = vmatprep.subr.mxu1 %v6266_v0  ;;  %v3077_v21 = vld [vmem:[#allocation8 + $0x300] sm:$0xff] }
 0x3f3   : > { %5473 = vmatprep.mubr.f32.mxu1 %v2793_v14  ;;  %5545 = vmatpush3.msra.mxu1 %v3092_v22  ;;  %v3094_v14 = vld [vmem:[#allocation8 + $0x388] sm:$0xff] }
 0x3f4   : > { %5546 = vmatprep.subr.mxu1 %v6266_v0  ;;  %5501 = vmatprep.subr.mxu0 %v6266_v0 }
 0x3f5   : > { %5547 = vmatpush3.msra.mxu1 %v3091_v45  ;;  %5502 = vmatpush3.msra.mxu0 %v3100_v16 }
 0x3f6   : > { %5474 = vmatmul.mubr.f32.gmra.mxu1 %v2795_v59  ;;  %5548 = vmatprep.subr.mxu1 %v6266_v0 }
 0x3f7   : > { %5476 = vmatprep.mubr.f32.mxu1 %v2797_v36  ;;  %5549 = vmatpush3.msra.mxu1 %v3090_v6 }
 0x3f8   : > { %5550 = vmatprep.subr.mxu1 %v6266_v0  ;;  %5503 = vmatprep.subr.mxu0 %v6266_v0 }
 0x3f9   : > { %5551 = vmatpush3.msra.mxu1 %v3089_v12  ;;  %5504 = vmatpush3.msra.mxu0 %v3099_v55 }
 0x3fa   : > { %5477 = vmatmul.mubr.f32.gmra.mxu1 %v2799_v46  ;;  %5552 = vmatprep.subr.mxu1 %v6266_v0 }
 0x3fb   : > { %5479 = vmatprep.mubr.f32.mxu1 %v2801_v20  ;;  %5553 = vmatpush3.msra.mxu1 %v3088_v63  ;;  %v3009_v63 = vrot.slane %v7003_v35, 2 }
 0x3fc   : > { %5554 = vmatprep.subr.mxu1 %v6266_v0  ;;  %5505 = vmatprep.subr.mxu0 %v6266_v0 }
 0x3fd   : > { %5555 = vmatpush3.msra.mxu1 %v3087_v17  ;;  %5506 = vmatpush3.msra.mxu0 %v3098_v1  ;;  %v3012_v55 = vsel %vm1589_vm3, %v3009_v63, %v3011_v56  ;;  %v3021_v1 = vrot.slane %v7113_v34, 2 }
 0x3fe   : > { %5480 = vmatmul.mubr.f32.gmra.mxu1 %v2803_v28  ;;  %5556 = vmatprep.subr.mxu1 %v6266_v0 }
 0x3ff   : > { %5482 = vmatprep.mubr.f32.mxu1 %v2805_v37  ;;  %5557 = vmatpush3.msra.mxu1 %v3086_v61 }
 0x400   : > { %5558 = vmatprep.subr.mxu1 %v6266_v0  ;;  %5507 = vmatprep.subr.mxu0 %v6266_v0 }
 0x401   : > { %5559 = vmatpush3.msra.mxu1 %v3085_v7  ;;  %5508 = vmatpush3.msra.mxu0 %v3097_v29  ;;  %v3013_v7 = vrot.slane %v7021_v41, 2  ;;  %v3025_v29 = vrot.slane %v7167_v31, 2 }
 0x402   : > { %5483 = vmatmul.mubr.f32.gmra.mxu1 %v2804_v48  ;;  %5560 = vmatprep.subr.mxu1 %v6266_v0 }
 0x403   : > { %5576 = vmatprep.mubr.msk.f32.mxu1 %vm6267_vm0, %v6266_v0  ;;  %5561 = vmatpush3.msra.mxu1 %v3084_v5  ;;  %v3017_v5 = vrot.slane %v7057_v19, 2 }
 0x404   : > { %5562 = vmatprep.subr.mxu1 %v6266_v0  ;;  %5509 = vmatprep.subr.mxu0 %v6266_v0 }
 0x405   : > { %5563 = vmatpush3.msra.mxu1 %v3083_v30  ;;  %5510 = vmatpush3.msra.mxu0 %v3096_v43 }
 0x406   : > { %5564 = vmatprep.subr.mxu1 %v6266_v0  ;;  %5511 = vmatprep.subr.mxu0 %v6266_v0 }
 0x407   : > { %5565 = vmatpush3.msra.mxu1 %v3082_v47  ;;  %5512 = vmatpush3.msra.mxu0 %v3095_v39  ;;  %v3010_v39 = vsel %vm1589_vm3, %v3008_v44, %v3009_v63  ;;  %v7707_v44 = vsel %vm1589_vm3, %v3019_v50, %v3021_v1 }
 0x408   : > { %5566 = vmatprep.subr.mxu1 %v6266_v0  ;;  %5513 = vmatprep.subr.mxu0 %v6266_v0 }
 0x409   : > { %5567 = vmatpush3.msra.mxu1 %v3081_v32  ;;  %5514 = vmatpush3.msra.mxu0 %v3094_v14  ;;  %v3016_v14 = vsel %vm1589_vm3, %v3013_v7, %v3015_v57 }
 0x40a   : > { %5568 = vmatprep.subr.mxu1 %v6266_v0  ;;  %5515 = vmatprep.subr.mxu0 %v6266_v0 }
 0x40b   : > { %5569 = vmatpush3.msra.mxu1 %v3080_v51  ;;  %5516 = vmatpush3.msra.mxu0 %v3093_v54  ;;  %v3023_v51 = vrot.slane %v7138_v42, 2  ;;  %v3014_v54 = vsel %vm1589_vm3, %v3011_v56, %v3013_v7 }
 0x40c   : > { %5570 = vmatprep.subr.mxu1 %v6266_v0  ;;  %5603 = vmatprep.subr.mxu0 %v6266_v0 }
 0x40d   : > { %5571 = vmatpush3.msra.mxu1 %v3079_v3  ;;  %v7704_v63 = vsel %vm1589_vm3, %v3021_v1, %v3023_v51  ;;  %v7712_v56 = vsel %vm1589_vm3, %v3023_v51, %v3025_v29 }
 0x40e   : > { %5572 = vmatprep.subr.mxu1 %v6266_v0 }
 0x40f   : > { %5573 = vmatpush3.msra.mxu1 %v3078_v23 }
 0x410   : > { %5574 = vmatprep.subr.mxu1 %v6266_v0 }
 0x411   : > { %5575 = vmatpush3.msra.mxu1 %v3077_v21 }
 0x48c   : > { %v5425_v10 = vpop.f32.mrf.mxu0 }
 0x48e   : > { %v2722_v46 = vpop.f32.mrf.mxu0 }
 0x490   : > { %v5428_v48 = vpop.f32.mrf.mxu0 }
 0x492   : > { %v5378_v40 = vpop.f32.mrf.mxu1  ;;  %v2732_v37 = vpop.f32.mrf.mxu0 }
 0x493   : > { %v2728_v17 = vadd.f32 %v5425_v10, %v5378_v40  ;;  %v3020_v40 = vsel %vm1589_vm3, %v3017_v5, %v3019_v50 }
 0x494   : > { %v2607_v59 = vpop.f32.mrf.mxu1 }
 0x495   : > { %v5431_v45 = vpop.f32.mrf.mxu0  ;;  %v2723_v30 = vadd.f32 %v2722_v46, %v2607_v59  ;;  %v3018_v59 = vsel %vm1589_vm3, %v3015_v57, %v3017_v5 }
 0x496   : > { %v5381_v36 = vpop.f32.mrf.mxu1 }
 0x497   : > { %v2742_v6 = vpop.f32.mrf.mxu0  ;;  %v2738_v3 = vadd.f32 %v5428_v48, %v5381_v36 }
 0x498   : > { %v2617_v27 = vpop.f32.mrf.mxu1 }
 0x499   : > { %v5434_v12 = vpop.f32.mrf.mxu0  ;;  %v2733_v10 = vadd.f32 %v2732_v37, %v2617_v27 }
 0x49a   : > { %v5384_v20 = vpop.f32.mrf.mxu1 }
 0x49b   : > { %v2752_v16 = vpop.f32.mrf.mxu0 }
 0x49c   : > { %v2627_v28 = vpop.f32.mrf.mxu1 }
 0x49d   : > { %v5437_v46 = vpop.f32.mrf.mxu0 }
 0x49e   : > { %v5387_v22 = vpop.f32.mrf.mxu1 }
 0x4a0   : > { %v2637_v9 = vpop.f32.mrf.mxu1 }
 0x4a1   : > { %v2753_v57 = vadd.f32 %v2752_v16, %v2637_v9 }
 0x4a2   : > { %v5390_v58 = vpop.f32.mrf.mxu1 }
 0x4a3   : > { %v2768_v5 = vadd.f32 %v5437_v46, %v5390_v58 }
 0x4a4   : > { %v2647_v13 = vpop.f32.mrf.mxu1 }
 0x4b2   : > { %v5472_v61 = vpop.f32.mrf.mxu1 }
 0x4b3   : > { %v2932_v47 = vadd.f32 %v5472_v61, %v2728_v17  ;;  %v2748_v61 = vadd.f32 %v5431_v45, %v5384_v20  ;;  %v2743_v20 = vadd.f32 %v2742_v6, %v2627_v28  ;;  %v2758_v45 = vadd.f32 %v5434_v12, %v5387_v22 }
 0x4b4   : > { %v2882_v32 = vpop.f32.mrf.mxu1 }
 0x4b5   : > { %v2950_v43 = vadd.f32 %v7685_v26, %v2932_v47  ;;  %v2931_v23 = vadd.f32 %v2882_v32, %v2723_v30  ;;  %v2762_v32 = vpop.f32.mrf.mxu0 }
 0x4b6   : > { %v5475_v21 = vpop.f32.mrf.mxu1  ;;  %v2763_v51 = vadd.f32 %v2762_v32, %v2647_v13  ;;  %v3378_v32 = vld [vmem:[#allocation8 + $0x470] sm:$0xff] }
 0x4b7   : > { %v2999_v17 = vadd.f32 %v7384_v49, %v2950_v43  ;;  %v2949_v36 = vadd.f32 %v7685_v26, %v2931_v23  ;;  %v2934_v48 = vadd.f32 %v5475_v21, %v2738_v3 }
 0x4b8   : > { %v2892_v30 = vpop.f32.mrf.mxu1 }
 0x4b9   : > { %v7714_v27 = vmul.f32 %v3012_v55, %v2999_v17  ;;  %v2998_v49 = vadd.f32 %v7369_v60, %v2949_v36  ;;  %v2952_v37 = vadd.f32 %v7685_v26, %v2934_v48  ;;  %v2933_v7 = vadd.f32 %v2892_v30, %v2733_v10  ;;  %v3379_v30 = vld [vmem:[#allocation8 + $0x478] sm:$0xff] }
 0x4ba   : > { %v5478_v47 = vpop.f32.mrf.mxu1 }
 0x4bb   : > { %vm3048_vm8 = vcmp.ge.f32.partialorder %v7714_v27, 0.0  ;;  %v3058_v50 = vmul.f32 0.1, %v7714_v27  ;;  %v7720_v1 = vmul.f32 %v3010_v39, %v2998_v49  ;;  %v3001_v55 = vadd.f32 %v7425_v33, %v2952_v37 }
 0x4bc   : > { %v2951_v60 = vadd.f32 %v7685_v26, %v2933_v7  ;;  %v2936_v3 = vadd.f32 %v5478_v47, %v2748_v61  ;;  %v2902_v43 = vpop.f32.mrf.mxu1  ;;  %v4064_v28 = vrot.slane %v7714_v27, 6 }
 0x4bd   : > { %v7725_v22 = vmul.f32 %v3016_v14, %v3001_v55  ;;  %v2935_v9 = vadd.f32 %v2902_v43, %v2743_v20  ;;  %vm3047_vm5 = vcmp.ge.f32.partialorder %v7720_v1, 0.0  ;;  %v3057_v6 = vmul.f32 0.1, %v7720_v1 }
 0x4be   : > { %v3000_v58 = vadd.f32 %v7405_v25, %v2951_v60  ;;  %v2954_v12 = vadd.f32 %v7685_v26, %v2936_v3  ;;  %v5481_v16 = vpop.f32.mrf.mxu1  ;;  %v7734_v33 = vsel %vm3048_vm8, %v7714_v27, %v3058_v50  ;;  %v4063_v13 = vrot.slane %v7720_v1, 6  ;;  %v3370_v27 = vld [vmem:[#allocation8 + $0x430] sm:$0xff] }
 0x4bf   : > { %v2953_v23 = vadd.f32 %v7685_v26, %v2935_v9  ;;  %v2938_v39 = vadd.f32 %v5481_v16, %v2758_v45  ;;  %v3067_v21 = vsel %vm3047_vm5, %v7720_v1, %v3057_v6  ;;  %v3119_v14 = vrot.slane %v7734_v33, 5  ;;  %v3377_v6 = vld [vmem:[#allocation8 + $0x468] sm:$0xff] }
 0x4c0   : > { %v7740_v10 = vmul.f32 %v3014_v54, %v3000_v58  ;;  %v3003_v25 = vadd.f32 %v7463_v15, %v2954_v12  ;;  %v2912_v46 = vpop.f32.mrf.mxu1  ;;  %v3118_v17 = vrot.slane %v3067_v21, 5  ;;  %5577 = vmatmul.mubr.f32.vlgmr.msra.gmra.mxu1 %v3067_v21  ;;  %vm3050_vm7 = vcmp.ge.f32.partialorder %v7725_v22, 0.0 }
 0x4c1   : > { %v3002_v36 = vadd.f32 %v7445_v2, %v2953_v23  ;;  %v2956_v48 = vadd.f32 %v7685_v26, %v2938_v39  ;;  %v2937_v61 = vadd.f32 %v2912_v46, %v2753_v57  ;;  %5579 = vmatprep.mubr.msk.f32.mxu1 %vm6267_vm0, %v6266_v0  ;;  %v3060_v49 = vmul.f32 0.1, %v7725_v22  ;;  %v3375_v46 = vld [vmem:[#allocation8 + $0x458] sm:$0xff] }
 0x4c2   : > { %v7749_v54 = vmul.f32 %v3020_v40, %v3003_v25  ;;  %v5484_v37 = vpop.f32.mrf.mxu1  ;;  %v3120_v15 = vsel %vm657_vm4, %v3118_v17, %v3119_v14  ;;  %vm3049_vm9 = vcmp.ge.f32.partialorder %v7740_v10, 0.0  ;;  %v3059_v7 = vmul.f32 0.1, %v7740_v10 }
 0x4c3   : > { %v7754_v20 = vmul.f32 %v3018_v59, %v3002_v36  ;;  %v3005_v2 = vadd.f32 %v7490_v53, %v2956_v48  ;;  %v2955_v45 = vadd.f32 %v7685_v26, %v2937_v61  ;;  %v2940_v57 = vadd.f32 %v5484_v37, %v2768_v5  ;;  %5518 = vmatmul.mubr.f32.vlgmr.msra.gmra.mxu0 %v3120_v15 }
 0x4c4   : > { %v2922_v47 = vpop.f32.mrf.mxu1  ;;  %5580 = vmatmul.mubr.f32.gmra.mxu1 %v7734_v33  ;;  %5604 = vmatpush3.msra.mxu0 %v3379_v30  ;;  %v7760_v40 = vsel %vm3049_vm9, %v7740_v10, %v3059_v7  ;;  %v7765_v50 = vsel %vm3050_vm7, %v7725_v22, %v3060_v49  ;;  %vm3052_vm10 = vcmp.ge.f32.partialorder %v7749_v54, 0.0  ;;  %v3062_v53 = vmul.f32 0.1, %v7749_v54 }
 0x4c5   : > { %v7770_v59 = vmul.f32 %v7704_v63, %v3005_v2  ;;  %v3004_v5 = vadd.f32 %v7477_v11, %v2955_v45  ;;  %v2958_v55 = vadd.f32 %v7685_v26, %v2940_v57  ;;  %v2939_v60 = vadd.f32 %v2922_v47, %v2763_v51  ;;  %5520 = vmatprep.mubr.msk.f32.mxu0 %vm6267_vm0, %v6266_v0  ;;  %v3373_v47 = vld [vmem:[#allocation8 + $0x448] sm:$0xff] }
 0x4c6   : > { %5605 = vmatprep.subr.mxu0 %v6266_v0  ;;  %v3121_v3 = vrot.slane %v7760_v40, 5  ;;  %v3382_v43 = vrot.slane %v7760_v40, 2  ;;  %5582 = vmatprep.mubr.msk.f32.mxu1 %vm6267_vm0, %v6266_v0  ;;  %v3123_v63 = vrot.slane %v7765_v50, 5  ;;  %vm3051_vm11 = vcmp.ge.f32.partialorder %v7754_v20, 0.0 }
 0x4c7   : > { %v7784_v11 = vmul.f32 %v7707_v44, %v3004_v5  ;;  %v3007_v51 = vadd.f32 %v2986_v18, %v2958_v55  ;;  %v2957_v9 = vadd.f32 %v7685_v26, %v2939_v60  ;;  %5606 = vmatpush3.msra.mxu0 %v3378_v32  ;;  %v3061_v58 = vmul.f32 0.1, %v7754_v20  ;;  %v3376_v26 = vld [vmem:[#allocation8 + $0x460] sm:$0xff] }
 0x4c8   : > { %v3122_v12 = vsel %vm657_vm4, %v3119_v14, %v3121_v3  ;;  %5583 = vmatmul.mubr.f32.gmra.mxu1 %v7760_v40  ;;  %5607 = vmatprep.subr.mxu0 %v6266_v0  ;;  %v3124_v16 = vsel %vm657_vm4, %v3121_v3, %v3123_v63  ;;  %v7797_v44 = vsel %vm3052_vm10, %v7749_v54, %v3062_v53  ;;  %vm3054_vm13 = vcmp.ge.f32.partialorder %v7770_v59, 0.0 }
 0x4c9   : > { %v7802_v52 = vmul.f32 %v3025_v29, %v3007_v51  ;;  %v3006_v18 = vadd.f32 %v7500_v62, %v2957_v9  ;;  %5521 = vmatmul.mubr.f32.gmra.mxu0 %v3122_v12  ;;  %5585 = vmatprep.mubr.msk.f32.mxu1 %vm6267_vm0, %v6266_v0  ;;  %v3071_v23 = vsel %vm3051_vm11, %v7754_v20, %v3061_v58  ;;  %v3127_v39 = vrot.slane %v7797_v44, 5 }
 0x4ca   : > { %5608 = vmatpush3.msra.mxu0 %v3377_v6  ;;  %5523 = vmatprep.mubr.msk.f32.mxu0 %vm6267_vm0, %v6266_v0  ;;  %v3125_v21 = vrot.slane %v3071_v23, 5  ;;  %vm3053_vm14 = vcmp.ge.f32.partialorder %v7784_v11, 0.0  ;;  %v3063_v62 = vmul.f32 0.1, %v7784_v11  ;;  %v3064_v29 = vmul.f32 0.1, %v7770_v59 }
 0x4cb   : > { %v3066_v14 = vmul.f32 0.1, %v7802_v52  ;;  %v7818_v25 = vmul.f32 %v7712_v56, %v3006_v18  ;;  %5609 = vmatprep.subr.mxu0 %v6266_v0  ;;  %v3381_v17 = vrot.slane %v7734_v33, 2  ;;  %v3384_v36 = vrot.slane %v7765_v50, 2  ;;  %v3374_v56 = vld [vmem:[#allocation8 + $0x450] sm:$0xff] }
 0x4cc   : > { %5610 = vmatpush3.msra.mxu0 %v3376_v26  ;;  %5586 = vmatmul.mubr.f32.gmra.mxu1 %v7765_v50  ;;  %v3126_v48 = vsel %vm657_vm4, %v3123_v63, %v3125_v21  ;;  %v3128_v61 = vsel %vm657_vm4, %v3125_v21, %v3127_v39  ;;  %v7827_v30 = vsel %vm3053_vm14, %v7784_v11, %v3063_v62  ;;  %v3386_v49 = vrot.slane %v3071_v23, 2 }
 0x4cd   : > { %5524 = vmatmul.mubr.f32.gmra.mxu0 %v3124_v16  ;;  %5611 = vmatprep.subr.mxu0 %v6266_v0  ;;  %v3129_v37 = vrot.slane %v7827_v30, 5  ;;  %v7834_v33 = vsel %vm3054_vm13, %v7770_v59, %v3064_v29  ;;  %vm3055_vm1 = vcmp.ge.f32.partialorder %v7818_v25, 0.0  ;;  %v3065_v15 = vmul.f32 0.1, %v7818_v25  ;;  %v3369_v29 = vld [vmem:[#allocation8 + $0x428] sm:$0xff] }
 0x4ce   : > { %5612 = vmatpush3.msra.mxu0 %v3375_v46  ;;  %5526 = vmatprep.mubr.msk.f32.mxu0 %vm6267_vm0, %v6266_v0  ;;  %v3131_v7 = vrot.slane %v7834_v33, 5  ;;  %v7842_v2 = vsel %vm1589_vm3, %v3381_v17, %v3382_v43  ;;  %v7845_v45 = vsel %vm1589_vm3, %v3382_v43, %v3384_v36  ;;  %v7848_v57 = vsel %vm1589_vm3, %v3384_v36, %v3386_v49  ;;  %v3372_v43 = vld [vmem:[#allocation8 + $0x440] sm:$0xff]  ;;  %v3366_v46 = vld [vmem:[#allocation8 + $0x410] sm:$0xff]  ;;  %v3365_v17 = vld [vmem:[#allocation8 + $0x408] sm:$0xff] }
 0x4cf   : > { %5588 = vmatprep.mubr.msk.f32.mxu1 %vm6267_vm0, %v6266_v0  ;;  %5613 = vmatprep.subr.mxu0 %v6266_v0  ;;  %v3130_v40 = vsel %vm657_vm4, %v3127_v39, %v3129_v37  ;;  %v7855_v32 = vsel %vm3055_vm1, %v7818_v25, %v3065_v15  ;;  %v3388_v50 = vrot.slane %v7797_v44, 2  ;;  %v3390_v53 = vrot.slane %v7827_v30, 2  ;;  %v3364_v36 = vld [vmem:[#allocation8 + $0x400] sm:$0xff] }
 0x4d0   : > { %5589 = vmatmul.mubr.f32.gmra.mxu1 %v3071_v23  ;;  %5614 = vmatpush3.msra.mxu0 %v3374_v56  ;;  %v3132_v5 = vsel %vm657_vm4, %v3129_v37, %v3131_v7  ;;  %v3133_v55 = vrot.slane %v7855_v32, 5  ;;  %v3392_v60 = vrot.slane %v7834_v33, 2  ;;  %v3394_v3 = vrot.slane %v7855_v32, 2  ;;  %v3898_v56 = vld [vmem:[#allocation10 + $0x470] sm:$0xff]  ;;  %v3636_v37 = vld [vmem:[#allocation10 + $0x3e0] sm:$0xff] }
 0x4d1   : > { %5527 = vmatmul.mubr.f32.gmra.mxu0 %v3126_v48  ;;  %5615 = vmatprep.subr.mxu0 %v6266_v0  ;;  %v7865_v63 = vsel %vm1589_vm3, %v3386_v49, %v3388_v50  ;;  %v7868_v51 = vsel %vm1589_vm3, %v3388_v50, %v3390_v53  ;;  %vm3056_vm2 = vcmp.ge.f32.partialorder %v7802_v52, 0.0  ;;  %v4066_v9 = vrot.slane %v7740_v10, 6  ;;  %v3371_v10 = vld [vmem:[#allocation8 + $0x438] sm:$0xff]  ;;  %v3637_v49 = vld [vmem:[#allocation10 + $0x3e8] sm:$0xff]  ;;  %v3896_v15 = vld [vmem:[#allocation10 + $0x460] sm:$0xff] }
 0x4d2   : > { %5529 = vmatprep.mubr.msk.f32.mxu0 %vm6267_vm0, %v6266_v0  ;;  %5616 = vmatpush3.msra.mxu0 %v3373_v47  ;;  %v3134_v6 = vsel %vm657_vm4, %v3131_v7, %v3133_v55  ;;  %v7878_v58 = vsel %vm1589_vm3, %v3390_v53, %v3392_v60  ;;  %v7881_v12 = vsel %vm1589_vm3, %v3392_v60, %v3394_v3  ;;  %v4068_v16 = vrot.slane %v7725_v22, 6  ;;  %v3639_v48 = vld [vmem:[#allocation10 + $0x3f8] sm:$0xff]  ;;  %v3634_v7 = vld [vmem:[#allocation10 + $0x3d0] sm:$0xff]  ;;  %v3632_v47 = vld [vmem:[#allocation10 + $0x3c0] sm:$0xff] }
 0x4d3   : > { %5591 = vmatprep.mubr.msk.f32.mxu1 %vm6267_vm0, %v6266_v0  ;;  %5617 = vmatprep.subr.mxu0 %v6266_v0  ;;  %v7888_v18 = vsel %vm3056_vm2, %v7802_v52, %v3066_v14  ;;  %v7893_v26 = vsel %vm983_vm15, %v4064_v28, %v4066_v9  ;;  %v7900_v22 = vsel %vm983_vm15, %v4063_v13, %v4064_v28  ;;  %v4070_v23 = vrot.slane %v7754_v20, 6  ;;  %v3368_v14 = vld [vmem:[#allocation8 + $0x420] sm:$0xff]  ;;  %v3891_v53 = vld [vmem:[#allocation10 + $0x438] sm:$0xff]  ;;  %v3629_v60 = vld [vmem:[#allocation10 + $0x3a8] sm:$0xff] }
 0x4d4   : > { %5592 = vmatmul.mubr.f32.gmra.mxu1 %v7797_v44  ;;  %5618 = vmatpush3.msra.mxu0 %v3372_v43  ;;  %v3396_v52 = vrot.slane %v7888_v18, 2  ;;  %v7906_v39 = vsel %vm983_vm15, %v4066_v9, %v4068_v16  ;;  %v4072_v21 = vrot.slane %v7749_v54, 6  ;;  %v4074_v62 = vrot.slane %v7784_v11, 6  ;;  %v3892_v50 = vld [vmem:[#allocation10 + $0x440] sm:$0xff]  ;;  %v3887_v9 = vld [vmem:[#allocation10 + $0x418] sm:$0xff] }
 0x4d5   : > { %5530 = vmatmul.mubr.f32.gmra.mxu0 %v3128_v61  ;;  %5619 = vmatprep.subr.mxu0 %v6266_v0  ;;  %v7912_v1 = vsel %vm983_vm15, %v4068_v16, %v4070_v23  ;;  %v4076_v28 = vrot.slane %v7770_v59, 6  ;;  %v4078_v13 = vrot.slane %v7818_v25, 6  ;;  %v3367_v25 = vld [vmem:[#allocation8 + $0x418] sm:$0xff]  ;;  %v3638_v61 = vld [vmem:[#allocation10 + $0x3f0] sm:$0xff]  ;;  %v3628_v43 = vld [vmem:[#allocation10 + $0x3a0] sm:$0xff] }
 0x4d6   : > { %5532 = vmatprep.mubr.msk.f32.mxu0 %vm6267_vm0, %v6266_v0  ;;  %5620 = vmatpush3.msra.mxu0 %v3371_v10  ;;  %v3397_v54 = vsel %vm1589_vm3, %v3394_v3, %v3396_v52  ;;  %v7922_v20 = vsel %vm983_vm15, %v4072_v21, %v4074_v62  ;;  %v7925_v11 = vsel %vm983_vm15, %v4070_v23, %v4072_v21  ;;  %v3889_v3 = vld [vmem:[#allocation10 + $0x428] sm:$0xff]  ;;  %v3624_v10 = vld [vmem:[#allocation10 + $0x380] sm:$0xff]  ;;  %v7984_v23 = vld [vmem:[#allocation10 + $0x378] sm:$0xff] }
 0x4d7   : > { %5594 = vmatprep.mubr.msk.f32.mxu1 %vm6267_vm0, %v6266_v0  ;;  %5621 = vmatprep.subr.mxu0 %v6266_v0  ;;  %v7931_v59 = vsel %vm983_vm15, %v4076_v28, %v4078_v13  ;;  %v7934_v44 = vsel %vm983_vm15, %v4074_v62, %v4076_v28  ;;  %v3885_v16 = vld [vmem:[#allocation10 + $0x408] sm:$0xff]  ;;  %v3884_v18 = vld [vmem:[#allocation10 + $0x400] sm:$0xff] }
 0x4d8   : > { %5595 = vmatmul.mubr.f32.gmra.mxu1 %v7827_v30  ;;  %5622 = vmatpush3.msra.mxu0 %v3370_v27  ;;  %v3899_v30 = vld [vmem:[#allocation10 + $0x478] sm:$0xff] }
 0x4d9   : > { %5533 = vmatmul.mubr.f32.gmra.mxu0 %v3130_v40  ;;  %5623 = vmatprep.subr.mxu0 %v6266_v0  ;;  %v3893_v40 = vld [vmem:[#allocation10 + $0x448] sm:$0xff] }
 0x4da   : > { %5535 = vmatprep.mubr.msk.f32.mxu0 %vm6267_vm0, %v6266_v0  ;;  %5597 = vmatprep.mubr.msk.f32.mxu1 %vm6267_vm0, %v6266_v0 }
 0x4db   : > { %5624 = vmatpush3.msra.mxu0 %v3369_v29  ;;  %5662 = vmatprep.subr.mxu1 %v3639_v48 }
 0x4dc   : > { %5598 = vmatmul.mubr.f32.gmra.mxu1 %v7834_v33  ;;  %5625 = vmatprep.subr.mxu0 %v6266_v0  ;;  %v3635_v33 = vld [vmem:[#allocation10 + $0x3d8] sm:$0xff] }
 0x4dd   : > { %5536 = vmatmul.mubr.f32.gmra.mxu0 %v3132_v5  ;;  %5600 = vmatprep.mubr.msk.f32.mxu1 %vm6267_vm0, %v6266_v0  ;;  %v3630_v5 = vld [vmem:[#allocation10 + $0x3b0] sm:$0xff] }
 0x4de   : > { %5626 = vmatpush3.msra.mxu0 %v3368_v14  ;;  %5538 = vmatprep.mubr.msk.f32.mxu0 %vm6267_vm0, %v6266_v0 }
 0x4df   : > { %5627 = vmatprep.subr.mxu0 %v6266_v0  ;;  %5663 = vmatpush3.msra.mxu1 %v3639_v48 }
 0x4e0   : > { %5628 = vmatpush3.msra.mxu0 %v3367_v25  ;;  %5601 = vmatmul.mubr.f32.gmra.mxu1 %v7855_v32  ;;  %v3631_v32 = vld [vmem:[#allocation10 + $0x3b8] sm:$0xff] }
 0x4e1   : > { %5539 = vmatmul.mubr.f32.gmra.mxu0 %v3134_v6  ;;  %5629 = vmatprep.subr.mxu0 %v6266_v0  ;;  %v3626_v6 = vld [vmem:[#allocation10 + $0x390] sm:$0xff] }
 0x4e2   : > { %5541 = vmatprep.mubr.msk.f32.mxu0 %vm6267_vm0, %v6266_v0  ;;  %5630 = vmatpush3.msra.mxu0 %v3366_v46 }
 0x4e3   : > { %5631 = vmatprep.subr.mxu0 %v6266_v0  ;;  %5664 = vmatprep.subr.mxu1 %v3638_v61 }
 0x4e4   : > { %5632 = vmatpush3.msra.mxu0 %v3365_v17  ;;  %5665 = vmatpush3.msra.mxu1 %v3638_v61 }
 0x4e5   : > { %5542 = vmatmul.mubr.f32.gmra.mxu0 %v3133_v55  ;;  %5633 = vmatprep.subr.mxu0 %v6266_v0  ;;  %v3890_v55 = vld [vmem:[#allocation10 + $0x430] sm:$0xff] }
 0x4e6   : > { %5634 = vmatpush3.msra.mxu0 %v3364_v36  ;;  %5635 = vmatprep.mubr.msk.f32.mxu0 %vm6267_vm0, %v6266_v0 }
 0x4e7   : > { %5750 = vmatprep.subr.mxu0 %v3899_v30  ;;  %5666 = vmatprep.subr.mxu1 %v3637_v49 }
 0x4e8   : > { %5667 = vmatpush3.msra.mxu1 %v3637_v49 }
 0x4e9   : > { %5636 = vmatmul.mubr.f32.vlgmr.msra.gmra.mxu0 %v7842_v2  ;;  %5668 = vmatprep.subr.mxu1 %v3636_v37  ;;  %v3895_v2 = vld [vmem:[#allocation10 + $0x458] sm:$0xff] }
 0x4ea   : > { %5638 = vmatprep.mubr.msk.f32.mxu0 %vm6267_vm0, %v6266_v0  ;;  %5751 = vmatpush3.msra.mxu0 %v3899_v30 }
 0x4eb   : > { %5752 = vmatprep.subr.mxu0 %v3898_v56  ;;  %5669 = vmatpush3.msra.mxu1 %v3636_v37 }
 0x4ec   : > { %5753 = vmatpush3.msra.mxu0 %v3898_v56  ;;  %5670 = vmatprep.subr.mxu1 %v3635_v33 }
 0x4ed   : > { %5639 = vmatmul.mubr.f32.gmra.mxu0 %v7845_v45  ;;  %5671 = vmatpush3.msra.mxu1 %v3635_v33  ;;  %v3633_v45 = vld [vmem:[#allocation10 + $0x3c8] sm:$0xff] }
 0x4ee   : > { %5641 = vmatprep.mubr.msk.f32.mxu0 %vm6267_vm0, %v6266_v0  ;;  %5672 = vmatprep.subr.mxu1 %v3634_v7 }
 0x4ef   : > { %5673 = vmatpush3.msra.mxu1 %v3634_v7 }
 0x4f0   : > { %5674 = vmatprep.subr.mxu1 %v3633_v45 }
 0x4f1   : > { %5642 = vmatmul.mubr.f32.gmra.mxu0 %v7848_v57  ;;  %v3894_v57 = vld [vmem:[#allocation10 + $0x450] sm:$0xff]  ;;  %5675 = vmatpush3.msra.mxu1 %v3633_v45 }
 0x4f2   : > { %5644 = vmatprep.mubr.msk.f32.mxu0 %vm6267_vm0, %v6266_v0  ;;  %5676 = vmatprep.subr.mxu1 %v3632_v47 }
 0x4f3   : > { %5677 = vmatpush3.msra.mxu1 %v3632_v47 }
 0x4f4   : > { %5678 = vmatprep.subr.mxu1 %v3631_v32 }
 0x4f5   : > { %5645 = vmatmul.mubr.f32.gmra.mxu0 %v7865_v63  ;;  %5679 = vmatpush3.msra.mxu1 %v3631_v32  ;;  %v3888_v63 = vld [vmem:[#allocation10 + $0x420] sm:$0xff] }
 0x4f6   : > { %5647 = vmatprep.mubr.msk.f32.mxu0 %vm6267_vm0, %v6266_v0  ;;  %5680 = vmatprep.subr.mxu1 %v3630_v5 }
 0x4f7   : > { %5681 = vmatpush3.msra.mxu1 %v3630_v5 }
 0x4f8   : > { %5682 = vmatprep.subr.mxu1 %v3629_v60 }
 0x4f9   : > { %5648 = vmatmul.mubr.f32.gmra.mxu0 %v7868_v51  ;;  %5683 = vmatpush3.msra.mxu1 %v3629_v60  ;;  %v3627_v51 = vld [vmem:[#allocation10 + $0x398] sm:$0xff] }
 0x4fa   : > { %5650 = vmatprep.mubr.msk.f32.mxu0 %vm6267_vm0, %v6266_v0  ;;  %5684 = vmatprep.subr.mxu1 %v3628_v43 }
 0x4fb   : > { %5685 = vmatpush3.msra.mxu1 %v3628_v43 }
 0x4fc   : > { %5686 = vmatprep.subr.mxu1 %v3627_v51 }
 0x4fd   : > { %5651 = vmatmul.mubr.f32.gmra.mxu0 %v7878_v58  ;;  %v3886_v58 = vld [vmem:[#allocation10 + $0x410] sm:$0xff]  ;;  %5687 = vmatpush3.msra.mxu1 %v3627_v51  ;;  %v3545_v51 = vrot.slane %v7003_v35, 7 }
 0x4fe   : > { %5653 = vmatprep.mubr.msk.f32.mxu0 %vm6267_vm0, %v6266_v0  ;;  %5688 = vmatprep.subr.mxu1 %v3626_v6 }
 0x4ff   : > { %5689 = vmatpush3.msra.mxu1 %v3626_v6 }
 0x501   : > { %5654 = vmatmul.mubr.f32.gmra.mxu0 %v7881_v12  ;;  %v3625_v12 = vld [vmem:[#allocation10 + $0x388] sm:$0xff] }
 0x502   : > { %5656 = vmatprep.mubr.msk.f32.mxu0 %vm6267_vm0, %v6266_v0  ;;  %5690 = vmatprep.subr.mxu1 %v3625_v12 }
 0x503   : > { %5691 = vmatpush3.msra.mxu1 %v3625_v12 }
 0x504   : > { %5692 = vmatprep.subr.mxu1 %v3624_v10 }
 0x505   : > { %5657 = vmatmul.mubr.f32.gmra.mxu0 %v3397_v54  ;;  %5693 = vmatpush3.msra.mxu1 %v3624_v10 }
 0x506   : > { %5659 = vmatprep.mubr.msk.f32.mxu0 %vm6267_vm0, %v6266_v0  ;;  %v3897_v0 = vld [vmem:[#allocation10 + $0x468] sm:$0xff]  ;;  %5706 = vmatprep.subr.mxu1 %v7984_v23  ;;  %vm3543_vm0 = vcmask 1040384  }
 0x507   : > { %5754 = vmatprep.subr.mxu0 %v3897_v0 }
 0x508   : > { %5755 = vmatpush3.msra.mxu0 %v3897_v0 }
 0x509   : > { %5660 = vmatmul.mubr.f32.gmra.mxu0 %v3396_v52  ;;  %5756 = vmatprep.subr.mxu0 %v3896_v15 }
 0x50a   : > { %5757 = vmatpush3.msra.mxu0 %v3896_v15 }
 0x50b   : > { %5758 = vmatprep.subr.mxu0 %v3895_v2 }
 0x50c   : > { %5759 = vmatpush3.msra.mxu0 %v3895_v2 }
 0x50d   : > { %5760 = vmatprep.subr.mxu0 %v3894_v57 }
 0x50e   : > { %5761 = vmatpush3.msra.mxu0 %v3894_v57 }
 0x50f   : > { %5762 = vmatprep.subr.mxu0 %v3893_v40 }
 0x510   : > { %5763 = vmatpush3.msra.mxu0 %v3893_v40 }
 0x511   : > { %5764 = vmatprep.subr.mxu0 %v3892_v50 }
 0x512   : > { %5765 = vmatpush3.msra.mxu0 %v3892_v50 }
 0x513   : > { %5766 = vmatprep.subr.mxu0 %v3891_v53 }
 0x514   : > { %5767 = vmatpush3.msra.mxu0 %v3891_v53 }
 0x515   : > { %5768 = vmatprep.subr.mxu0 %v3890_v55 }
 0x516   : > { %5769 = vmatpush3.msra.mxu0 %v3890_v55 }
 0x517   : > { %5770 = vmatprep.subr.mxu0 %v3889_v3 }
 0x518   : > { %5771 = vmatpush3.msra.mxu0 %v3889_v3 }
 0x519   : > { %5772 = vmatprep.subr.mxu0 %v3888_v63 }
 0x51a   : > { %5773 = vmatpush3.msra.mxu0 %v3888_v63  ;;  %v3544_v63 = vrot.slane %v6991_v8, 7 }
 0x51b   : > { %5774 = vmatprep.subr.mxu0 %v3887_v9 }
 0x51c   : > { %5775 = vmatpush3.msra.mxu0 %v3887_v9 }
 0x51d   : > { %5776 = vmatprep.subr.mxu0 %v3886_v58 }
 0x51e   : > { %5777 = vmatpush3.msra.mxu0 %v3886_v58  ;;  %v8010_v58 = vld [vmem:[%s8302_s2 + $0x2] ss:$0 sm:$0xff] }
 0x51f   : > { %5778 = vmatprep.subr.mxu0 %v3885_v16 }
 0x520   : > { %5779 = vmatpush3.msra.mxu0 %v3885_v16  ;;  %v3546_v16 = vsel %vm3543_vm0, %v3544_v63, %v3545_v51 }
 0x521   : > { %5780 = vmatprep.subr.mxu0 %v3884_v18 }
 0x522   : > { %5781 = vmatpush3.msra.mxu0 %v3884_v18  ;;  %v3547_v18 = vrot.slane %v7018_v38, 7  ;;  %v3551_v38 = vrot.slane %v7038_v24, 7 }
 0x580   : > { %v3320_v52 = vpop.f32.mrf.mxu1 }
 0x582   : > { %v5578_v21 = vpop.f32.mrf.mxu1 }
 0x583   : > { %v3210_v62 = vpop.f32.mrf.mxu0 }
 0x584   : > { %v3325_v27 = vpop.f32.mrf.mxu1  ;;  %v3321_v9 = vadd.f32 %v3320_v52, %v3210_v62  ;;  %v3548_v52 = vsel %vm3543_vm0, %v3545_v51, %v3547_v18 }
 0x585   : > { %v5519_v28 = vpop.f32.mrf.mxu0 }
 0x586   : > { %v5581_v13 = vpop.f32.mrf.mxu1 }
 0x588   : > { %v3330_v54 = vpop.f32.mrf.mxu1 }
 0x589   : > { %v3215_v29 = vpop.f32.mrf.mxu0 }
 0x58a   : > { %v5584_v14 = vpop.f32.mrf.mxu1  ;;  %v3326_v21 = vadd.f32 %v3325_v27, %v3215_v29 }
 0x58b   : > { %v5522_v25 = vpop.f32.mrf.mxu0  ;;  %v3549_v14 = vrot.slane %v7021_v41, 7 }
 0x58c   : > { %v3335_v46 = vpop.f32.mrf.mxu1 }
 0x58d   : > { %v3220_v17 = vpop.f32.mrf.mxu0  ;;  %v3550_v29 = vsel %vm3543_vm0, %v3547_v18, %v3549_v14 }
 0x58e   : > { %v5587_v36 = vpop.f32.mrf.mxu1  ;;  %v3331_v25 = vadd.f32 %v3330_v54, %v3220_v17  ;;  %v3553_v54 = vrot.slane %v7057_v19, 7 }
 0x58f   : > { %v5525_v48 = vpop.f32.mrf.mxu0 }
 0x590   : > { %v7987_v61 = vpop.f32.mrf.mxu1 }
 0x591   : > { %v3225_v30 = vpop.f32.mrf.mxu0 }
 0x592   : > { %v5590_v49 = vpop.f32.mrf.mxu1  ;;  %v3336_v27 = vadd.f32 %v3335_v46, %v3225_v30 }
 0x593   : > { %v5528_v56 = vpop.f32.mrf.mxu0 }
 0x594   : > { %v7989_v37 = vpop.f32.mrf.mxu1 }
 0x595   : > { %v3230_v0 = vpop.f32.mrf.mxu0 }
 0x596   : > { %v5593_v33 = vpop.f32.mrf.mxu1  ;;  %v3341_v51 = vadd.f32 %v7987_v61, %v3230_v0  ;;  %v3554_v61 = vsel %vm3543_vm0, %v3551_v38, %v3553_v54 }
 0x597   : > { %v5531_v15 = vpop.f32.mrf.mxu0 }
 0x598   : > { %v7991_v7 = vpop.f32.mrf.mxu1 }
 0x599   : > { %v7993_v2 = vpop.f32.mrf.mxu0 }
 0x59a   : > { %v5596_v45 = vpop.f32.mrf.mxu1 }
 0x59b   : > { %v5534_v57 = vpop.f32.mrf.mxu0 }
 0x59c   : > { %v7995_v47 = vpop.f32.mrf.mxu1 }
 0x59d   : > { %v7997_v40 = vpop.f32.mrf.mxu0 }
 0x59e   : > { %v5599_v32 = vpop.f32.mrf.mxu1 }
 0x59f   : > { %v5537_v50 = vpop.f32.mrf.mxu0 }
 0x5a0   : > { %v7999_v53 = vpop.f32.mrf.mxu1 }
 0x5a1   : > { %v8001_v5 = vpop.f32.mrf.mxu0 }
 0x5a2   : > { %v5602_v55 = vpop.f32.mrf.mxu1 }
 0x5a3   : > { %v5540_v60 = vpop.f32.mrf.mxu0  ;;  %v3552_v55 = vsel %vm3543_vm0, %v3549_v14, %v3551_v38  ;;  %v3621_v38 = vld [vmem:[#allocation10 + $0x368] sm:$0xff] }
 0x5a5   : > { %v8003_v3 = vpop.f32.mrf.mxu0 }
 0x5a7   : > { %v5543_v43 = vpop.f32.mrf.mxu0 }
 0x5a9   : > { %v3473_v6 = vpop.f32.mrf.mxu0 }
 0x5aa   : > { %v3517_v12 = vadd.f32 %v3473_v6, %v3321_v9 }
 0x5ab   : > { %v5637_v10 = vpop.f32.mrf.mxu0 }
 0x5ac   : > { %v3534_v28 = vadd.f32 %v8010_v58, %v3517_v12 }
 0x5ad   : > { %v3478_v8 = vpop.f32.mrf.mxu0 }
 0x5ae   : > { %v3572_v13 = vmul.f32 %v3546_v16, %v3534_v28  ;;  %v3518_v35 = vadd.f32 %v3478_v8, %v3326_v21 }
 0x5af   : > { %v5640_v62 = vpop.f32.mrf.mxu0 }
 0x5b0   : > { %v3590_v36 = vmul.f32 0.1, %v3572_v13  ;;  %v3535_v48 = vadd.f32 %v8010_v58, %v3518_v35  ;;  %vm3581_vm4 = vcmp.ge.f32.partialorder %v3572_v13, 0.0  ;;  %v3346_v35 = vadd.f32 %v7989_v37, %v7993_v2 }
 0x5b1   : > { %v3483_v49 = vpop.f32.mrf.mxu0  ;;  %v3557_v2 = vrot.slane %v7113_v34, 7  ;;  %v3620_v34 = vld [vmem:[#allocation10 + $0x360] sm:$0xff] }
 0x5b2   : > { %v3573_v56 = vmul.f32 %v3548_v52, %v3535_v48  ;;  %v3519_v33 = vadd.f32 %v3483_v49, %v3331_v25  ;;  %v8021_v32 = vsel %vm3581_vm4, %v3572_v13, %v3590_v36  ;;  %v3555_v13 = vrot.slane %v7082_v4, 7  ;;  %v3622_v48 = vld [vmem:[#allocation10 + $0x370] sm:$0xff] }
 0x5b3   : > { %v5643_v15 = vpop.f32.mrf.mxu0  ;;  %v3649_v46 = vrot.slane %v8021_v32, 1  ;;  %v3900_v43 = vrot.slane %v8021_v32, 2 }
 0x5b4   : > { %vm3582_vm15 = vcmp.ge.f32.partialorder %v3573_v56, 0.0  ;;  %v3591_v45 = vmul.f32 0.1, %v3573_v56  ;;  %v3536_v57 = vadd.f32 %v8010_v58, %v3519_v33  ;;  %v3556_v4 = vsel %vm3543_vm0, %v3553_v54, %v3555_v13 }
 0x5b5   : > { %v3488_v41 = vpop.f32.mrf.mxu0  ;;  %v3351_v15 = vadd.f32 %v7991_v7, %v7997_v40  ;;  %v3558_v7 = vsel %vm3543_vm0, %v3555_v13, %v3557_v2  ;;  %v3361_v13 = vadd.f32 %v7999_v53, %v8003_v3 }
 0x5b6   : > { %v3574_v17 = vmul.f32 %v3550_v29, %v3536_v57  ;;  %v3520_v50 = vadd.f32 %v3488_v41, %v3336_v27  ;;  %v8025_v60 = vsel %vm3582_vm15, %v3573_v56, %v3591_v45 }
 0x5b7   : > { %v5646_v24 = vpop.f32.mrf.mxu0  ;;  %v3650_v30 = vrot.slane %v8025_v60, 1  ;;  %v3901_v63 = vrot.slane %v8025_v60, 2 }
 0x5b8   : > { %vm3583_vm6 = vcmp.ge.f32.partialorder %v3574_v17, 0.0  ;;  %v3592_v9 = vmul.f32 0.1, %v3574_v17  ;;  %v3537_v19 = vadd.f32 %v8010_v58, %v3520_v50  ;;  %v3559_v24 = vrot.slane %v7138_v42, 7  ;;  %v3618_v42 = vld [vmem:[#allocation10 + $0x350] sm:$0xff] }
 0x5b9   : > { %v3493_v6 = vpop.f32.mrf.mxu0  ;;  %v3651_v12 = vsel %vm1300_vm12, %v3649_v46, %v3650_v30  ;;  %v3902_v16 = vsel %vm1589_vm3, %v3900_v43, %v3901_v63  ;;  %v3619_v46 = vld [vmem:[#allocation10 + $0x358] sm:$0xff] }
 0x5ba   : > { %v8035_v10 = vsel %vm3583_vm6, %v3574_v17, %v3592_v9  ;;  %v3575_v18 = vmul.f32 %v3552_v55, %v3537_v19  ;;  %v3521_v21 = vadd.f32 %v3493_v6, %v3341_v51  ;;  %5694 = vmatprep.mubr.f32.mxu1 %v3651_v12  ;;  %5782 = vmatprep.mubr.f32.mxu0 %v3902_v16 }
 0x5bb   : > { %v3652_v28 = vrot.slane %v8035_v10, 1  ;;  %v3903_v8 = vrot.slane %v8035_v10, 2  ;;  %v5649_v0 = vpop.f32.mrf.mxu0 }
 0x5bc   : > { %vm3584_vm8 = vcmp.ge.f32.partialorder %v3575_v18, 0.0  ;;  %v3593_v52 = vmul.f32 0.1, %v3575_v18  ;;  %v3538_v62 = vadd.f32 %v8010_v58, %v3521_v21 }
 0x5bd   : > { %v3498_v14 = vpop.f32.mrf.mxu0  ;;  %v3653_v25 = vsel %vm1300_vm12, %v3650_v30, %v3652_v28  ;;  %v3904_v36 = vsel %vm1589_vm3, %v3901_v63, %v3903_v8  ;;  %v3356_v63 = vadd.f32 %v7995_v47, %v8001_v5  ;;  %v3560_v47 = vsel %vm3543_vm0, %v3557_v2, %v3559_v24 }
 0x5be   : > { %v3576_v49 = vmul.f32 %v3554_v61, %v3538_v62  ;;  %v3522_v56 = vadd.f32 %v3498_v14, %v3346_v35  ;;  %5695 = vmatmul.mubr.f32.vlgmr.msra.gmra.mxu1 %v3653_v25  ;;  %5783 = vmatmul.mubr.f32.vlgmr.msra.gmra.mxu0 %v3904_v36  ;;  %v8046_v33 = vsel %vm3584_vm8, %v3575_v18, %v3593_v52 }
 0x5bf   : > { %5707 = vmatpush3.msra.mxu1 %v7984_v23  ;;  %v5652_v37 = vpop.f32.mrf.mxu0  ;;  %v3654_v27 = vrot.slane %v8046_v33, 1  ;;  %v3905_v29 = vrot.slane %v8046_v33, 2 }
 0x5c0   : > { %vm3585_vm5 = vcmp.ge.f32.partialorder %v3576_v49, 0.0  ;;  %v3594_v45 = vmul.f32 0.1, %v3576_v49  ;;  %v3539_v57 = vadd.f32 %v8010_v58, %v3522_v56  ;;  %5708 = vmatprep.subr.mxu1 %v3622_v48  ;;  %v3615_v56 = vld [vmem:[#allocation10 + $0x338] sm:$0xff] }
 0x5c1   : > { %5709 = vmatpush3.msra.mxu1 %v3622_v48  ;;  %v3503_v41 = vpop.f32.mrf.mxu0  ;;  %v3655_v23 = vsel %vm1300_vm12, %v3652_v28, %v3654_v27  ;;  %v3906_v54 = vsel %vm1589_vm3, %v3903_v8, %v3905_v29  ;;  %v3561_v28 = vrot.slane %v7167_v31, 7  ;;  %v3617_v8 = vld [vmem:[#allocation10 + $0x348] sm:$0xff]  ;;  %v3616_v31 = vld [vmem:[#allocation10 + $0x340] sm:$0xff] }
 0x5c2   : > { %v8058_v17 = vsel %vm3585_vm5, %v3576_v49, %v3594_v45  ;;  %v3577_v50 = vmul.f32 %v3556_v4, %v3539_v57  ;;  %v3523_v55 = vadd.f32 %v3503_v41, %v3351_v15  ;;  %5710 = vmatprep.subr.mxu1 %v3621_v38  ;;  %5697 = vmatprep.mubr.f32.mxu1 %v3655_v23  ;;  %v3614_v15 = vld [vmem:[#allocation10 + $0x330] sm:$0xff]  ;;  %v3613_v41 = vld [vmem:[#allocation10 + $0x328] sm:$0xff] }
 0x5c3   : > { %5711 = vmatpush3.msra.mxu1 %v3621_v38  ;;  %5785 = vmatprep.mubr.f32.mxu0 %v3906_v54  ;;  %v5655_v40 = vpop.f32.mrf.mxu0  ;;  %v3656_v30 = vrot.slane %v8058_v17, 1  ;;  %v3907_v43 = vrot.slane %v8058_v17, 2  ;;  %v3562_v53 = vsel %vm3543_vm0, %v3559_v24, %v3561_v28 }
 0x5c4   : > { %vm3586_vm7 = vcmp.ge.f32.partialorder %v3577_v50, 0.0  ;;  %v3595_v51 = vmul.f32 0.1, %v3577_v50  ;;  %v3540_v9 = vadd.f32 %v8010_v58, %v3523_v55  ;;  %5712 = vmatprep.subr.mxu1 %v3620_v34  ;;  %v3612_v55 = vld [vmem:[#allocation10 + $0x320] sm:$0xff]  ;;  %v3611_v40 = vld [vmem:[#allocation10 + $0x318] sm:$0xff] }
 0x5c5   : > { %5713 = vmatpush3.msra.mxu1 %v3620_v34  ;;  %v3508_v19 = vpop.f32.mrf.mxu0  ;;  %v3657_v6 = vsel %vm1300_vm12, %v3654_v27, %v3656_v30  ;;  %v3908_v12 = vsel %vm1589_vm3, %v3905_v29, %v3907_v43 }
 0x5c6   : > { %v3578_v16 = vmul.f32 %v3558_v7, %v3540_v9  ;;  %v3524_v18 = vadd.f32 %v3508_v19, %v3356_v63  ;;  %5714 = vmatprep.subr.mxu1 %v3619_v46  ;;  %5698 = vmatmul.mubr.f32.gmra.mxu1 %v3657_v6  ;;  %v8069_v21 = vsel %vm3586_vm7, %v3577_v50, %v3595_v51  ;;  %v3610_v63 = vld [vmem:[#allocation10 + $0x310] sm:$0xff]  ;;  %v3609_v51 = vld [vmem:[#allocation10 + $0x308] sm:$0xff]  ;;  %v3608_v9 = vld [vmem:[#allocation10 + $0x300] sm:$0xff] }
 0x5c7   : > { %5715 = vmatpush3.msra.mxu1 %v3619_v46  ;;  %5786 = vmatmul.mubr.f32.gmra.mxu0 %v3908_v12  ;;  %v5658_v5 = vpop.f32.mrf.mxu0  ;;  %v3658_v61 = vrot.slane %v8069_v21, 1  ;;  %v3909_v0 = vrot.slane %v8069_v21, 2 }
 0x5c8   : > { %vm3587_vm9 = vcmp.ge.f32.partialorder %v3578_v16, 0.0  ;;  %v3596_v35 = vmul.f32 0.1, %v3578_v16  ;;  %v3541_v52 = vadd.f32 %v8010_v58, %v3524_v18  ;;  %5716 = vmatprep.subr.mxu1 %v3618_v42 }
 0x5c9   : > { %5717 = vmatpush3.msra.mxu1 %v3618_v42  ;;  %v3513_v62 = vpop.f32.mrf.mxu0  ;;  %v3659_v14 = vsel %vm1300_vm12, %v3656_v30, %v3658_v61  ;;  %v3910_v25 = vsel %vm1589_vm3, %v3907_v43, %v3909_v0 }
 0x5ca   : > { %v8080_v36 = vsel %vm3587_vm9, %v3578_v16, %v3596_v35  ;;  %v3579_v48 = vmul.f32 %v3560_v47, %v3541_v52  ;;  %v3525_v49 = vadd.f32 %v3513_v62, %v3361_v13  ;;  %5718 = vmatprep.subr.mxu1 %v3617_v8  ;;  %5700 = vmatprep.mubr.f32.mxu1 %v3659_v14 }
 0x5cb   : > { %5719 = vmatpush3.msra.mxu1 %v3617_v8  ;;  %5788 = vmatprep.mubr.f32.mxu0 %v3910_v25  ;;  %v5661_v3 = vpop.f32.mrf.mxu0  ;;  %v3660_v4 = vrot.slane %v8080_v36, 1  ;;  %v3911_v37 = vrot.slane %v8080_v36, 2 }
 0x5cc   : > { %vm3588_vm10 = vcmp.ge.f32.partialorder %v3579_v48, 0.0  ;;  %v3597_v2 = vmul.f32 0.1, %v3579_v48  ;;  %v3542_v38 = vadd.f32 %v8010_v58, %v3525_v49  ;;  %5720 = vmatprep.subr.mxu1 %v3616_v31 }
 0x5cd   : > { %5721 = vmatpush3.msra.mxu1 %v3616_v31  ;;  %v3661_v27 = vsel %vm1300_vm12, %v3658_v61, %v3660_v4  ;;  %v3912_v29 = vsel %vm1589_vm3, %v3909_v0, %v3911_v37 }
 0x5ce   : > { %v3580_v45 = vmul.f32 %v3562_v53, %v3542_v38  ;;  %5722 = vmatprep.subr.mxu1 %v3615_v56  ;;  %5701 = vmatmul.mubr.f32.gmra.mxu1 %v3661_v27  ;;  %v3606_v57 = vsel %vm3588_vm10, %v3579_v48, %v3597_v2 }
 0x5cf   : > { %5723 = vmatpush3.msra.mxu1 %v3615_v56  ;;  %5789 = vmatmul.mubr.f32.gmra.mxu0 %v3912_v29  ;;  %v3662_v23 = vrot.slane %v3606_v57, 1  ;;  %v3913_v54 = vrot.slane %v3606_v57, 2 }
 0x5d0   : > { %vm3589_vm11 = vcmp.ge.f32.partialorder %v3580_v45, 0.0  ;;  %v3598_v34 = vmul.f32 0.1, %v3580_v45  ;;  %5724 = vmatprep.subr.mxu1 %v3614_v15 }
 0x5d1   : > { %5725 = vmatpush3.msra.mxu1 %v3614_v15  ;;  %v3663_v58 = vsel %vm1300_vm12, %v3660_v4, %v3662_v23  ;;  %v3914_v50 = vsel %vm1589_vm3, %v3911_v37, %v3913_v54 }
 0x5d2   : > { %5726 = vmatprep.subr.mxu1 %v3613_v41  ;;  %5703 = vmatprep.mubr.f32.mxu1 %v3663_v58  ;;  %v3607_v7 = vsel %vm3589_vm11, %v3580_v45, %v3598_v34 }
 0x5d3   : > { %5727 = vmatpush3.msra.mxu1 %v3613_v41  ;;  %5791 = vmatprep.mubr.f32.mxu0 %v3914_v50  ;;  %v3664_v24 = vrot.slane %v3607_v7, 1  ;;  %v3915_v46 = vrot.slane %v3607_v7, 2 }
 0x5d4   : > { %5728 = vmatprep.subr.mxu1 %v3612_v55 }
 0x5d5   : > { %5729 = vmatpush3.msra.mxu1 %v3612_v55  ;;  %v3665_v30 = vsel %vm1300_vm12, %v3662_v23, %v3664_v24  ;;  %v3916_v43 = vsel %vm1589_vm3, %v3913_v54, %v3915_v46 }
 0x5d6   : > { %5730 = vmatprep.subr.mxu1 %v3611_v40  ;;  %5704 = vmatmul.mubr.f32.gmra.mxu1 %v3665_v30 }
 0x5d7   : > { %5731 = vmatpush3.msra.mxu1 %v3611_v40  ;;  %5792 = vmatmul.mubr.f32.gmra.mxu0 %v3916_v43 }
 0x5d8   : > { %5732 = vmatprep.subr.mxu1 %v3610_v63  ;;  %5738 = vmatprep.mubr.f32.mxu1 %v8021_v32 }
 0x5d9   : > { %5733 = vmatpush3.msra.mxu1 %v3610_v63 }
 0x5da   : > { %5734 = vmatprep.subr.mxu1 %v3609_v51 }
 0x5db   : > { %5735 = vmatpush3.msra.mxu1 %v3609_v51 }
 0x5dc   : > { %5736 = vmatprep.subr.mxu1 %v3608_v9 }
 0x5dd   : > { %5737 = vmatpush3.msra.mxu1 %v3608_v9 }
 0x5de   : > { %5739 = vmatmul.mubr.f32.vlgmr.msra.gmra.mxu1 %v8025_v60 }
 0x5df   : > { %5741 = vmatprep.mubr.f32.mxu1 %v8035_v10 }
 0x5e2   : > { %5742 = vmatmul.mubr.f32.gmra.mxu1 %v8046_v33 }
 0x5e3   : > { %5744 = vmatprep.mubr.f32.mxu1 %v8058_v17  ;;  %v4335_v17 = vld [vmem:[%s8312_s21 + $0x2] ss:$0 sm:$0xff] }
 0x5e6   : > { %5745 = vmatmul.mubr.f32.gmra.mxu1 %v8069_v21 }
 0x5e7   : > { %5747 = vmatprep.mubr.f32.mxu1 %v8080_v36 }
 0x5ea   : > { %5748 = vmatmul.mubr.f32.gmra.mxu1 %v3606_v57 }
 0x67e   : > { %v5696_v32 = vpop.f32.mrf.mxu1  ;;  %v5784_v18 = vpop.f32.mrf.mxu0 }
 0x680   : > { %v3740_v19 = vpop.f32.mrf.mxu1  ;;  %v3991_v60 = vpop.f32.mrf.mxu0 }
 0x686   : > { %v5699_v6 = vpop.f32.mrf.mxu1 }
 0x687   : > { %v5787_v10 = vpop.f32.mrf.mxu0 }
 0x688   : > { %v3750_v12 = vpop.f32.mrf.mxu1 }
 0x689   : > { %v4001_v0 = vpop.f32.mrf.mxu0 }
 0x68e   : > { %v5702_v42 = vpop.f32.mrf.mxu1 }
 0x68f   : > { %v5790_v14 = vpop.f32.mrf.mxu0 }
 0x690   : > { %v3760_v16 = vpop.f32.mrf.mxu1 }
 0x691   : > { %v4011_v2 = vpop.f32.mrf.mxu0 }
 0x696   : > { %v5705_v47 = vpop.f32.mrf.mxu1 }
 0x697   : > { %v5793_v45 = vpop.f32.mrf.mxu0 }
 0x698   : > { %v3770_v5 = vpop.f32.mrf.mxu1 }
 0x699   : > { %v4021_v7 = vpop.f32.mrf.mxu0 }
 0x69e   : > { %v5740_v28 = vpop.f32.mrf.mxu1 }
 0x69f   : > { %v3851_v33 = vadd.f32 %v5740_v28, %v5696_v32 }
 0x6a0   : > { %v3845_v21 = vpop.f32.mrf.mxu1 }
 0x6a1   : > { %v4031_v8 = vadd.f32 %v5784_v18, %v3851_v33  ;;  %v3846_v61 = vadd.f32 %v3845_v21, %v3740_v19 }
 0x6a2   : > { %v5743_v13 = vpop.f32.mrf.mxu1 }
 0x6a3   : > { %v4047_v35 = vadd.f32 %v4335_v17, %v4031_v8  ;;  %v4030_v52 = vadd.f32 %v3991_v60, %v3846_v61  ;;  %v3861_v62 = vadd.f32 %v5743_v13, %v5699_v6 }
 0x6a4   : > { %v3855_v25 = vpop.f32.mrf.mxu1 }
 0x6a5   : > { %v4089_v31 = vadd.f32 %v7893_v26, %v4047_v35  ;;  %v4046_v36 = vadd.f32 %v4335_v17, %v4030_v52  ;;  %v4033_v48 = vadd.f32 %v5787_v10, %v3861_v62  ;;  %v3856_v49 = vadd.f32 %v3855_v25, %v3750_v12 }
 0x6a6   : > { %v5746_v53 = vpop.f32.mrf.mxu1 }
 0x6a7   : > { %4097 = vst [vmem:[%s8105_s11 + $0x8] sm:$0xff] %v4089_v31  ;;  %v4088_v3 = vadd.f32 %v7900_v22, %v4046_v36  ;;  %v4049_v56 = vadd.f32 %v4335_v17, %v4033_v48  ;;  %v4032_v4 = vadd.f32 %v4001_v0, %v3856_v49  ;;  %v3871_v37 = vadd.f32 %v5746_v53, %v5702_v42 }
 0x6a8   : > { %v3865_v26 = vpop.f32.mrf.mxu1 }
 0x6a9   : > { %4096 = vst [vmem:[%s8105_s11] sm:$0xff] %v4088_v3  ;;  %v4091_v38 = vadd.f32 %v7912_v1, %v4049_v56  ;;  %v4048_v27 = vadd.f32 %v4335_v17, %v4032_v4  ;;  %v4035_v29 = vadd.f32 %v5790_v14, %v3871_v37  ;;  %v3866_v15 = vadd.f32 %v3865_v26, %v3760_v16 }
 0x6aa   : > { %v5749_v57 = vpop.f32.mrf.mxu1 }
 0x6ab   : > { %4099 = vst [vmem:[%s8105_s11 + $0x18] sm:$0xff] %v4091_v38  ;;  %v4090_v22 = vadd.f32 %v7906_v39, %v4048_v27  ;;  %v4051_v41 = vadd.f32 %v4335_v17, %v4035_v29  ;;  %v4034_v23 = vadd.f32 %v4011_v2, %v3866_v15  ;;  %v3881_v54 = vadd.f32 %v5749_v57, %v5705_v47 }
 0x6ac   : > { %v3875_v34 = vpop.f32.mrf.mxu1 }
 0x6ad   : > { %4098 = vst [vmem:[%s8105_s11 + $0x10] sm:$0xff] %v4090_v22  ;;  %v4093_v1 = vadd.f32 %v7922_v20, %v4051_v41  ;;  %v4050_v58 = vadd.f32 %v4335_v17, %v4034_v23  ;;  %v4037_v50 = vadd.f32 %v5793_v45, %v3881_v54  ;;  %v3876_v55 = vadd.f32 %v3875_v34, %v3770_v5 }
 0x6af   : > { %4101 = vst [vmem:[%s8105_s11 + $0x28] sm:$0xff] %v4093_v1  ;;  %v4092_v39 = vadd.f32 %v7925_v11, %v4050_v58  ;;  %v4053_v40 = vadd.f32 %v4335_v17, %v4037_v50  ;;  %v4036_v24 = vadd.f32 %v4021_v7, %v3876_v55 }
 0x6b1   : > { %4100 = vst [vmem:[%s8105_s11 + $0x20] sm:$0xff] %v4092_v39  ;;  %v4095_v46 = vadd.f32 %v7931_v59, %v4053_v40  ;;  %v4052_v20 = vadd.f32 %v4335_v17, %v4036_v24 }
 0x6b3   : > { %4103 = vst [vmem:[%s8105_s11 + $0x38] sm:$0xff] %v4095_v46  ;;  %v4094_v30 = vadd.f32 %v7934_v44, %v4052_v20 }
 0x6b5   : > { %4102 = vst [vmem:[%s8105_s11 + $0x30] sm:$0xff] %v4094_v30 }
 0x6b6   : > { %6114 = shalt.err (!%p6111_p3)
}
 0x6b7   : > { %s6115_s15 = scalar_lea.hbm %s8129_s25, 1024  ;;  %s6119_s1 = scalar_lea.hbm %s8315_s22, 8192 }
 0x6b8   : > { %p6116_p10 = scmp.ne.s32.totalorder %s8129_s25, %s6115_s15  ;;  %p6120_p0 = scmp.lt.s32.totalorder %s8129_s25, %s8315_s22 }
 0x6b9   : > { %p6121_p8 = scmp.lt.s32.totalorder %s6119_s1, %s6115_s15 }
 0x6ba   : > { %p6117_p4 = pnand %p6116_p10, %p8316_p1 }
 0x6bb   : > { %p6122_p6 = por %p6121_p8, %p6120_p0 }
 0x6bc   : > { %p6118_p2 = pneg %p6117_p4 }
 0x6be   : > { %p6123_p11 = pnand %p6122_p6, %p6118_p2 }
 0x6c0   : > { %6126 = shalt.err (!%p6123_p11)
}
 0x6c1   : > { %s6269_s17 = smov 128   ;;  %s6270_s28 = smov 8  }
 0x6c2   : > { %5808 = dma.vmem_to_hbm [thread:$0]  (%p8316_p1), %s8122_s3, 1024, %s8129_s25, %s4105_s24, %s6269_s17, %s6269_s17, %s6270_s28  }
 0x6c3 PF: > { %p5836_p13 = scmp.ge.s32.totalorder %s6257_s14, 2  ;;  %s4135_s0 = sand.u32 1, %s6229_s30  }
 0x6c4   : > { %p8317_p9 = scmp.ne.s32.totalorder %s8277_s6, 0  ;;  %s4136_s10 = scalar_lea.sflag [#allocation4], %s4135_s0 }
 0x6c6   : > { %p5828_p12 = pnand %p5836_p13, %p8317_p9 }
 0x6c8   : > { %p5829_p5 = pneg %p5828_p12 }
 0x6ca   : > { %6200 = dma.done.wait (%p5829_p5), %s4136_s10, 1024  }
 0x6cb   : > { %6202 = vsyncadd (%p5829_p5), %s4136_s10, 4294966272  ;;  %s27_s14 = sadd.s32 1, %s6257_s14   ;;  %s8319_s24 = sld [smem:[#allocation18_spill]] }
 0x6cc   : > { %p8160_p7 = scmp.ge.s32.totalorder %s27_s14, 10   ;;  %s8320_s25 = sld [smem:[#allocation19_spill]] }
 0x6cd   : > { %s8321_s27 = sld [smem:[#allocation20_spill]]  ;;  %s8328_s26 = smov %s8350_s4 }
 0x6ce   : > { %s8322_s18 = sld [smem:[#allocation30_spill]]  ;;  %s8329_s28 = smov %s6225_s29 }
 0x6cf   : > { %s8323_s10 = sld [smem:[#allocation23_spill]]  ;;  %s8331_s30 = smov %s6233_s8 }
 0x6d0   : > { %s8324_s11 = sld [smem:[#allocation24_spill]]  ;;  %s8332_s8 = smov %s6237_s9 }
 0x6d1   : > { %s8325_s12 = sld [smem:[#allocation26_spill]]  ;;  %s8333_s9 = smov %s6513_s7 }
 0x6d2   : > { %s8326_s6 = sld [smem:[#allocation27_spill]] }
 0x6d4   : > { %s8330_s29 = smov %s8322_s18  ;;  %26 = sbr.rel (!%p8160_p7) target bundleno = 22 (0x16), region = 129 }
 0x6d8   : > { %s8334_s13 = smov %s8326_s6 }
 0x6d9   :  { %4141 = vsyncpa [#allocation3], 1 }
 0x6da   :  { %4143 = vsyncpa [#allocation3 + $0x1], 1 }
 0x6db   :  { %4144 = vsyncpa [#allocation6], 1 }
 0x6dc   :  { %4146 = vsyncpa [#allocation6 + $0x1], 1 }
 0x6dd   :  { %4147 = vsyncpa [#allocation9], 1 }
 0x6de   :  { %4148 = vsyncpa [#allocation4], 1 }
 0x6df   :  { %4150 = vsyncpa [#allocation4 + $0x1], 1 }

</bundles_post_ra>
